<compile_context>
chip_gen: v7x
topology: tpu7x:2x2x1
jax: 0.10.0
libtpu: 0.0.40
codegen_flags: <defaults>
</compile_context>

<pallas_src>
import functools

import jax
import jax.numpy as jnp
import numpy as np
from jax.experimental import pallas as pl
from jax.experimental.pallas import tpu as pltpu


def _tensorcores_per_chip() -> int:
    """Best-effort TensorCores-per-chip (v7x -> 2, v5e/v6e -> 1; default 1)."""
    try:
        kind = jax.devices()[0].device_kind.lower()
    except Exception:
        return 1
    return 2 if "v7" in kind else 1


def custom_conv2d(x, weight, bias, stride, padding):
    """Conv2d forward matching torch.nn.Conv2d(..., stride=stride, padding=padding).

    x:      [N, Cin, H, W]      (NCHW, float32)
    weight: [Cout, Cin, KH, KW]
    bias:   [Cout]
    returns [N, Cout, OH, OW]   (NCHW)
    """
    N, Cin, H, W = x.shape
    Cout, _, KH, KW = weight.shape
    s = int(stride)
    p = int(padding)
    OH = (H + 2 * p - KH) // s + 1
    OW = (W + 2 * p - KW) // s + 1
    Hp, Wp = H + 2 * p, W + 2 * p
    M_TILE = OH * OW                      # output rows per batch element
    K_TOTAL = KH * KW * Cin               # single-GEMM contraction dim (=36 here)

    # Lane-dense output: pad Cout up to a multiple of 128 (full MXU / vst width).
    COUT_PAD = ((Cout + 127) // 128) * 128

    # Grid gating: one step per TensorCore's worth of batch.  v7x (2 TCs) keeps
    # grid=(N,)-style batch-parallel split; single-TC chips fold the batch into
    # one grid step so the ~0.35us fixed per-step overhead is paid once.
    ncores = _tensorcores_per_chip()
    steps = ncores if (ncores > 1 and N % ncores == 0) else 1
    NB = N // steps                       # batch elements per grid step
    MB = NB * M_TILE                      # GEMM M per grid step

    # ---- tiny layout plumbing in XLA (no inflated im2col in HBM) ----
    x_nhwc = jnp.transpose(x, (0, 2, 3, 1))                       # [N, H, W, Cin]
    x_pad = jnp.pad(x_nhwc, ((0, 0), (p, p), (p, p), (0, 0)))     # [N, Hp, Wp, Cin]

    # Single-GEMM weights [KH*KW*Cin, COUT_PAD], row order (kh, kw, cin) to match
    # the im2col column order built in-kernel.  Zero-padded output channels.
    w_flat = jnp.transpose(weight, (2, 3, 1, 0)).reshape(K_TOTAL, Cout)
    w_flat = jnp.pad(w_flat, ((0, 0), (0, COUT_PAD - Cout)))      # [K_TOTAL, COUT_PAD]
    b_row = jnp.pad(bias.reshape(1, Cout), ((0, 0), (0, COUT_PAD - Cout)))

    def conv_kernel(x_ref, w_ref, b_ref, o_ref, patches_ref):
        # x_ref:       [NB, Hp, Wp, Cin] padded images for this grid step (VMEM)
        # w_ref:       [K_TOTAL, COUT_PAD]     b_ref: [1, COUT_PAD]
        # o_ref:       [NB*M_TILE, COUT_PAD]
        # patches_ref: VMEM scratch [NB*M_TILE, K_TOTAL] (in-kernel im2col)
        for b in range(NB):
            for kh in range(KH):
                for kw in range(KW):
                    if s == 1:
                        win = x_ref[b, kh:kh + OH, kw:kw + OW, :]       # [OH, OW, Cin]
                    else:
                        # TODO(synk): stride>1 (strided sublane slice) is untested
                        # on-TPU for this lowering; exercised config uses stride=1.
                        win = x_ref[b, pl.ds(kh, OH, stride=s),
                                    pl.ds(kw, OW, stride=s), :]
                    t = kh * KW + kw
                    # (OH, OW, Cin) -> (OH*OW, Cin): cheap sublane merge since
                    # OW % 8 == 0 here; stays correct (just slower) otherwise.
                    patches_ref[b * M_TILE:(b + 1) * M_TILE,
                                t * Cin:(t + 1) * Cin] = win.reshape(M_TILE, Cin)
        # One K=K_TOTAL GEMM + fused bias, straight into the lane-dense output.
        acc = jnp.dot(patches_ref[...], w_ref[...],
                      preferred_element_type=jnp.float32)
        o_ref[...] = (acc + b_ref[...]).astype(o_ref.dtype)

    out_flat = pl.pallas_call(
        conv_kernel,
        out_shape=jax.ShapeDtypeStruct((N * M_TILE, COUT_PAD), jnp.float32),
        grid_spec=pltpu.PrefetchScalarGridSpec(
            num_scalar_prefetch=0,
            grid=(steps,),
            in_specs=[
                pl.BlockSpec((NB, Hp, Wp, Cin), lambda g: (g, 0, 0, 0)),
                pl.BlockSpec((K_TOTAL, COUT_PAD), lambda g: (0, 0)),
                pl.BlockSpec((1, COUT_PAD), lambda g: (0, 0)),
            ],
            out_specs=pl.BlockSpec((MB, COUT_PAD), lambda g: (g, 0)),
            scratch_shapes=[pltpu.VMEM((MB, K_TOTAL), jnp.float32)],
        ),
        compiler_params=pltpu.CompilerParams(
            dimension_semantics=("parallel",)),
    )(x_pad, w_flat, b_row)

    # Single fused XLA pass: drop channel padding, back to NCHW.
    out = out_flat[:, :Cout].reshape(N, OH, OW, Cout)
    return jnp.transpose(out, (0, 3, 1, 2))


if __name__ == "__main__":
    # CustomConv2d(in_channels=4, out_channels=8, kernel_size=3, stride=1,
    #              padding=1, custom_weights, custom_bias)
    N, Cin, H, W = 2, 4, 16, 16
    Cout, KH, KW = 8, 3, 3
    stride, padding = 1, 1

    key = jax.random.PRNGKey(0)
    kx, kw_, kb = jax.random.split(key, 3)
    x = jax.random.normal(kx, (N, Cin, H, W), dtype=jnp.float32)
    custom_weights = jax.random.normal(kw_, (Cout, Cin, KH, KW), dtype=jnp.float32)
    custom_bias = jax.random.normal(kb, (Cout,), dtype=jnp.float32)

    conv = jax.jit(functools.partial(custom_conv2d, stride=stride, padding=padding))
    out = jax.block_until_ready(conv(x, custom_weights, custom_bias))

    # Reference check against XLA's conv (same semantics as torch.nn.Conv2d).
    ref = jax.lax.conv_general_dilated(
        x, custom_weights,
        window_strides=(stride, stride),
        padding=[(padding, padding), (padding, padding)],
        dimension_numbers=("NCHW", "OIHW", "NCHW"),
    ) + custom_bias.reshape(1, Cout, 1, 1)
    ref = jax.block_until_ready(ref)

    assert out.shape == (N, Cout, H, W), out.shape
    np.testing.assert_allclose(np.asarray(out), np.asarray(ref), rtol=1e-4, atol=1e-4)
    print("KERNEL_OK")
</pallas_src>

<mosaic_0001>
module attributes {stable_mosaic.version = 11 : i64} {
  func.func @conv_kernel(%arg0: i32, %arg1: memref<2x18x18x4xf32, #tpu.memory_space<vmem>>, %arg2: memref<36x128xf32, #tpu.memory_space<vmem>>, %arg3: memref<1x128xf32, #tpu.memory_space<vmem>>, %arg4: memref<512x128xf32, #tpu.memory_space<vmem>>, %arg5: memref<512x36xf32, #tpu.memory_space<vmem>>) attributes {dimension_semantics = [#tpu.dimension_semantics<parallel>], iteration_bounds = array<i64: 1>, scalar_prefetch = 0 : i64, scratch_operands = 1 : i64, tpu.core_type = #tpu.core_type<tc>, window_params = [{transform_indices = @transform_0, window_bounds = array<i64: 2, 18, 18, 4>}, {pipeline_mode = #tpu.pipeline_mode<synchronous>, transform_indices = @transform_1, window_bounds = array<i64: 36, 128>}, {pipeline_mode = #tpu.pipeline_mode<synchronous>, transform_indices = @transform_2, window_bounds = array<i64: 1, 128>}, {transform_indices = @transform_3, window_bounds = array<i64: 512, 128>}]} {
    %c0 = arith.constant 0 : index
    %c0_0 = arith.constant 0 : index
    %c0_1 = arith.constant 0 : index
    %c0_2 = arith.constant 0 : index
    %0 = vector.load %arg1[%c0, %c0_0, %c0_1, %c0_2] : memref<2x18x18x4xf32, #tpu.memory_space<vmem>>, vector<1x16x16x4xf32>
    %1 = vector.shape_cast %0 : vector<1x16x16x4xf32> to vector<16x16x4xf32>
    %2 = vector.shape_cast %1 : vector<16x16x4xf32> to vector<256x4xf32>
    %c0_3 = arith.constant 0 : index
    %c0_4 = arith.constant 0 : index
    %3 = vector.load %arg5[%c0_3, %c0_4] : memref<512x36xf32, #tpu.memory_space<vmem>>, vector<256x4xf32>
    tpu.vector_store %arg5[%c0_3, %c0_4], %2 {strides = array<i32>} : memref<512x36xf32, #tpu.memory_space<vmem>>, vector<256x4xf32>,
    %c0_5 = arith.constant 0 : index
    %c0_6 = arith.constant 0 : index
    %c1 = arith.constant 1 : index
    %c0_7 = arith.constant 0 : index
    %4 = vector.load %arg1[%c0_5, %c0_6, %c1, %c0_7] : memref<2x18x18x4xf32, #tpu.memory_space<vmem>>, vector<1x16x16x4xf32>
    %5 = vector.shape_cast %4 : vector<1x16x16x4xf32> to vector<16x16x4xf32>
    %6 = vector.shape_cast %5 : vector<16x16x4xf32> to vector<256x4xf32>
    %c0_8 = arith.constant 0 : index
    %c4 = arith.constant 4 : index
    %7 = vector.load %arg5[%c0_8, %c4] : memref<512x36xf32, #tpu.memory_space<vmem>>, vector<256x4xf32>
    tpu.vector_store %arg5[%c0_8, %c4], %6 {strides = array<i32>} : memref<512x36xf32, #tpu.memory_space<vmem>>, vector<256x4xf32>,
    %c0_9 = arith.constant 0 : index
    %c0_10 = arith.constant 0 : index
    %c2 = arith.constant 2 : index
    %c0_11 = arith.constant 0 : index
    %8 = vector.load %arg1[%c0_9, %c0_10, %c2, %c0_11] : memref<2x18x18x4xf32, #tpu.memory_space<vmem>>, vector<1x16x16x4xf32>
    %9 = vector.shape_cast %8 : vector<1x16x16x4xf32> to vector<16x16x4xf32>
    %10 = vector.shape_cast %9 : vector<16x16x4xf32> to vector<256x4xf32>
    %c0_12 = arith.constant 0 : index
    %c8 = arith.constant 8 : index
    %11 = vector.load %arg5[%c0_12, %c8] : memref<512x36xf32, #tpu.memory_space<vmem>>, vector<256x4xf32>
    tpu.vector_store %arg5[%c0_12, %c8], %10 {strides = array<i32>} : memref<512x36xf32, #tpu.memory_space<vmem>>, vector<256x4xf32>,
    %c0_13 = arith.constant 0 : index
    %c1_14 = arith.constant 1 : index
    %c0_15 = arith.constant 0 : index
    %c0_16 = arith.constant 0 : index
    %12 = vector.load %arg1[%c0_13, %c1_14, %c0_15, %c0_16] : memref<2x18x18x4xf32, #tpu.memory_space<vmem>>, vector<1x16x16x4xf32>
    %13 = vector.shape_cast %12 : vector<1x16x16x4xf32> to vector<16x16x4xf32>
    %14 = vector.shape_cast %13 : vector<16x16x4xf32> to vector<256x4xf32>
    %c0_17 = arith.constant 0 : index
    %c12 = arith.constant 12 : index
    %15 = vector.load %arg5[%c0_17, %c12] : memref<512x36xf32, #tpu.memory_space<vmem>>, vector<256x4xf32>
    tpu.vector_store %arg5[%c0_17, %c12], %14 {strides = array<i32>} : memref<512x36xf32, #tpu.memory_space<vmem>>, vector<256x4xf32>,
    %c0_18 = arith.constant 0 : index
    %c1_19 = arith.constant 1 : index
    %c1_20 = arith.constant 1 : index
    %c0_21 = arith.constant 0 : index
    %16 = vector.load %arg1[%c0_18, %c1_19, %c1_20, %c0_21] : memref<2x18x18x4xf32, #tpu.memory_space<vmem>>, vector<1x16x16x4xf32>
    %17 = vector.shape_cast %16 : vector<1x16x16x4xf32> to vector<16x16x4xf32>
    %18 = vector.shape_cast %17 : vector<16x16x4xf32> to vector<256x4xf32>
    %c0_22 = arith.constant 0 : index
    %c16 = arith.constant 16 : index
    %19 = vector.load %arg5[%c0_22, %c16] : memref<512x36xf32, #tpu.memory_space<vmem>>, vector<256x4xf32>
    tpu.vector_store %arg5[%c0_22, %c16], %18 {strides = array<i32>} : memref<512x36xf32, #tpu.memory_space<vmem>>, vector<256x4xf32>,
    %c0_23 = arith.constant 0 : index
    %c1_24 = arith.constant 1 : index
    %c2_25 = arith.constant 2 : index
    %c0_26 = arith.constant 0 : index
    %20 = vector.load %arg1[%c0_23, %c1_24, %c2_25, %c0_26] : memref<2x18x18x4xf32, #tpu.memory_space<vmem>>, vector<1x16x16x4xf32>
    %21 = vector.shape_cast %20 : vector<1x16x16x4xf32> to vector<16x16x4xf32>
    %22 = vector.shape_cast %21 : vector<16x16x4xf32> to vector<256x4xf32>
    %c0_27 = arith.constant 0 : index
    %c20 = arith.constant 20 : index
    %23 = vector.load %arg5[%c0_27, %c20] : memref<512x36xf32, #tpu.memory_space<vmem>>, vector<256x4xf32>
    tpu.vector_store %arg5[%c0_27, %c20], %22 {strides = array<i32>} : memref<512x36xf32, #tpu.memory_space<vmem>>, vector<256x4xf32>,
    %c0_28 = arith.constant 0 : index
    %c2_29 = arith.constant 2 : index
    %c0_30 = arith.constant 0 : index
    %c0_31 = arith.constant 0 : index
    %24 = vector.load %arg1[%c0_28, %c2_29, %c0_30, %c0_31] : memref<2x18x18x4xf32, #tpu.memory_space<vmem>>, vector<1x16x16x4xf32>
    %25 = vector.shape_cast %24 : vector<1x16x16x4xf32> to vector<16x16x4xf32>
    %26 = vector.shape_cast %25 : vector<16x16x4xf32> to vector<256x4xf32>
    %c0_32 = arith.constant 0 : index
    %c24 = arith.constant 24 : index
    %27 = vector.load %arg5[%c0_32, %c24] : memref<512x36xf32, #tpu.memory_space<vmem>>, vector<256x4xf32>
    tpu.vector_store %arg5[%c0_32, %c24], %26 {strides = array<i32>} : memref<512x36xf32, #tpu.memory_space<vmem>>, vector<256x4xf32>,
    %c0_33 = arith.constant 0 : index
    %c2_34 = arith.constant 2 : index
    %c1_35 = arith.constant 1 : index
    %c0_36 = arith.constant 0 : index
    %28 = vector.load %arg1[%c0_33, %c2_34, %c1_35, %c0_36] : memref<2x18x18x4xf32, #tpu.memory_space<vmem>>, vector<1x16x16x4xf32>
    %29 = vector.shape_cast %28 : vector<1x16x16x4xf32> to vector<16x16x4xf32>
    %30 = vector.shape_cast %29 : vector<16x16x4xf32> to vector<256x4xf32>
    %c0_37 = arith.constant 0 : index
    %c28 = arith.constant 28 : index
    %31 = vector.load %arg5[%c0_37, %c28] : memref<512x36xf32, #tpu.memory_space<vmem>>, vector<256x4xf32>
    tpu.vector_store %arg5[%c0_37, %c28], %30 {strides = array<i32>} : memref<512x36xf32, #tpu.memory_space<vmem>>, vector<256x4xf32>,
    %c0_38 = arith.constant 0 : index
    %c2_39 = arith.constant 2 : index
    %c2_40 = arith.constant 2 : index
    %c0_41 = arith.constant 0 : index
    %32 = vector.load %arg1[%c0_38, %c2_39, %c2_40, %c0_41] : memref<2x18x18x4xf32, #tpu.memory_space<vmem>>, vector<1x16x16x4xf32>
    %33 = vector.shape_cast %32 : vector<1x16x16x4xf32> to vector<16x16x4xf32>
    %34 = vector.shape_cast %33 : vector<16x16x4xf32> to vector<256x4xf32>
    %c0_42 = arith.constant 0 : index
    %c32 = arith.constant 32 : index
    %35 = vector.load %arg5[%c0_42, %c32] : memref<512x36xf32, #tpu.memory_space<vmem>>, vector<256x4xf32>
    tpu.vector_store %arg5[%c0_42, %c32], %34 {strides = array<i32>} : memref<512x36xf32, #tpu.memory_space<vmem>>, vector<256x4xf32>,
    %c1_43 = arith.constant 1 : index
    %c0_44 = arith.constant 0 : index
    %c0_45 = arith.constant 0 : index
    %c0_46 = arith.constant 0 : index
    %36 = vector.load %arg1[%c1_43, %c0_44, %c0_45, %c0_46] : memref<2x18x18x4xf32, #tpu.memory_space<vmem>>, vector<1x16x16x4xf32>
    %37 = vector.shape_cast %36 : vector<1x16x16x4xf32> to vector<16x16x4xf32>
    %38 = vector.shape_cast %37 : vector<16x16x4xf32> to vector<256x4xf32>
    %c256 = arith.constant 256 : index
    %c0_47 = arith.constant 0 : index
    %39 = vector.load %arg5[%c256, %c0_47] : memref<512x36xf32, #tpu.memory_space<vmem>>, vector<256x4xf32>
    tpu.vector_store %arg5[%c256, %c0_47], %38 {strides = array<i32>} : memref<512x36xf32, #tpu.memory_space<vmem>>, vector<256x4xf32>,
    %c1_48 = arith.constant 1 : index
    %c0_49 = arith.constant 0 : index
    %c1_50 = arith.constant 1 : index
    %c0_51 = arith.constant 0 : index
    %40 = vector.load %arg1[%c1_48, %c0_49, %c1_50, %c0_51] : memref<2x18x18x4xf32, #tpu.memory_space<vmem>>, vector<1x16x16x4xf32>
    %41 = vector.shape_cast %40 : vector<1x16x16x4xf32> to vector<16x16x4xf32>
    %42 = vector.shape_cast %41 : vector<16x16x4xf32> to vector<256x4xf32>
    %c256_52 = arith.constant 256 : index
    %c4_53 = arith.constant 4 : index
    %43 = vector.load %arg5[%c256_52, %c4_53] : memref<512x36xf32, #tpu.memory_space<vmem>>, vector<256x4xf32>
    tpu.vector_store %arg5[%c256_52, %c4_53], %42 {strides = array<i32>} : memref<512x36xf32, #tpu.memory_space<vmem>>, vector<256x4xf32>,
    %c1_54 = arith.constant 1 : index
    %c0_55 = arith.constant 0 : index
    %c2_56 = arith.constant 2 : index
    %c0_57 = arith.constant 0 : index
    %44 = vector.load %arg1[%c1_54, %c0_55, %c2_56, %c0_57] : memref<2x18x18x4xf32, #tpu.memory_space<vmem>>, vector<1x16x16x4xf32>
    %45 = vector.shape_cast %44 : vector<1x16x16x4xf32> to vector<16x16x4xf32>
    %46 = vector.shape_cast %45 : vector<16x16x4xf32> to vector<256x4xf32>
    %c256_58 = arith.constant 256 : index
    %c8_59 = arith.constant 8 : index
    %47 = vector.load %arg5[%c256_58, %c8_59] : memref<512x36xf32, #tpu.memory_space<vmem>>, vector<256x4xf32>
    tpu.vector_store %arg5[%c256_58, %c8_59], %46 {strides = array<i32>} : memref<512x36xf32, #tpu.memory_space<vmem>>, vector<256x4xf32>,
    %c1_60 = arith.constant 1 : index
    %c1_61 = arith.constant 1 : index
    %c0_62 = arith.constant 0 : index
    %c0_63 = arith.constant 0 : index
    %48 = vector.load %arg1[%c1_60, %c1_61, %c0_62, %c0_63] : memref<2x18x18x4xf32, #tpu.memory_space<vmem>>, vector<1x16x16x4xf32>
    %49 = vector.shape_cast %48 : vector<1x16x16x4xf32> to vector<16x16x4xf32>
    %50 = vector.shape_cast %49 : vector<16x16x4xf32> to vector<256x4xf32>
    %c256_64 = arith.constant 256 : index
    %c12_65 = arith.constant 12 : index
    %51 = vector.load %arg5[%c256_64, %c12_65] : memref<512x36xf32, #tpu.memory_space<vmem>>, vector<256x4xf32>
    tpu.vector_store %arg5[%c256_64, %c12_65], %50 {strides = array<i32>} : memref<512x36xf32, #tpu.memory_space<vmem>>, vector<256x4xf32>,
    %c1_66 = arith.constant 1 : index
    %c1_67 = arith.constant 1 : index
    %c1_68 = arith.constant 1 : index
    %c0_69 = arith.constant 0 : index
    %52 = vector.load %arg1[%c1_66, %c1_67, %c1_68, %c0_69] : memref<2x18x18x4xf32, #tpu.memory_space<vmem>>, vector<1x16x16x4xf32>
    %53 = vector.shape_cast %52 : vector<1x16x16x4xf32> to vector<16x16x4xf32>
    %54 = vector.shape_cast %53 : vector<16x16x4xf32> to vector<256x4xf32>
    %c256_70 = arith.constant 256 : index
    %c16_71 = arith.constant 16 : index
    %55 = vector.load %arg5[%c256_70, %c16_71] : memref<512x36xf32, #tpu.memory_space<vmem>>, vector<256x4xf32>
    tpu.vector_store %arg5[%c256_70, %c16_71], %54 {strides = array<i32>} : memref<512x36xf32, #tpu.memory_space<vmem>>, vector<256x4xf32>,
    %c1_72 = arith.constant 1 : index
    %c1_73 = arith.constant 1 : index
    %c2_74 = arith.constant 2 : index
    %c0_75 = arith.constant 0 : index
    %56 = vector.load %arg1[%c1_72, %c1_73, %c2_74, %c0_75] : memref<2x18x18x4xf32, #tpu.memory_space<vmem>>, vector<1x16x16x4xf32>
    %57 = vector.shape_cast %56 : vector<1x16x16x4xf32> to vector<16x16x4xf32>
    %58 = vector.shape_cast %57 : vector<16x16x4xf32> to vector<256x4xf32>
    %c256_76 = arith.constant 256 : index
    %c20_77 = arith.constant 20 : index
    %59 = vector.load %arg5[%c256_76, %c20_77] : memref<512x36xf32, #tpu.memory_space<vmem>>, vector<256x4xf32>
    tpu.vector_store %arg5[%c256_76, %c20_77], %58 {strides = array<i32>} : memref<512x36xf32, #tpu.memory_space<vmem>>, vector<256x4xf32>,
    %c1_78 = arith.constant 1 : index
    %c2_79 = arith.constant 2 : index
    %c0_80 = arith.constant 0 : index
    %c0_81 = arith.constant 0 : index
    %60 = vector.load %arg1[%c1_78, %c2_79, %c0_80, %c0_81] : memref<2x18x18x4xf32, #tpu.memory_space<vmem>>, vector<1x16x16x4xf32>
    %61 = vector.shape_cast %60 : vector<1x16x16x4xf32> to vector<16x16x4xf32>
    %62 = vector.shape_cast %61 : vector<16x16x4xf32> to vector<256x4xf32>
    %c256_82 = arith.constant 256 : index
    %c24_83 = arith.constant 24 : index
    %63 = vector.load %arg5[%c256_82, %c24_83] : memref<512x36xf32, #tpu.memory_space<vmem>>, vector<256x4xf32>
    tpu.vector_store %arg5[%c256_82, %c24_83], %62 {strides = array<i32>} : memref<512x36xf32, #tpu.memory_space<vmem>>, vector<256x4xf32>,
    %c1_84 = arith.constant 1 : index
    %c2_85 = arith.constant 2 : index
    %c1_86 = arith.constant 1 : index
    %c0_87 = arith.constant 0 : index
    %64 = vector.load %arg1[%c1_84, %c2_85, %c1_86, %c0_87] : memref<2x18x18x4xf32, #tpu.memory_space<vmem>>, vector<1x16x16x4xf32>
    %65 = vector.shape_cast %64 : vector<1x16x16x4xf32> to vector<16x16x4xf32>
    %66 = vector.shape_cast %65 : vector<16x16x4xf32> to vector<256x4xf32>
    %c256_88 = arith.constant 256 : index
    %c28_89 = arith.constant 28 : index
    %67 = vector.load %arg5[%c256_88, %c28_89] : memref<512x36xf32, #tpu.memory_space<vmem>>, vector<256x4xf32>
    tpu.vector_store %arg5[%c256_88, %c28_89], %66 {strides = array<i32>} : memref<512x36xf32, #tpu.memory_space<vmem>>, vector<256x4xf32>,
    %c1_90 = arith.constant 1 : index
    %c2_91 = arith.constant 2 : index
    %c2_92 = arith.constant 2 : index
    %c0_93 = arith.constant 0 : index
    %68 = vector.load %arg1[%c1_90, %c2_91, %c2_92, %c0_93] : memref<2x18x18x4xf32, #tpu.memory_space<vmem>>, vector<1x16x16x4xf32>
    %69 = vector.shape_cast %68 : vector<1x16x16x4xf32> to vector<16x16x4xf32>
    %70 = vector.shape_cast %69 : vector<16x16x4xf32> to vector<256x4xf32>
    %c256_94 = arith.constant 256 : index
    %c32_95 = arith.constant 32 : index
    %71 = vector.load %arg5[%c256_94, %c32_95] : memref<512x36xf32, #tpu.memory_space<vmem>>, vector<256x4xf32>
    tpu.vector_store %arg5[%c256_94, %c32_95], %70 {strides = array<i32>} : memref<512x36xf32, #tpu.memory_space<vmem>>, vector<256x4xf32>,
    %c0_96 = arith.constant 0 : index
    %c0_97 = arith.constant 0 : index
    %72 = vector.load %arg5[%c0_96, %c0_97] : memref<512x36xf32, #tpu.memory_space<vmem>>, vector<512x36xf32>
    %c0_98 = arith.constant 0 : index
    %c0_99 = arith.constant 0 : index
    %73 = vector.load %arg2[%c0_98, %c0_99] : memref<36x128xf32, #tpu.memory_space<vmem>>, vector<36x128xf32>
    %cst = arith.constant dense<0.000000e+00> : vector<512x128xf32>
    %74 = tpu.matmul %72, %73, %cst {dimension_numbers = #tpu.dot_dimension_numbers<[1], [0], [0], [1], [0, 0, 1, 1], [], []>} : vector<512x36xf32>, vector<36x128xf32>, vector<512x128xf32> -> vector<512x128xf32>
    %c0_100 = arith.constant 0 : index
    %c0_101 = arith.constant 0 : index
    %75 = vector.load %arg3[%c0_100, %c0_101] : memref<1x128xf32, #tpu.memory_space<vmem>>, vector<1x128xf32>
    %76 = vector.broadcast %75 : vector<1x128xf32> to vector<512x128xf32>
    %77 = arith.addf %74, %76 : vector<512x128xf32>
    %c0_102 = arith.constant 0 : index
    %c0_103 = arith.constant 0 : index
    %78 = vector.load %arg4[%c0_102, %c0_103] : memref<512x128xf32, #tpu.memory_space<vmem>>, vector<512x128xf32>
    tpu.vector_store %arg4[%c0_102, %c0_103], %77 {strides = array<i32>} : memref<512x128xf32, #tpu.memory_space<vmem>>, vector<512x128xf32>,
    return
  }
  func.func @transform_0(%arg0: i32) -> (i32, i32, i32, i32) {
    %c0_i32 = arith.constant 0 : i32
    %c0_i32_0 = arith.constant 0 : i32
    %c0_i32_1 = arith.constant 0 : i32
    %c0_i32_2 = arith.constant 0 : i32
    return %arg0, %c0_i32, %c0_i32_0, %c0_i32_1 : i32, i32, i32, i32
  }
  func.func @transform_1(%arg0: i32) -> (i32, i32) {
    %c0_i32 = arith.constant 0 : i32
    %c0_i32_0 = arith.constant 0 : i32
    %c0_i32_1 = arith.constant 0 : i32
    return %c0_i32, %c0_i32_0 : i32, i32
  }
  func.func @transform_2(%arg0: i32) -> (i32, i32) {
    %c0_i32 = arith.constant 0 : i32
    %c0_i32_0 = arith.constant 0 : i32
    %c0_i32_1 = arith.constant 0 : i32
    return %c0_i32, %c0_i32_0 : i32, i32
  }
  func.func @transform_3(%arg0: i32) -> (i32, i32) {
    %c0_i32 = arith.constant 0 : i32
    %c0_i32_0 = arith.constant 0 : i32
    return %arg0, %c0_i32 : i32, i32
  }
}

</mosaic_0001>

<bundles_post_ra>
// kernel: custom_conv2d.1
= control target key start
LH: loop header
LB: loop body
LE: loop exit
PB: predicated region body
PF: predicated region fallthrough
CT: control target
= control target key end

     0   :  { %s4698_s16 = smov 4   ;;  %vm46_vm0 = vcmask 31744   ;;  %s4699_s14 = smov 8   ;;  %vm239_vm1 = vcmask 64544   ;;  %vm432_vm2 = vcmask 97344   ;;  %vm626_vm3 = vcmask 130144   ;;  %s7735_s0 = inlined_call_operand.vmem [shape: f32[2,18,18,4], index: 0, kind: input, shape index: {}]   ;;  %s7736_s1 = inlined_call_operand.vmem [shape: f32[36,128], index: 1, kind: input, shape index: {}]   ;;  %s7737_s2 = inlined_call_operand.vmem [shape: f32[1,128], index: 2, kind: input, shape index: {}]   ;;  %s7738_s3 = inlined_call_operand.vmem [shape: f32[512,128], index: 3, kind: output, shape index: {}]  }
   0x1   :  { %v4729_v0 = vld [vmem:[%s7735_s0 + $0x19] sm:$0xff]  ;;  %v79_v1 = vld [vmem:[%s7735_s0 + $0x1] sm:$0xff]  ;;  %v80_v3 = vld [vmem:[%s7735_s0 + $0x9] sm:$0xff]  ;;  %s4700_s26 = smov 12   ;;  %s4701_s4 = smov 16   ;;  %vm819_vm4 = vcmask 162944  }
   0x2   :  { %147 = vrot.lane.b32.xlu1 %v4729_v0, %s4698_s16  ;;  %143 = vrot.lane.b32.xlu0 %v79_v1, %s4698_s16  ;;  %v4740_v2 = vld [vmem:[%s7735_s0 + $0x21] sm:$0xff]  ;;  %v4751_v4 = vld [vmem:[%s7735_s0 + $0x39] sm:$0xff]  ;;  %s4702_s9 = smov 20   ;;  %s4703_s15 = smov 24   ;;  %vm1012_vm5 = vcmask 195744   ;;  %vm1206_vm6 = vcmask 228544  }
   0x3   :  { %v4756_v5 = vld [vmem:[%s7735_s0 + $0x31] sm:$0xff]  ;;  %v4770_v7 = vld [vmem:[%s7735_s0 + $0x49] sm:$0xff]  ;;  %v4784_v9 = vld [vmem:[%s7735_s0 + $0x61] sm:$0xff]  ;;  %s4704_s25 = smov 28   ;;  %vm3497_vm7 = vcmask 1043456   ;;  %s4705_s11 = smov 32  }
   0x4   :  { %v4765_v6 = vld [vmem:[%s7735_s0 + $0x51] sm:$0xff]  ;;  %v4779_v8 = vld [vmem:[%s7735_s0 + $0x69] sm:$0xff]  ;;  %v4793_v10 = vld [vmem:[%s7735_s0 + $0x81] sm:$0xff]  ;;  %vm1399_vm8 = vcmask 261344   ;;  %vm1592_vm9 = vcmask 294144   ;;  %vm3304_vm10 = vcmask 293888  }
   0x5   :  { %v4798_v11 = vld [vmem:[%s7735_s0 + $0x79] sm:$0xff]  ;;  %v4820_v15 = vld [vmem:[%s7735_s0 + $0x91] sm:$0xff]  ;;  %v15_v17 = vld [vmem:[%s7735_s0 + $0x8] sm:$0xff] }
   0x6   :  { %149 = vrot.lane.b32.xlu1 %v4740_v2, %s4698_s16  ;;  %145 = vrot.lane.b32.xlu0 %v80_v3, %s4698_s16  ;;  %v4807_v12 = vld [vmem:[%s7735_s0 + $0x18] sm:$0xff]  ;;  %v14_v13 = vld [vmem:[%s7735_s0] sm:$0xff]  ;;  %48 = vst.msk [vmem:[#allocation2 + $0x8] sm:$0xff] %vm46_vm0, %v15_v17 }
   0x7   :  { %v4815_v14 = vld [vmem:[%s7735_s0 + $0x99] sm:$0xff]  ;;  %49 = vst.msk [vmem:[#allocation2 + $0x10] sm:$0xff] %vm46_vm0, %v4807_v12  ;;  %47 = vst.msk [vmem:[#allocation2] sm:$0xff] %vm46_vm0, %v14_v13  ;;  %v4838_v18 = vld [vmem:[%s7735_s0 + $0xb1] sm:$0xff] }
   0x8   :  { %v4828_v16 = vld [vmem:[%s7735_s0 + $0x20] sm:$0xff]  ;;  %v4844_v19 = vld [vmem:[%s7735_s0 + $0x38] sm:$0xff]  ;;  %v4849_v20 = vld [vmem:[%s7735_s0 + $0x30] sm:$0xff] }
   0x9   :  { %50 = vst.msk [vmem:[#allocation2 + $0x18] sm:$0xff] %vm46_vm0, %v4828_v16  ;;  %v4858_v21 = vld [vmem:[%s7735_s0 + $0xa9] sm:$0xff]  ;;  %52 = vst.msk [vmem:[#allocation2 + $0x28] sm:$0xff] %vm46_vm0, %v4844_v19  ;;  %v4884_v25 = vld [vmem:[%s7735_s0 + $0x60] sm:$0xff] }
   0xa   :  { %153 = vrot.lane.b32.xlu1 %v4751_v4, %s4698_s16  ;;  %151 = vrot.lane.b32.xlu0 %v4756_v5, %s4698_s16  ;;  %51 = vst.msk [vmem:[#allocation2 + $0x20] sm:$0xff] %vm46_vm0, %v4849_v20  ;;  %v4867_v22 = vld [vmem:[%s7735_s0 + $0x50] sm:$0xff]  ;;  %v4874_v23 = vld [vmem:[%s7735_s0 + $0x48] sm:$0xff]  ;;  %55 = vst.msk [vmem:[#allocation2 + $0x40] sm:$0xff] %vm46_vm0, %v4884_v25 }
   0xb   :  { %54 = vst.msk [vmem:[#allocation2 + $0x38] sm:$0xff] %vm46_vm0, %v4867_v22  ;;  %v4879_v24 = vld [vmem:[%s7735_s0 + $0x68] sm:$0xff]  ;;  %53 = vst.msk [vmem:[#allocation2 + $0x30] sm:$0xff] %vm46_vm0, %v4874_v23  ;;  %v4895_v26 = vld [vmem:[%s7735_s0 + $0x80] sm:$0xff] }
   0xc   :  { %56 = vst.msk [vmem:[#allocation2 + $0x48] sm:$0xff] %vm46_vm0, %v4879_v24  ;;  %v4900_v27 = vld [vmem:[%s7735_s0 + $0x78] sm:$0xff]  ;;  %v4910_v29 = vld [vmem:[%s7735_s0 + $0xc9] sm:$0xff]  ;;  %v4915_v30 = vld [vmem:[%s7735_s0 + $0xc1] sm:$0xff] }
   0xd   :  { %v4905_v28 = vld [vmem:[%s7735_s0 + $0x98] sm:$0xff]  ;;  %58 = vst.msk [vmem:[#allocation2 + $0x58] sm:$0xff] %vm46_vm0, %v4895_v26  ;;  %57 = vst.msk [vmem:[#allocation2 + $0x50] sm:$0xff] %vm46_vm0, %v4900_v27  ;;  %v4926_v31 = vld [vmem:[%s7735_s0 + $0x90] sm:$0xff] }
   0xe   :  { %157 = vrot.lane.b32.xlu1 %v4765_v6, %s4698_s16  ;;  %155 = vrot.lane.b32.xlu0 %v4770_v7, %s4698_s16  ;;  %60 = vst.msk [vmem:[#allocation2 + $0x68] sm:$0xff] %vm46_vm0, %v4905_v28  ;;  %v4931_v32 = vld [vmem:[%s7735_s0 + $0xb0] sm:$0xff]  ;;  %v4936_v33 = vld [vmem:[%s7735_s0 + $0xa8] sm:$0xff]  ;;  %59 = vst.msk [vmem:[#allocation2 + $0x60] sm:$0xff] %vm46_vm0, %v4926_v31 }
   0xf   :  { %62 = vst.msk [vmem:[#allocation2 + $0x78] sm:$0xff] %vm46_vm0, %v4931_v32  ;;  %61 = vst.msk [vmem:[#allocation2 + $0x70] sm:$0xff] %vm46_vm0, %v4936_v33  ;;  %v4951_v34 = vld [vmem:[%s7735_s0 + $0xc8] sm:$0xff]  ;;  %v4956_v35 = vld [vmem:[%s7735_s0 + $0xc0] sm:$0xff] }
  0x10   :  { %64 = vst.msk [vmem:[#allocation2 + $0x88] sm:$0xff] %vm46_vm0, %v4951_v34  ;;  %63 = vst.msk [vmem:[#allocation2 + $0x80] sm:$0xff] %vm46_vm0, %v4956_v35  ;;  %v4965_v36 = vld [vmem:[%s7735_s0 + $0xe0] sm:$0xff]  ;;  %v4970_v37 = vld [vmem:[%s7735_s0 + $0xd8] sm:$0xff] }
  0x11   :  { %v4975_v38 = vld [vmem:[%s7735_s0 + $0xf8] sm:$0xff]  ;;  %66 = vst.msk [vmem:[#allocation2 + $0x98] sm:$0xff] %vm46_vm0, %v4965_v36  ;;  %65 = vst.msk [vmem:[#allocation2 + $0x90] sm:$0xff] %vm46_vm0, %v4970_v37  ;;  %v4986_v39 = vld [vmem:[%s7735_s0 + $0xf0] sm:$0xff] }
  0x12   :  { %161 = vrot.lane.b32.xlu1 %v4779_v8, %s4698_s16  ;;  %159 = vrot.lane.b32.xlu0 %v4784_v9, %s4698_s16  ;;  %68 = vst.msk [vmem:[#allocation2 + $0xa8] sm:$0xff] %vm46_vm0, %v4975_v38  ;;  %v4991_v40 = vld [vmem:[%s7735_s0 + $0x110] sm:$0xff]  ;;  %v4996_v41 = vld [vmem:[%s7735_s0 + $0x108] sm:$0xff]  ;;  %67 = vst.msk [vmem:[#allocation2 + $0xa0] sm:$0xff] %vm46_vm0, %v4986_v39 }
  0x13   :  { %70 = vst.msk [vmem:[#allocation2 + $0xb8] sm:$0xff] %vm46_vm0, %v4991_v40  ;;  %69 = vst.msk [vmem:[#allocation2 + $0xb0] sm:$0xff] %vm46_vm0, %v4996_v41  ;;  %v5011_v42 = vld [vmem:[%s7735_s0 + $0xe1] sm:$0xff]  ;;  %v5016_v43 = vld [vmem:[%s7735_s0 + $0xd9] sm:$0xff] }
  0x14   :  { %v5021_v44 = vld [vmem:[%s7735_s0 + $0x120] sm:$0xff]  ;;  %v5026_v45 = vld [vmem:[%s7735_s0 + $0x128] sm:$0xff]  ;;  %v5044_v47 = vld [vmem:[%s7735_s0 + $0xf1] sm:$0xff] }
  0x15   :  { %71 = vst.msk [vmem:[#allocation2 + $0xc0] sm:$0xff] %vm46_vm0, %v5021_v44  ;;  %72 = vst.msk [vmem:[#allocation2 + $0xc8] sm:$0xff] %vm46_vm0, %v5026_v45  ;;  %v5039_v46 = vld [vmem:[%s7735_s0 + $0xf9] sm:$0xff]  ;;  %v5067_v50 = vld [vmem:[%s7735_s0 + $0x111] sm:$0xff] }
  0x16   :  { %165 = vrot.lane.b32.xlu1 %v4793_v10, %s4698_s16  ;;  %163 = vrot.lane.b32.xlu0 %v4798_v11, %s4698_s16  ;;  %v5049_v48 = vld [vmem:[%s7735_s0 + $0x138] sm:$0xff]  ;;  %v5054_v49 = vld [vmem:[%s7735_s0 + $0x140] sm:$0xff] }
  0x17   :  { %73 = vst.msk [vmem:[#allocation2 + $0xd0] sm:$0xff] %vm46_vm0, %v5049_v48  ;;  %74 = vst.msk [vmem:[#allocation2 + $0xd8] sm:$0xff] %vm46_vm0, %v5054_v49  ;;  %v5072_v51 = vld [vmem:[%s7735_s0 + $0x109] sm:$0xff]  ;;  %v5082_v53 = vld [vmem:[%s7735_s0 + $0x158] sm:$0xff] }
  0x18   :  { %v5077_v52 = vld [vmem:[%s7735_s0 + $0x150] sm:$0xff]  ;;  %76 = vst.msk [vmem:[#allocation2 + $0xe8] sm:$0xff] %vm46_vm0, %v5082_v53  ;;  %v5100_v55 = vld [vmem:[%s7735_s0 + $0x121] sm:$0xff]  ;;  %v5128_v59 = vld [vmem:[%s7735_s0 + $0x139] sm:$0xff] }
  0x19   :  { %75 = vst.msk [vmem:[#allocation2 + $0xe0] sm:$0xff] %vm46_vm0, %v5077_v52  ;;  %v5095_v54 = vld [vmem:[%s7735_s0 + $0x129] sm:$0xff]  ;;  %v5123_v58 = vld [vmem:[%s7735_s0 + $0x141] sm:$0xff]  ;;  %v5137_v60 = vld [vmem:[%s7735_s0 + $0x159] sm:$0xff] }
  0x1a   :  { %169 = vrot.lane.b32.xlu1 %v4815_v14, %s4698_s16  ;;  %167 = vrot.lane.b32.xlu0 %v4820_v15, %s4698_s16  ;;  %v5105_v56 = vld [vmem:[%s7735_s0 + $0x168] sm:$0xff]  ;;  %v5110_v57 = vld [vmem:[%s7735_s0 + $0x170] sm:$0xff] }
  0x1b   :  { %77 = vst.msk [vmem:[#allocation2 + $0xf0] sm:$0xff] %vm46_vm0, %v5105_v56  ;;  %78 = vst.msk [vmem:[#allocation2 + $0xf8] sm:$0xff] %vm46_vm0, %v5110_v57  ;;  %v5142_v61 = vld [vmem:[%s7735_s0 + $0x151] sm:$0xff]  ;;  %v5156_v63 = vld [vmem:[%s7735_s0 + $0x169] sm:$0xff] }
  0x1c   :  { %7769 = vst [vmem:[#allocation3_spill] sm:$0xff] %v5142_v61  ;;  %v5151_v62 = vld [vmem:[%s7735_s0 + $0x171] sm:$0xff]  ;;  %7771 = vst [vmem:[#allocation5_spill] sm:$0xff] %v5156_v63  ;;  %v272_v3 = vld [vmem:[%s7735_s0 + $0x2] sm:$0xff] }
  0x1d   :  { %7770 = vst [vmem:[#allocation4_spill] sm:$0xff] %v5151_v62  ;;  %v273_v1 = vld [vmem:[%s7735_s0 + $0xa] sm:$0xff]  ;;  %v5173_v13 = vld [vmem:[%s7735_s0 + $0x22] sm:$0xff]  ;;  %v5178_v17 = vld [vmem:[%s7735_s0 + $0x1a] sm:$0xff] }
  0x1e   :  { %173 = vrot.lane.b32.xlu1 %v4838_v18, %s4698_s16  ;;  %171 = vrot.lane.b32.xlu0 %v4858_v21, %s4698_s16  ;;  %7772 = vst [vmem:[#allocation6_spill] sm:$0xff] %v5173_v13  ;;  %7773 = vst [vmem:[#allocation7_spill] sm:$0xff] %v5178_v17 }
  0x22   :  { %177 = vrot.lane.b32.xlu1 %v4910_v29, %s4698_s16  ;;  %175 = vrot.lane.b32.xlu0 %v4915_v30, %s4698_s16 }
  0x26   :  { %181 = vrot.lane.b32.xlu1 %v5011_v42, %s4698_s16  ;;  %179 = vrot.lane.b32.xlu0 %v5016_v43, %s4698_s16 }
  0x2a   :  { %185 = vrot.lane.b32.xlu1 %v5039_v46, %s4698_s16  ;;  %183 = vrot.lane.b32.xlu0 %v5044_v47, %s4698_s16 }
  0x2e   :  { %189 = vrot.lane.b32.xlu1 %v5067_v50, %s4698_s16  ;;  %187 = vrot.lane.b32.xlu0 %v5072_v51, %s4698_s16 }
  0x32   :  { %193 = vrot.lane.b32.xlu1 %v5095_v54, %s4698_s16  ;;  %191 = vrot.lane.b32.xlu0 %v5100_v55, %s4698_s16 }
  0x36   :  { %197 = vrot.lane.b32.xlu1 %v5123_v58, %s4698_s16  ;;  %195 = vrot.lane.b32.xlu0 %v5128_v59, %s4698_s16 }
  0x3a   :  { %201 = vrot.lane.b32.xlu1 %v5137_v60, %s4698_s16  ;;  %199 = vrot.lane.b32.xlu0 %v5142_v61, %s4698_s16 }
  0x3e   :  { %205 = vrot.lane.b32.xlu1 %v5151_v62, %s4698_s16  ;;  %203 = vrot.lane.b32.xlu0 %v5156_v63, %s4698_s16 }
  0x42   :  { %338 = vrot.lane.b32.xlu1 %v273_v1, %s4699_s14  ;;  %336 = vrot.lane.b32.xlu0 %v272_v3, %s4699_s14  ;;  %v5187_v1 = vld [vmem:[%s7735_s0 + $0x3a] sm:$0xff]  ;;  %v5192_v3 = vld [vmem:[%s7735_s0 + $0x32] sm:$0xff] }
  0x43   :  { %7774 = vst [vmem:[#allocation8_spill] sm:$0xff] %v5187_v1  ;;  %7775 = vst [vmem:[#allocation9_spill] sm:$0xff] %v5192_v3 }
  0x46   :  { %342 = vrot.lane.b32.xlu1 %v5173_v13, %s4699_s14  ;;  %340 = vrot.lane.b32.xlu0 %v5178_v17, %s4699_s14  ;;  %v5201_v17 = vld [vmem:[%s7735_s0 + $0x52] sm:$0xff]  ;;  %v5206_v13 = vld [vmem:[%s7735_s0 + $0x4a] sm:$0xff] }
  0x47   :  { %7776 = vst [vmem:[#allocation10_spill] sm:$0xff] %v5201_v17  ;;  %7777 = vst [vmem:[#allocation11_spill] sm:$0xff] %v5206_v13 }
  0x4a   :  { %346 = vrot.lane.b32.xlu1 %v5187_v1, %s4699_s14  ;;  %344 = vrot.lane.b32.xlu0 %v5192_v3, %s4699_s14  ;;  %v5215_v3 = vld [vmem:[%s7735_s0 + $0x6a] sm:$0xff]  ;;  %v5220_v1 = vld [vmem:[%s7735_s0 + $0x62] sm:$0xff] }
  0x4b   :  { %7778 = vst [vmem:[#allocation12_spill] sm:$0xff] %v5215_v3  ;;  %7779 = vst [vmem:[#allocation13_spill] sm:$0xff] %v5220_v1 }
  0x4e   :  { %350 = vrot.lane.b32.xlu1 %v5201_v17, %s4699_s14  ;;  %348 = vrot.lane.b32.xlu0 %v5206_v13, %s4699_s14  ;;  %v5229_v13 = vld [vmem:[%s7735_s0 + $0x82] sm:$0xff]  ;;  %v5234_v17 = vld [vmem:[%s7735_s0 + $0x7a] sm:$0xff] }
  0x4f   :  { %7780 = vst [vmem:[#allocation14_spill] sm:$0xff] %v5229_v13  ;;  %7781 = vst [vmem:[#allocation15_spill] sm:$0xff] %v5234_v17 }
  0x52   :  { %354 = vrot.lane.b32.xlu1 %v5215_v3, %s4699_s14  ;;  %352 = vrot.lane.b32.xlu0 %v5220_v1, %s4699_s14  ;;  %v5243_v1 = vld [vmem:[%s7735_s0 + $0x9a] sm:$0xff]  ;;  %v5248_v3 = vld [vmem:[%s7735_s0 + $0x92] sm:$0xff] }
  0x53   :  { %7782 = vst [vmem:[#allocation16_spill] sm:$0xff] %v5243_v1  ;;  %7783 = vst [vmem:[#allocation17_spill] sm:$0xff] %v5248_v3 }
  0x56   :  { %358 = vrot.lane.b32.xlu1 %v5229_v13, %s4699_s14  ;;  %356 = vrot.lane.b32.xlu0 %v5234_v17, %s4699_s14  ;;  %v5257_v17 = vld [vmem:[%s7735_s0 + $0xb2] sm:$0xff]  ;;  %v5262_v13 = vld [vmem:[%s7735_s0 + $0xaa] sm:$0xff] }
  0x57   :  { %7784 = vst [vmem:[#allocation18_spill] sm:$0xff] %v5257_v17  ;;  %7785 = vst [vmem:[#allocation19_spill] sm:$0xff] %v5262_v13 }
  0x5a   :  { %362 = vrot.lane.b32.xlu1 %v5243_v1, %s4699_s14  ;;  %360 = vrot.lane.b32.xlu0 %v5248_v3, %s4699_s14  ;;  %v5271_v3 = vld [vmem:[%s7735_s0 + $0xca] sm:$0xff]  ;;  %v5276_v1 = vld [vmem:[%s7735_s0 + $0xc2] sm:$0xff] }
  0x5b   :  { %7786 = vst [vmem:[#allocation20_spill] sm:$0xff] %v5271_v3  ;;  %7787 = vst [vmem:[#allocation21_spill] sm:$0xff] %v5276_v1 }
  0x5e   :  { %366 = vrot.lane.b32.xlu1 %v5257_v17, %s4699_s14  ;;  %364 = vrot.lane.b32.xlu0 %v5262_v13, %s4699_s14  ;;  %v5285_v13 = vld [vmem:[%s7735_s0 + $0xe2] sm:$0xff]  ;;  %v5290_v17 = vld [vmem:[%s7735_s0 + $0xda] sm:$0xff] }
  0x5f   :  { %7788 = vst [vmem:[#allocation22_spill] sm:$0xff] %v5285_v13  ;;  %7789 = vst [vmem:[#allocation23_spill] sm:$0xff] %v5290_v17 }
  0x62   :  { %370 = vrot.lane.b32.xlu1 %v5271_v3, %s4699_s14  ;;  %368 = vrot.lane.b32.xlu0 %v5276_v1, %s4699_s14  ;;  %v5299_v1 = vld [vmem:[%s7735_s0 + $0xfa] sm:$0xff]  ;;  %v5304_v3 = vld [vmem:[%s7735_s0 + $0xf2] sm:$0xff] }
  0x63   :  { %7790 = vst [vmem:[#allocation24_spill] sm:$0xff] %v5299_v1  ;;  %7791 = vst [vmem:[#allocation25_spill] sm:$0xff] %v5304_v3 }
  0x66   :  { %374 = vrot.lane.b32.xlu1 %v5285_v13, %s4699_s14  ;;  %372 = vrot.lane.b32.xlu0 %v5290_v17, %s4699_s14  ;;  %v5313_v17 = vld [vmem:[%s7735_s0 + $0x112] sm:$0xff]  ;;  %v5318_v13 = vld [vmem:[%s7735_s0 + $0x10a] sm:$0xff] }
  0x67   :  { %7792 = vst [vmem:[#allocation26_spill] sm:$0xff] %v5313_v17  ;;  %7793 = vst [vmem:[#allocation27_spill] sm:$0xff] %v5318_v13 }
  0x6a   :  { %378 = vrot.lane.b32.xlu1 %v5299_v1, %s4699_s14  ;;  %376 = vrot.lane.b32.xlu0 %v5304_v3, %s4699_s14  ;;  %v5327_v3 = vld [vmem:[%s7735_s0 + $0x12a] sm:$0xff]  ;;  %v5332_v1 = vld [vmem:[%s7735_s0 + $0x122] sm:$0xff] }
  0x6b   :  { %7794 = vst [vmem:[#allocation28_spill] sm:$0xff] %v5327_v3  ;;  %7795 = vst [vmem:[#allocation29_spill] sm:$0xff] %v5332_v1 }
  0x6e   :  { %382 = vrot.lane.b32.xlu1 %v5313_v17, %s4699_s14  ;;  %380 = vrot.lane.b32.xlu0 %v5318_v13, %s4699_s14  ;;  %v5341_v13 = vld [vmem:[%s7735_s0 + $0x142] sm:$0xff]  ;;  %v5346_v17 = vld [vmem:[%s7735_s0 + $0x13a] sm:$0xff] }
  0x6f   :  { %7796 = vst [vmem:[#allocation30_spill] sm:$0xff] %v5341_v13  ;;  %7797 = vst [vmem:[#allocation31_spill] sm:$0xff] %v5346_v17 }
  0x72   :  { %386 = vrot.lane.b32.xlu1 %v5327_v3, %s4699_s14  ;;  %384 = vrot.lane.b32.xlu0 %v5332_v1, %s4699_s14  ;;  %v5357_v1 = vld [vmem:[%s7735_s0 + $0x15a] sm:$0xff]  ;;  %v5362_v3 = vld [vmem:[%s7735_s0 + $0x152] sm:$0xff] }
  0x73   :  { %7798 = vst [vmem:[#allocation32_spill] sm:$0xff] %v5362_v3 }
  0x74   :  { %v148_v63 = vpop.permute.xlu1 %147  ;;  %v144_v62 = vpop.permute.xlu0 %143 }
  0x75   :  { %242 = vst.msk [vmem:[#allocation2 + $0x10] sm:$0xff] %vm239_vm1, %v148_v63  ;;  %240 = vst.msk [vmem:[#allocation2] sm:$0xff] %vm239_vm1, %v144_v62  ;;  %v5373_v62 = vld [vmem:[%s7735_s0 + $0x172] sm:$0xff] }
  0x76   :  { %390 = vrot.lane.b32.xlu1 %v5341_v13, %s4699_s14  ;;  %388 = vrot.lane.b32.xlu0 %v5346_v17, %s4699_s14  ;;  %v5378_v17 = vld [vmem:[%s7735_s0 + $0x16a] sm:$0xff] }
  0x78   :  { %v150_v61 = vpop.permute.xlu1 %149  ;;  %v146_v63 = vpop.permute.xlu0 %145 }
  0x79   :  { %243 = vst.msk [vmem:[#allocation2 + $0x18] sm:$0xff] %vm239_vm1, %v150_v61  ;;  %241 = vst.msk [vmem:[#allocation2 + $0x8] sm:$0xff] %vm239_vm1, %v146_v63 }
  0x7a   :  { %394 = vrot.lane.b32.xlu1 %v5357_v1, %s4699_s14  ;;  %392 = vrot.lane.b32.xlu0 %v5362_v3, %s4699_s14 }
  0x7c   :  { %v154_v13 = vpop.permute.xlu1 %153  ;;  %v152_v61 = vpop.permute.xlu0 %151 }
  0x7d   :  { %245 = vst.msk [vmem:[#allocation2 + $0x28] sm:$0xff] %vm239_vm1, %v154_v13  ;;  %244 = vst.msk [vmem:[#allocation2 + $0x20] sm:$0xff] %vm239_vm1, %v152_v61 }
  0x7e   :  { %398 = vrot.lane.b32.xlu1 %v5373_v62, %s4699_s14  ;;  %396 = vrot.lane.b32.xlu0 %v5378_v17, %s4699_s14 }
  0x80   :  { %v158_v63 = vpop.permute.xlu1 %157  ;;  %v156_v3 = vpop.permute.xlu0 %155 }
  0x81   :  { %247 = vst.msk [vmem:[#allocation2 + $0x38] sm:$0xff] %vm239_vm1, %v158_v63  ;;  %246 = vst.msk [vmem:[#allocation2 + $0x30] sm:$0xff] %vm239_vm1, %v156_v3 }
  0x82   :  { %532 = vrot.lane.b32.xlu1 %v4828_v16, %s4700_s26  ;;  %530 = vrot.lane.b32.xlu0 %v4807_v12, %s4700_s26 }
  0x84   :  { %v162_v13 = vpop.permute.xlu1 %161  ;;  %v160_v61 = vpop.permute.xlu0 %159 }
  0x85   :  { %249 = vst.msk [vmem:[#allocation2 + $0x48] sm:$0xff] %vm239_vm1, %v162_v13  ;;  %248 = vst.msk [vmem:[#allocation2 + $0x40] sm:$0xff] %vm239_vm1, %v160_v61 }
  0x86   :  { %536 = vrot.lane.b32.xlu1 %v4844_v19, %s4700_s26  ;;  %534 = vrot.lane.b32.xlu0 %v4849_v20, %s4700_s26 }
  0x88   :  { %v166_v3 = vpop.permute.xlu1 %165  ;;  %v164_v63 = vpop.permute.xlu0 %163 }
  0x89   :  { %251 = vst.msk [vmem:[#allocation2 + $0x58] sm:$0xff] %vm239_vm1, %v166_v3  ;;  %250 = vst.msk [vmem:[#allocation2 + $0x50] sm:$0xff] %vm239_vm1, %v164_v63 }
  0x8a   :  { %540 = vrot.lane.b32.xlu1 %v4867_v22, %s4700_s26  ;;  %538 = vrot.lane.b32.xlu0 %v4874_v23, %s4700_s26 }
  0x8c   :  { %v170_v12 = vpop.permute.xlu1 %169  ;;  %v168_v16 = vpop.permute.xlu0 %167 }
  0x8d   :  { %253 = vst.msk [vmem:[#allocation2 + $0x68] sm:$0xff] %vm239_vm1, %v170_v12  ;;  %252 = vst.msk [vmem:[#allocation2 + $0x60] sm:$0xff] %vm239_vm1, %v168_v16 }
  0x8e   :  { %544 = vrot.lane.b32.xlu1 %v4879_v24, %s4700_s26  ;;  %542 = vrot.lane.b32.xlu0 %v4884_v25, %s4700_s26 }
  0x90   :  { %v174_v13 = vpop.permute.xlu1 %173  ;;  %v172_v61 = vpop.permute.xlu0 %171 }
  0x91   :  { %255 = vst.msk [vmem:[#allocation2 + $0x78] sm:$0xff] %vm239_vm1, %v174_v13  ;;  %254 = vst.msk [vmem:[#allocation2 + $0x70] sm:$0xff] %vm239_vm1, %v172_v61 }
  0x92   :  { %548 = vrot.lane.b32.xlu1 %v4895_v26, %s4700_s26  ;;  %546 = vrot.lane.b32.xlu0 %v4900_v27, %s4700_s26 }
  0x94   :  { %v178_v3 = vpop.permute.xlu1 %177  ;;  %v176_v63 = vpop.permute.xlu0 %175 }
  0x95   :  { %257 = vst.msk [vmem:[#allocation2 + $0x88] sm:$0xff] %vm239_vm1, %v178_v3  ;;  %256 = vst.msk [vmem:[#allocation2 + $0x80] sm:$0xff] %vm239_vm1, %v176_v63 }
  0x96   :  { %552 = vrot.lane.b32.xlu1 %v4905_v28, %s4700_s26  ;;  %550 = vrot.lane.b32.xlu0 %v4926_v31, %s4700_s26 }
  0x98   :  { %v182_v12 = vpop.permute.xlu1 %181  ;;  %v180_v16 = vpop.permute.xlu0 %179 }
  0x99   :  { %259 = vst.msk [vmem:[#allocation2 + $0x98] sm:$0xff] %vm239_vm1, %v182_v12  ;;  %258 = vst.msk [vmem:[#allocation2 + $0x90] sm:$0xff] %vm239_vm1, %v180_v16 }
  0x9a   :  { %556 = vrot.lane.b32.xlu1 %v4931_v32, %s4700_s26  ;;  %554 = vrot.lane.b32.xlu0 %v4936_v33, %s4700_s26 }
  0x9c   :  { %v186_v13 = vpop.permute.xlu1 %185  ;;  %v184_v61 = vpop.permute.xlu0 %183 }
  0x9d   :  { %261 = vst.msk [vmem:[#allocation2 + $0xa8] sm:$0xff] %vm239_vm1, %v186_v13  ;;  %260 = vst.msk [vmem:[#allocation2 + $0xa0] sm:$0xff] %vm239_vm1, %v184_v61 }
  0x9e   :  { %560 = vrot.lane.b32.xlu1 %v4951_v34, %s4700_s26  ;;  %558 = vrot.lane.b32.xlu0 %v4956_v35, %s4700_s26 }
  0xa0   :  { %v190_v3 = vpop.permute.xlu1 %189  ;;  %v188_v63 = vpop.permute.xlu0 %187 }
  0xa1   :  { %263 = vst.msk [vmem:[#allocation2 + $0xb8] sm:$0xff] %vm239_vm1, %v190_v3  ;;  %262 = vst.msk [vmem:[#allocation2 + $0xb0] sm:$0xff] %vm239_vm1, %v188_v63 }
  0xa2   :  { %564 = vrot.lane.b32.xlu1 %v4965_v36, %s4700_s26  ;;  %562 = vrot.lane.b32.xlu0 %v4970_v37, %s4700_s26 }
  0xa4   :  { %v194_v12 = vpop.permute.xlu1 %193  ;;  %v192_v16 = vpop.permute.xlu0 %191 }
  0xa5   :  { %265 = vst.msk [vmem:[#allocation2 + $0xc8] sm:$0xff] %vm239_vm1, %v194_v12  ;;  %264 = vst.msk [vmem:[#allocation2 + $0xc0] sm:$0xff] %vm239_vm1, %v192_v16 }
  0xa6   :  { %568 = vrot.lane.b32.xlu1 %v4975_v38, %s4700_s26  ;;  %566 = vrot.lane.b32.xlu0 %v4986_v39, %s4700_s26 }
  0xa8   :  { %v198_v13 = vpop.permute.xlu1 %197  ;;  %v196_v61 = vpop.permute.xlu0 %195 }
  0xa9   :  { %267 = vst.msk [vmem:[#allocation2 + $0xd8] sm:$0xff] %vm239_vm1, %v198_v13  ;;  %266 = vst.msk [vmem:[#allocation2 + $0xd0] sm:$0xff] %vm239_vm1, %v196_v61 }
  0xaa   :  { %572 = vrot.lane.b32.xlu1 %v4991_v40, %s4700_s26  ;;  %570 = vrot.lane.b32.xlu0 %v4996_v41, %s4700_s26 }
  0xac   :  { %v202_v3 = vpop.permute.xlu1 %201  ;;  %v200_v63 = vpop.permute.xlu0 %199 }
  0xad   :  { %269 = vst.msk [vmem:[#allocation2 + $0xe8] sm:$0xff] %vm239_vm1, %v202_v3  ;;  %268 = vst.msk [vmem:[#allocation2 + $0xe0] sm:$0xff] %vm239_vm1, %v200_v63 }
  0xae   :  { %576 = vrot.lane.b32.xlu1 %v5026_v45, %s4700_s26  ;;  %574 = vrot.lane.b32.xlu0 %v5021_v44, %s4700_s26 }
  0xb0   :  { %v206_v12 = vpop.permute.xlu1 %205  ;;  %v204_v16 = vpop.permute.xlu0 %203 }
  0xb1   :  { %271 = vst.msk [vmem:[#allocation2 + $0xf8] sm:$0xff] %vm239_vm1, %v206_v12  ;;  %270 = vst.msk [vmem:[#allocation2 + $0xf0] sm:$0xff] %vm239_vm1, %v204_v16  ;;  %v5479_v12 = vld [vmem:[%s7735_s0 + $0x188] sm:$0xff]  ;;  %v5484_v16 = vld [vmem:[%s7735_s0 + $0x180] sm:$0xff] }
  0xb2   :  { %580 = vrot.lane.b32.xlu1 %v5054_v49, %s4700_s26  ;;  %578 = vrot.lane.b32.xlu0 %v5049_v48, %s4700_s26 }
  0xb4   :  { %v339_v13 = vpop.permute.xlu1 %338  ;;  %v337_v61 = vpop.permute.xlu0 %336 }
  0xb5   :  { %434 = vst.msk [vmem:[#allocation2 + $0x8] sm:$0xff] %vm432_vm2, %v339_v13  ;;  %433 = vst.msk [vmem:[#allocation2] sm:$0xff] %vm432_vm2, %v337_v61 }
  0xb6   :  { %584 = vrot.lane.b32.xlu1 %v5082_v53, %s4700_s26  ;;  %582 = vrot.lane.b32.xlu0 %v5077_v52, %s4700_s26 }
  0xb8   :  { %v343_v3 = vpop.permute.xlu1 %342  ;;  %v341_v63 = vpop.permute.xlu0 %340 }
  0xb9   :  { %436 = vst.msk [vmem:[#allocation2 + $0x18] sm:$0xff] %vm432_vm2, %v343_v3  ;;  %435 = vst.msk [vmem:[#allocation2 + $0x10] sm:$0xff] %vm432_vm2, %v341_v63 }
  0xba   :  { %588 = vrot.lane.b32.xlu1 %v5110_v57, %s4700_s26  ;;  %586 = vrot.lane.b32.xlu0 %v5105_v56, %s4700_s26 }
  0xbc   :  { %v347_v13 = vpop.permute.xlu1 %346  ;;  %v345_v61 = vpop.permute.xlu0 %344 }
  0xbd   :  { %438 = vst.msk [vmem:[#allocation2 + $0x28] sm:$0xff] %vm432_vm2, %v347_v13  ;;  %437 = vst.msk [vmem:[#allocation2 + $0x20] sm:$0xff] %vm432_vm2, %v345_v61 }
  0xbe   :  { %592 = vrot.lane.b32.xlu1 %v5479_v12, %s4700_s26  ;;  %590 = vrot.lane.b32.xlu0 %v5484_v16, %s4700_s26 }
  0xc0   :  { %v351_v3 = vpop.permute.xlu1 %350  ;;  %v349_v63 = vpop.permute.xlu0 %348 }
  0xc1   :  { %440 = vst.msk [vmem:[#allocation2 + $0x38] sm:$0xff] %vm432_vm2, %v351_v3  ;;  %439 = vst.msk [vmem:[#allocation2 + $0x30] sm:$0xff] %vm432_vm2, %v349_v63 }
  0xc2   :  { %725 = vrot.lane.b32.xlu1 %v4740_v2, %s4701_s4  ;;  %723 = vrot.lane.b32.xlu0 %v4729_v0, %s4701_s4 }
  0xc4   :  { %v355_v13 = vpop.permute.xlu1 %354  ;;  %v353_v61 = vpop.permute.xlu0 %352 }
  0xc5   :  { %442 = vst.msk [vmem:[#allocation2 + $0x48] sm:$0xff] %vm432_vm2, %v355_v13  ;;  %441 = vst.msk [vmem:[#allocation2 + $0x40] sm:$0xff] %vm432_vm2, %v353_v61  ;;  %v5585_v61 = vld [vmem:[%s7735_s0 + $0x189] sm:$0xff] }
  0xc6   :  { %729 = vrot.lane.b32.xlu1 %v4751_v4, %s4701_s4  ;;  %727 = vrot.lane.b32.xlu0 %v4756_v5, %s4701_s4 }
  0xc8   :  { %v359_v3 = vpop.permute.xlu1 %358  ;;  %v357_v63 = vpop.permute.xlu0 %356 }
  0xc9   :  { %444 = vst.msk [vmem:[#allocation2 + $0x58] sm:$0xff] %vm432_vm2, %v359_v3  ;;  %443 = vst.msk [vmem:[#allocation2 + $0x50] sm:$0xff] %vm432_vm2, %v357_v63 }
  0xca   :  { %733 = vrot.lane.b32.xlu1 %v4765_v6, %s4701_s4  ;;  %731 = vrot.lane.b32.xlu0 %v4770_v7, %s4701_s4 }
  0xcc   :  { %v363_v0 = vpop.permute.xlu1 %362  ;;  %v361_v2 = vpop.permute.xlu0 %360 }
  0xcd   :  { %446 = vst.msk [vmem:[#allocation2 + $0x68] sm:$0xff] %vm432_vm2, %v363_v0  ;;  %445 = vst.msk [vmem:[#allocation2 + $0x60] sm:$0xff] %vm432_vm2, %v361_v2 }
  0xce   :  { %737 = vrot.lane.b32.xlu1 %v4779_v8, %s4701_s4  ;;  %735 = vrot.lane.b32.xlu0 %v4784_v9, %s4701_s4 }
  0xd0   :  { %v367_v4 = vpop.permute.xlu1 %366  ;;  %v365_v5 = vpop.permute.xlu0 %364 }
  0xd1   :  { %448 = vst.msk [vmem:[#allocation2 + $0x78] sm:$0xff] %vm432_vm2, %v367_v4  ;;  %447 = vst.msk [vmem:[#allocation2 + $0x70] sm:$0xff] %vm432_vm2, %v365_v5  ;;  %v7802_v4 = vld [vmem:[#allocation6_spill] sm:$0xff]  ;;  %v7803_v5 = vld [vmem:[#allocation7_spill] sm:$0xff] }
  0xd2   :  { %741 = vrot.lane.b32.xlu1 %v4793_v10, %s4701_s4  ;;  %739 = vrot.lane.b32.xlu0 %v4798_v11, %s4701_s4 }
  0xd4   :  { %v371_v6 = vpop.permute.xlu1 %370  ;;  %v369_v7 = vpop.permute.xlu0 %368 }
  0xd5   :  { %450 = vst.msk [vmem:[#allocation2 + $0x88] sm:$0xff] %vm432_vm2, %v371_v6  ;;  %449 = vst.msk [vmem:[#allocation2 + $0x80] sm:$0xff] %vm432_vm2, %v369_v7 }
  0xd6   :  { %745 = vrot.lane.b32.xlu1 %v4815_v14, %s4701_s4  ;;  %743 = vrot.lane.b32.xlu0 %v4820_v15, %s4701_s4 }
  0xd8   :  { %v375_v8 = vpop.permute.xlu1 %374  ;;  %v373_v9 = vpop.permute.xlu0 %372 }
  0xd9   :  { %452 = vst.msk [vmem:[#allocation2 + $0x98] sm:$0xff] %vm432_vm2, %v375_v8  ;;  %451 = vst.msk [vmem:[#allocation2 + $0x90] sm:$0xff] %vm432_vm2, %v373_v9  ;;  %v7804_v8 = vld [vmem:[#allocation8_spill] sm:$0xff]  ;;  %v7805_v9 = vld [vmem:[#allocation9_spill] sm:$0xff] }
  0xda   :  { %749 = vrot.lane.b32.xlu1 %v4838_v18, %s4701_s4  ;;  %747 = vrot.lane.b32.xlu0 %v4858_v21, %s4701_s4 }
  0xdc   :  { %v379_v10 = vpop.permute.xlu1 %378  ;;  %v377_v11 = vpop.permute.xlu0 %376 }
  0xdd   :  { %454 = vst.msk [vmem:[#allocation2 + $0xa8] sm:$0xff] %vm432_vm2, %v379_v10  ;;  %453 = vst.msk [vmem:[#allocation2 + $0xa0] sm:$0xff] %vm432_vm2, %v377_v11 }
  0xde   :  { %753 = vrot.lane.b32.xlu1 %v4910_v29, %s4701_s4  ;;  %751 = vrot.lane.b32.xlu0 %v4915_v30, %s4701_s4 }
  0xe0   :  { %v383_v14 = vpop.permute.xlu1 %382  ;;  %v381_v15 = vpop.permute.xlu0 %380 }
  0xe1   :  { %456 = vst.msk [vmem:[#allocation2 + $0xb8] sm:$0xff] %vm432_vm2, %v383_v14  ;;  %455 = vst.msk [vmem:[#allocation2 + $0xb0] sm:$0xff] %vm432_vm2, %v381_v15  ;;  %v7806_v14 = vld [vmem:[#allocation10_spill] sm:$0xff]  ;;  %v7807_v15 = vld [vmem:[#allocation11_spill] sm:$0xff] }
  0xe2   :  { %757 = vrot.lane.b32.xlu1 %v5011_v42, %s4701_s4  ;;  %755 = vrot.lane.b32.xlu0 %v5016_v43, %s4701_s4 }
  0xe4   :  { %v387_v18 = vpop.permute.xlu1 %386  ;;  %v385_v21 = vpop.permute.xlu0 %384 }
  0xe5   :  { %458 = vst.msk [vmem:[#allocation2 + $0xc8] sm:$0xff] %vm432_vm2, %v387_v18  ;;  %457 = vst.msk [vmem:[#allocation2 + $0xc0] sm:$0xff] %vm432_vm2, %v385_v21 }
  0xe6   :  { %761 = vrot.lane.b32.xlu1 %v5039_v46, %s4701_s4  ;;  %759 = vrot.lane.b32.xlu0 %v5044_v47, %s4701_s4 }
  0xe8   :  { %v391_v29 = vpop.permute.xlu1 %390  ;;  %v389_v30 = vpop.permute.xlu0 %388 }
  0xe9   :  { %460 = vst.msk [vmem:[#allocation2 + $0xd8] sm:$0xff] %vm432_vm2, %v391_v29  ;;  %459 = vst.msk [vmem:[#allocation2 + $0xd0] sm:$0xff] %vm432_vm2, %v389_v30  ;;  %v7808_v29 = vld [vmem:[#allocation12_spill] sm:$0xff]  ;;  %v7809_v30 = vld [vmem:[#allocation13_spill] sm:$0xff] }
  0xea   :  { %765 = vrot.lane.b32.xlu1 %v5067_v50, %s4701_s4  ;;  %763 = vrot.lane.b32.xlu0 %v5072_v51, %s4701_s4 }
  0xec   :  { %v395_v42 = vpop.permute.xlu1 %394  ;;  %v393_v43 = vpop.permute.xlu0 %392 }
  0xed   :  { %462 = vst.msk [vmem:[#allocation2 + $0xe8] sm:$0xff] %vm432_vm2, %v395_v42  ;;  %461 = vst.msk [vmem:[#allocation2 + $0xe0] sm:$0xff] %vm432_vm2, %v393_v43 }
  0xee   :  { %769 = vrot.lane.b32.xlu1 %v5095_v54, %s4701_s4  ;;  %767 = vrot.lane.b32.xlu0 %v5100_v55, %s4701_s4  ;;  %v7799_v54 = vld [vmem:[#allocation3_spill] sm:$0xff] }
  0xf0   :  { %v399_v46 = vpop.permute.xlu1 %398  ;;  %v397_v47 = vpop.permute.xlu0 %396 }
  0xf1   :  { %464 = vst.msk [vmem:[#allocation2 + $0xf8] sm:$0xff] %vm432_vm2, %v399_v46  ;;  %463 = vst.msk [vmem:[#allocation2 + $0xf0] sm:$0xff] %vm432_vm2, %v397_v47  ;;  %v7810_v46 = vld [vmem:[#allocation14_spill] sm:$0xff]  ;;  %v7811_v47 = vld [vmem:[#allocation15_spill] sm:$0xff] }
  0xf2   :  { %773 = vrot.lane.b32.xlu1 %v5123_v58, %s4701_s4  ;;  %771 = vrot.lane.b32.xlu0 %v5128_v59, %s4701_s4  ;;  %v7800_v58 = vld [vmem:[#allocation4_spill] sm:$0xff]  ;;  %v7801_v59 = vld [vmem:[#allocation5_spill] sm:$0xff] }
  0xf4   :  { %v533_v50 = vpop.permute.xlu1 %532  ;;  %v531_v51 = vpop.permute.xlu0 %530 }
  0xf5   :  { %628 = vst.msk [vmem:[#allocation2 + $0x8] sm:$0xff] %vm626_vm3, %v533_v50  ;;  %627 = vst.msk [vmem:[#allocation2] sm:$0xff] %vm626_vm3, %v531_v51 }
  0xf6   :  { %777 = vrot.lane.b32.xlu1 %v5137_v60, %s4701_s4  ;;  %775 = vrot.lane.b32.xlu0 %v7799_v54, %s4701_s4  ;;  %v5590_v60 = vld [vmem:[%s7735_s0 + $0x181] sm:$0xff] }
  0xf7   :  { %v7812_v54 = vld [vmem:[#allocation16_spill] sm:$0xff] }
  0xf8   :  { %v537_v55 = vpop.permute.xlu1 %536  ;;  %v535_v13 = vpop.permute.xlu0 %534 }
  0xf9   :  { %630 = vst.msk [vmem:[#allocation2 + $0x18] sm:$0xff] %vm626_vm3, %v537_v55  ;;  %629 = vst.msk [vmem:[#allocation2 + $0x10] sm:$0xff] %vm626_vm3, %v535_v13  ;;  %v7813_v55 = vld [vmem:[#allocation17_spill] sm:$0xff] }
  0xfa   :  { %781 = vrot.lane.b32.xlu1 %v7800_v58, %s4701_s4  ;;  %779 = vrot.lane.b32.xlu0 %v7801_v59, %s4701_s4  ;;  %v7814_v59 = vld [vmem:[#allocation18_spill] sm:$0xff] }
  0xfc   :  { %v541_v3 = vpop.permute.xlu1 %540  ;;  %v539_v63 = vpop.permute.xlu0 %538 }
  0xfd   :  { %632 = vst.msk [vmem:[#allocation2 + $0x28] sm:$0xff] %vm626_vm3, %v541_v3  ;;  %631 = vst.msk [vmem:[#allocation2 + $0x20] sm:$0xff] %vm626_vm3, %v539_v63  ;;  %v7815_v3 = vld [vmem:[#allocation19_spill] sm:$0xff] }
  0xfe   :  { %785 = vrot.lane.b32.xlu1 %v5585_v61, %s4701_s4  ;;  %783 = vrot.lane.b32.xlu0 %v5590_v60, %s4701_s4 }
 0x100   :  { %v545_v0 = vpop.permute.xlu1 %544  ;;  %v543_v2 = vpop.permute.xlu0 %542 }
 0x101   :  { %634 = vst.msk [vmem:[#allocation2 + $0x38] sm:$0xff] %vm626_vm3, %v545_v0  ;;  %633 = vst.msk [vmem:[#allocation2 + $0x30] sm:$0xff] %vm626_vm3, %v543_v2  ;;  %v7816_v2 = vld [vmem:[#allocation20_spill] sm:$0xff] }
 0x102   :  { %918 = vrot.lane.b32.xlu1 %v7802_v4, %s4702_s9  ;;  %916 = vrot.lane.b32.xlu0 %v7803_v5, %s4702_s9  ;;  %v7817_v4 = vld [vmem:[#allocation21_spill] sm:$0xff] }
 0x104   :  { %v549_v6 = vpop.permute.xlu1 %548  ;;  %v547_v7 = vpop.permute.xlu0 %546 }
 0x105   :  { %636 = vst.msk [vmem:[#allocation2 + $0x48] sm:$0xff] %vm626_vm3, %v549_v6  ;;  %635 = vst.msk [vmem:[#allocation2 + $0x40] sm:$0xff] %vm626_vm3, %v547_v7  ;;  %v7818_v7 = vld [vmem:[#allocation22_spill] sm:$0xff] }
 0x106   :  { %922 = vrot.lane.b32.xlu1 %v7804_v8, %s4702_s9  ;;  %920 = vrot.lane.b32.xlu0 %v7805_v9, %s4702_s9  ;;  %v7819_v8 = vld [vmem:[#allocation23_spill] sm:$0xff] }
 0x108   :  { %v553_v10 = vpop.permute.xlu1 %552  ;;  %v551_v11 = vpop.permute.xlu0 %550 }
 0x109   :  { %638 = vst.msk [vmem:[#allocation2 + $0x58] sm:$0xff] %vm626_vm3, %v553_v10  ;;  %637 = vst.msk [vmem:[#allocation2 + $0x50] sm:$0xff] %vm626_vm3, %v551_v11  ;;  %v7820_v11 = vld [vmem:[#allocation24_spill] sm:$0xff] }
 0x10a   :  { %926 = vrot.lane.b32.xlu1 %v7806_v14, %s4702_s9  ;;  %924 = vrot.lane.b32.xlu0 %v7807_v15, %s4702_s9  ;;  %v7821_v14 = vld [vmem:[#allocation25_spill] sm:$0xff] }
 0x10c   :  { %v557_v18 = vpop.permute.xlu1 %556  ;;  %v555_v21 = vpop.permute.xlu0 %554 }
 0x10d   :  { %640 = vst.msk [vmem:[#allocation2 + $0x68] sm:$0xff] %vm626_vm3, %v557_v18  ;;  %639 = vst.msk [vmem:[#allocation2 + $0x60] sm:$0xff] %vm626_vm3, %v555_v21  ;;  %v7822_v21 = vld [vmem:[#allocation26_spill] sm:$0xff] }
 0x10e   :  { %930 = vrot.lane.b32.xlu1 %v7808_v29, %s4702_s9  ;;  %928 = vrot.lane.b32.xlu0 %v7809_v30, %s4702_s9  ;;  %v7823_v29 = vld [vmem:[#allocation27_spill] sm:$0xff] }
 0x110   :  { %v561_v42 = vpop.permute.xlu1 %560  ;;  %v559_v43 = vpop.permute.xlu0 %558 }
 0x111   :  { %642 = vst.msk [vmem:[#allocation2 + $0x78] sm:$0xff] %vm626_vm3, %v561_v42  ;;  %641 = vst.msk [vmem:[#allocation2 + $0x70] sm:$0xff] %vm626_vm3, %v559_v43  ;;  %v7824_v43 = vld [vmem:[#allocation28_spill] sm:$0xff] }
 0x112   :  { %934 = vrot.lane.b32.xlu1 %v7810_v46, %s4702_s9  ;;  %932 = vrot.lane.b32.xlu0 %v7811_v47, %s4702_s9  ;;  %v7825_v46 = vld [vmem:[#allocation29_spill] sm:$0xff] }
 0x114   :  { %v565_v50 = vpop.permute.xlu1 %564  ;;  %v563_v51 = vpop.permute.xlu0 %562 }
 0x115   :  { %644 = vst.msk [vmem:[#allocation2 + $0x88] sm:$0xff] %vm626_vm3, %v565_v50  ;;  %643 = vst.msk [vmem:[#allocation2 + $0x80] sm:$0xff] %vm626_vm3, %v563_v51  ;;  %v7826_v51 = vld [vmem:[#allocation30_spill] sm:$0xff] }
 0x116   :  { %938 = vrot.lane.b32.xlu1 %v7812_v54, %s4702_s9  ;;  %936 = vrot.lane.b32.xlu0 %v7813_v55, %s4702_s9  ;;  %v7827_v54 = vld [vmem:[#allocation31_spill] sm:$0xff] }
 0x118   :  { %v569_v13 = vpop.permute.xlu1 %568  ;;  %v567_v58 = vpop.permute.xlu0 %566 }
 0x119   :  { %646 = vst.msk [vmem:[#allocation2 + $0x98] sm:$0xff] %vm626_vm3, %v569_v13  ;;  %645 = vst.msk [vmem:[#allocation2 + $0x90] sm:$0xff] %vm626_vm3, %v567_v58  ;;  %v7828_v58 = vld [vmem:[#allocation32_spill] sm:$0xff] }
 0x11a   :  { %942 = vrot.lane.b32.xlu1 %v7814_v59, %s4702_s9  ;;  %940 = vrot.lane.b32.xlu0 %v7815_v3, %s4702_s9 }
 0x11c   :  { %v573_v63 = vpop.permute.xlu1 %572  ;;  %v571_v0 = vpop.permute.xlu0 %570 }
 0x11d   :  { %648 = vst.msk [vmem:[#allocation2 + $0xa8] sm:$0xff] %vm626_vm3, %v573_v63  ;;  %647 = vst.msk [vmem:[#allocation2 + $0xa0] sm:$0xff] %vm626_vm3, %v571_v0  ;;  %v5691_v63 = vld [vmem:[%s7735_s0 + $0x18a] sm:$0xff] }
 0x11e   :  { %946 = vrot.lane.b32.xlu1 %v7816_v2, %s4702_s9  ;;  %944 = vrot.lane.b32.xlu0 %v7817_v4, %s4702_s9 }
 0x120   :  { %v577_v5 = vpop.permute.xlu1 %576  ;;  %v575_v6 = vpop.permute.xlu0 %574 }
 0x121   :  { %650 = vst.msk [vmem:[#allocation2 + $0xb8] sm:$0xff] %vm626_vm3, %v577_v5  ;;  %649 = vst.msk [vmem:[#allocation2 + $0xb0] sm:$0xff] %vm626_vm3, %v575_v6 }
 0x122   :  { %950 = vrot.lane.b32.xlu1 %v7818_v7, %s4702_s9  ;;  %948 = vrot.lane.b32.xlu0 %v7819_v8, %s4702_s9 }
 0x124   :  { %v581_v9 = vpop.permute.xlu1 %580  ;;  %v579_v10 = vpop.permute.xlu0 %578 }
 0x125   :  { %652 = vst.msk [vmem:[#allocation2 + $0xc8] sm:$0xff] %vm626_vm3, %v581_v9  ;;  %651 = vst.msk [vmem:[#allocation2 + $0xc0] sm:$0xff] %vm626_vm3, %v579_v10  ;;  %v4085_v10 = vld [vmem:[%s7735_s0 + $0x51] sm:$0xff] }
 0x126   :  { %954 = vrot.lane.b32.xlu1 %v7820_v11, %s4702_s9  ;;  %952 = vrot.lane.b32.xlu0 %v7821_v14, %s4702_s9  ;;  %v4084_v11 = vld [vmem:[%s7735_s0 + $0x49] sm:$0xff] }
 0x128   :  { %v585_v15 = vpop.permute.xlu1 %584  ;;  %v583_v18 = vpop.permute.xlu0 %582 }
 0x129   :  { %654 = vst.msk [vmem:[#allocation2 + $0xd8] sm:$0xff] %vm626_vm3, %v585_v15  ;;  %653 = vst.msk [vmem:[#allocation2 + $0xd0] sm:$0xff] %vm626_vm3, %v583_v18  ;;  %v4087_v18 = vld [vmem:[%s7735_s0 + $0x69] sm:$0xff] }
 0x12a   :  { %958 = vrot.lane.b32.xlu1 %v7822_v21, %s4702_s9  ;;  %956 = vrot.lane.b32.xlu0 %v7823_v29, %s4702_s9  ;;  %v4086_v21 = vld [vmem:[%s7735_s0 + $0x61] sm:$0xff] }
 0x12c   :  { %v589_v30 = vpop.permute.xlu1 %588  ;;  %v587_v42 = vpop.permute.xlu0 %586 }
 0x12d   :  { %656 = vst.msk [vmem:[#allocation2 + $0xe8] sm:$0xff] %vm626_vm3, %v589_v30  ;;  %655 = vst.msk [vmem:[#allocation2 + $0xe0] sm:$0xff] %vm626_vm3, %v587_v42  ;;  %v4089_v42 = vld [vmem:[%s7735_s0 + $0x81] sm:$0xff] }
 0x12e   :  { %962 = vrot.lane.b32.xlu1 %v7824_v43, %s4702_s9  ;;  %960 = vrot.lane.b32.xlu0 %v7825_v46, %s4702_s9  ;;  %v4088_v43 = vld [vmem:[%s7735_s0 + $0x79] sm:$0xff] }
 0x130   :  { %v593_v47 = vpop.permute.xlu1 %592  ;;  %v591_v50 = vpop.permute.xlu0 %590 }
 0x131   :  { %658 = vst.msk [vmem:[#allocation2 + $0xf8] sm:$0xff] %vm626_vm3, %v593_v47  ;;  %657 = vst.msk [vmem:[#allocation2 + $0xf0] sm:$0xff] %vm626_vm3, %v591_v50  ;;  %v4091_v50 = vld [vmem:[%s7735_s0 + $0x99] sm:$0xff] }
 0x132   :  { %966 = vrot.lane.b32.xlu1 %v7826_v51, %s4702_s9  ;;  %964 = vrot.lane.b32.xlu0 %v7827_v54, %s4702_s9  ;;  %v4090_v51 = vld [vmem:[%s7735_s0 + $0x91] sm:$0xff] }
 0x134   :  { %v726_v55 = vpop.permute.xlu1 %725  ;;  %v724_v13 = vpop.permute.xlu0 %723 }
 0x135   :  { %821 = vst.msk [vmem:[#allocation2 + $0x8] sm:$0xff] %vm819_vm4, %v726_v55  ;;  %820 = vst.msk [vmem:[#allocation2] sm:$0xff] %vm819_vm4, %v724_v13  ;;  %v4093_v13 = vld [vmem:[%s7735_s0 + $0xb1] sm:$0xff] }
 0x136   :  { %970 = vrot.lane.b32.xlu1 %v5357_v1, %s4702_s9  ;;  %968 = vrot.lane.b32.xlu0 %v7828_v58, %s4702_s9  ;;  %v5696_v1 = vld [vmem:[%s7735_s0 + $0x182] sm:$0xff] }
 0x137   :  { %v4092_v58 = vld [vmem:[%s7735_s0 + $0xa9] sm:$0xff] }
 0x138   :  { %v730_v59 = vpop.permute.xlu1 %729  ;;  %v728_v3 = vpop.permute.xlu0 %727 }
 0x139   :  { %823 = vst.msk [vmem:[#allocation2 + $0x18] sm:$0xff] %vm819_vm4, %v730_v59  ;;  %822 = vst.msk [vmem:[#allocation2 + $0x10] sm:$0xff] %vm819_vm4, %v728_v3 }
 0x13a   :  { %974 = vrot.lane.b32.xlu1 %v5373_v62, %s4702_s9  ;;  %972 = vrot.lane.b32.xlu0 %v5378_v17, %s4702_s9 }
 0x13c   :  { %v734_v0 = vpop.permute.xlu1 %733  ;;  %v732_v2 = vpop.permute.xlu0 %731 }
 0x13d   :  { %825 = vst.msk [vmem:[#allocation2 + $0x28] sm:$0xff] %vm819_vm4, %v734_v0  ;;  %824 = vst.msk [vmem:[#allocation2 + $0x20] sm:$0xff] %vm819_vm4, %v732_v2  ;;  %v4095_v0 = vld [vmem:[%s7735_s0 + $0xc9] sm:$0xff]  ;;  %v4094_v2 = vld [vmem:[%s7735_s0 + $0xc1] sm:$0xff] }
 0x13e   :  { %978 = vrot.lane.b32.xlu1 %v5691_v63, %s4702_s9  ;;  %976 = vrot.lane.b32.xlu0 %v5696_v1, %s4702_s9 }
 0x140   :  { %v738_v17 = vpop.permute.xlu1 %737  ;;  %v736_v62 = vpop.permute.xlu0 %735 }
 0x141   :  { %827 = vst.msk [vmem:[#allocation2 + $0x38] sm:$0xff] %vm819_vm4, %v738_v17  ;;  %826 = vst.msk [vmem:[#allocation2 + $0x30] sm:$0xff] %vm819_vm4, %v736_v62 }
 0x142   :  { %1112 = vrot.lane.b32.xlu1 %v4844_v19, %s4703_s15  ;;  %1110 = vrot.lane.b32.xlu0 %v4849_v20, %s4703_s15 }
 0x144   :  { %v742_v4 = vpop.permute.xlu1 %741  ;;  %v740_v5 = vpop.permute.xlu0 %739 }
 0x145   :  { %829 = vst.msk [vmem:[#allocation2 + $0x48] sm:$0xff] %vm819_vm4, %v742_v4  ;;  %828 = vst.msk [vmem:[#allocation2 + $0x40] sm:$0xff] %vm819_vm4, %v740_v5  ;;  %v4097_v4 = vld [vmem:[%s7735_s0 + $0xe1] sm:$0xff]  ;;  %v4096_v5 = vld [vmem:[%s7735_s0 + $0xd9] sm:$0xff] }
 0x146   :  { %1116 = vrot.lane.b32.xlu1 %v4867_v22, %s4703_s15  ;;  %1114 = vrot.lane.b32.xlu0 %v4874_v23, %s4703_s15 }
 0x148   :  { %v746_v6 = vpop.permute.xlu1 %745  ;;  %v744_v7 = vpop.permute.xlu0 %743 }
 0x149   :  { %831 = vst.msk [vmem:[#allocation2 + $0x58] sm:$0xff] %vm819_vm4, %v746_v6  ;;  %830 = vst.msk [vmem:[#allocation2 + $0x50] sm:$0xff] %vm819_vm4, %v744_v7 }
 0x14a   :  { %1120 = vrot.lane.b32.xlu1 %v4879_v24, %s4703_s15  ;;  %1118 = vrot.lane.b32.xlu0 %v4884_v25, %s4703_s15 }
 0x14c   :  { %v750_v19 = vpop.permute.xlu1 %749  ;;  %v748_v20 = vpop.permute.xlu0 %747 }
 0x14d   :  { %833 = vst.msk [vmem:[#allocation2 + $0x68] sm:$0xff] %vm819_vm4, %v750_v19  ;;  %832 = vst.msk [vmem:[#allocation2 + $0x60] sm:$0xff] %vm819_vm4, %v748_v20  ;;  %v4099_v19 = vld [vmem:[%s7735_s0 + $0xf9] sm:$0xff]  ;;  %v4098_v20 = vld [vmem:[%s7735_s0 + $0xf1] sm:$0xff] }
 0x14e   :  { %1124 = vrot.lane.b32.xlu1 %v4895_v26, %s4703_s15  ;;  %1122 = vrot.lane.b32.xlu0 %v4900_v27, %s4703_s15 }
 0x150   :  { %v754_v22 = vpop.permute.xlu1 %753  ;;  %v752_v23 = vpop.permute.xlu0 %751 }
 0x151   :  { %835 = vst.msk [vmem:[#allocation2 + $0x78] sm:$0xff] %vm819_vm4, %v754_v22  ;;  %834 = vst.msk [vmem:[#allocation2 + $0x70] sm:$0xff] %vm819_vm4, %v752_v23 }
 0x152   :  { %1128 = vrot.lane.b32.xlu1 %v4905_v28, %s4703_s15  ;;  %1126 = vrot.lane.b32.xlu0 %v4926_v31, %s4703_s15 }
 0x154   :  { %v758_v24 = vpop.permute.xlu1 %757  ;;  %v756_v25 = vpop.permute.xlu0 %755 }
 0x155   :  { %837 = vst.msk [vmem:[#allocation2 + $0x88] sm:$0xff] %vm819_vm4, %v758_v24  ;;  %836 = vst.msk [vmem:[#allocation2 + $0x80] sm:$0xff] %vm819_vm4, %v756_v25  ;;  %v4101_v24 = vld [vmem:[%s7735_s0 + $0x111] sm:$0xff]  ;;  %v4100_v25 = vld [vmem:[%s7735_s0 + $0x109] sm:$0xff] }
 0x156   :  { %1132 = vrot.lane.b32.xlu1 %v4931_v32, %s4703_s15  ;;  %1130 = vrot.lane.b32.xlu0 %v4936_v33, %s4703_s15 }
 0x158   :  { %v762_v26 = vpop.permute.xlu1 %761  ;;  %v760_v27 = vpop.permute.xlu0 %759 }
 0x159   :  { %839 = vst.msk [vmem:[#allocation2 + $0x98] sm:$0xff] %vm819_vm4, %v762_v26  ;;  %838 = vst.msk [vmem:[#allocation2 + $0x90] sm:$0xff] %vm819_vm4, %v760_v27 }
 0x15a   :  { %1136 = vrot.lane.b32.xlu1 %v4951_v34, %s4703_s15  ;;  %1134 = vrot.lane.b32.xlu0 %v4956_v35, %s4703_s15 }
 0x15c   :  { %v766_v28 = vpop.permute.xlu1 %765  ;;  %v764_v31 = vpop.permute.xlu0 %763 }
 0x15d   :  { %841 = vst.msk [vmem:[#allocation2 + $0xa8] sm:$0xff] %vm819_vm4, %v766_v28  ;;  %840 = vst.msk [vmem:[#allocation2 + $0xa0] sm:$0xff] %vm819_vm4, %v764_v31  ;;  %v4103_v28 = vld [vmem:[%s7735_s0 + $0x129] sm:$0xff]  ;;  %v4102_v31 = vld [vmem:[%s7735_s0 + $0x121] sm:$0xff] }
 0x15e   :  { %1140 = vrot.lane.b32.xlu1 %v4965_v36, %s4703_s15  ;;  %1138 = vrot.lane.b32.xlu0 %v4970_v37, %s4703_s15 }
 0x160   :  { %v770_v32 = vpop.permute.xlu1 %769  ;;  %v768_v33 = vpop.permute.xlu0 %767 }
 0x161   :  { %843 = vst.msk [vmem:[#allocation2 + $0xb8] sm:$0xff] %vm819_vm4, %v770_v32  ;;  %842 = vst.msk [vmem:[#allocation2 + $0xb0] sm:$0xff] %vm819_vm4, %v768_v33 }
 0x162   :  { %1144 = vrot.lane.b32.xlu1 %v4975_v38, %s4703_s15  ;;  %1142 = vrot.lane.b32.xlu0 %v4986_v39, %s4703_s15 }
 0x164   :  { %v774_v34 = vpop.permute.xlu1 %773  ;;  %v772_v35 = vpop.permute.xlu0 %771 }
 0x165   :  { %845 = vst.msk [vmem:[#allocation2 + $0xc8] sm:$0xff] %vm819_vm4, %v774_v34  ;;  %844 = vst.msk [vmem:[#allocation2 + $0xc0] sm:$0xff] %vm819_vm4, %v772_v35  ;;  %v4105_v34 = vld [vmem:[%s7735_s0 + $0x141] sm:$0xff]  ;;  %v4104_v35 = vld [vmem:[%s7735_s0 + $0x139] sm:$0xff] }
 0x166   :  { %1148 = vrot.lane.b32.xlu1 %v4991_v40, %s4703_s15  ;;  %1146 = vrot.lane.b32.xlu0 %v4996_v41, %s4703_s15 }
 0x168   :  { %v778_v36 = vpop.permute.xlu1 %777  ;;  %v776_v37 = vpop.permute.xlu0 %775 }
 0x169   :  { %847 = vst.msk [vmem:[#allocation2 + $0xd8] sm:$0xff] %vm819_vm4, %v778_v36  ;;  %846 = vst.msk [vmem:[#allocation2 + $0xd0] sm:$0xff] %vm819_vm4, %v776_v37 }
 0x16a   :  { %1152 = vrot.lane.b32.xlu1 %v5026_v45, %s4703_s15  ;;  %1150 = vrot.lane.b32.xlu0 %v5021_v44, %s4703_s15 }
 0x16c   :  { %v782_v38 = vpop.permute.xlu1 %781  ;;  %v780_v39 = vpop.permute.xlu0 %779 }
 0x16d   :  { %849 = vst.msk [vmem:[#allocation2 + $0xe8] sm:$0xff] %vm819_vm4, %v782_v38  ;;  %848 = vst.msk [vmem:[#allocation2 + $0xe0] sm:$0xff] %vm819_vm4, %v780_v39  ;;  %v4107_v38 = vld [vmem:[%s7735_s0 + $0x159] sm:$0xff]  ;;  %v4106_v39 = vld [vmem:[%s7735_s0 + $0x151] sm:$0xff] }
 0x16e   :  { %1156 = vrot.lane.b32.xlu1 %v5054_v49, %s4703_s15  ;;  %1154 = vrot.lane.b32.xlu0 %v5049_v48, %s4703_s15 }
 0x170   :  { %v786_v40 = vpop.permute.xlu1 %785  ;;  %v784_v41 = vpop.permute.xlu0 %783 }
 0x171   :  { %851 = vst.msk [vmem:[#allocation2 + $0xf8] sm:$0xff] %vm819_vm4, %v786_v40  ;;  %850 = vst.msk [vmem:[#allocation2 + $0xf0] sm:$0xff] %vm819_vm4, %v784_v41 }
 0x172   :  { %1160 = vrot.lane.b32.xlu1 %v5082_v53, %s4703_s15  ;;  %1158 = vrot.lane.b32.xlu0 %v5077_v52, %s4703_s15  ;;  %v4081_v52 = vld [vmem:[%s7735_s0 + $0x1a0] sm:$0xff]  ;;  %v4080_v53 = vld [vmem:[%s7735_s0 + $0x198] sm:$0xff] }
 0x174   :  { %v919_v44 = vpop.permute.xlu1 %918  ;;  %v917_v45 = vpop.permute.xlu0 %916 }
 0x175   :  { %1014 = vst.msk [vmem:[#allocation2 + $0x8] sm:$0xff] %vm1012_vm5, %v919_v44  ;;  %1013 = vst.msk [vmem:[#allocation2] sm:$0xff] %vm1012_vm5, %v917_v45  ;;  %v3292_v44 = vld [vmem:[%s7736_s1] sm:$0xff]  ;;  %v3293_v45 = vld [vmem:[%s7736_s1 + $0x8] sm:$0xff] }
 0x176   :  { %1164 = vrot.lane.b32.xlu1 %v5110_v57, %s4703_s15  ;;  %1162 = vrot.lane.b32.xlu0 %v5105_v56, %s4703_s15 }
 0x178   :  { %v923_v48 = vpop.permute.xlu1 %922  ;;  %v921_v49 = vpop.permute.xlu0 %920 }
 0x179   :  { %1016 = vst.msk [vmem:[#allocation2 + $0x18] sm:$0xff] %vm1012_vm5, %v923_v48  ;;  %1015 = vst.msk [vmem:[#allocation2 + $0x10] sm:$0xff] %vm1012_vm5, %v921_v49  ;;  %v4109_v48 = vld [vmem:[%s7735_s0 + $0x171] sm:$0xff]  ;;  %v4108_v49 = vld [vmem:[%s7735_s0 + $0x169] sm:$0xff] }
 0x17a   :  { %1168 = vrot.lane.b32.xlu1 %v5479_v12, %s4703_s15  ;;  %1166 = vrot.lane.b32.xlu0 %v5484_v16, %s4703_s15  ;;  %v4083_v12 = vld [vmem:[%s7735_s0 + $0x39] sm:$0xff]  ;;  %v4082_v16 = vld [vmem:[%s7735_s0 + $0x31] sm:$0xff] }
 0x17c   :  { %v927_v56 = vpop.permute.xlu1 %926  ;;  %v925_v57 = vpop.permute.xlu0 %924 }
 0x17d   :  { %1018 = vst.msk [vmem:[#allocation2 + $0x28] sm:$0xff] %vm1012_vm5, %v927_v56  ;;  %1017 = vst.msk [vmem:[#allocation2 + $0x20] sm:$0xff] %vm1012_vm5, %v925_v57  ;;  %v3294_v57 = vld [vmem:[%s7736_s1 + $0x10] sm:$0xff] }
 0x17e   :  { %1172 = vrot.lane.b32.xlu1 %v4081_v52, %s4703_s15  ;;  %1170 = vrot.lane.b32.xlu0 %v4080_v53, %s4703_s15  ;;  %v4675_v52 = vpack.c.bf16 %v3293_v45, %v3292_v44  ;;  %v4136_v44 = vld [vmem:[%s7735_s0 + $0x13a] sm:$0xff] }
 0x180   :  { %v931_v8 = vpop.permute.xlu1 %930  ;;  %v929_v9 = vpop.permute.xlu0 %928  ;;  %4676 = vmatprep.subr.bf16.mxu0 %v4675_v52  ;;  %4683 = vmatprep.subr.bf16.mxu1 %v4675_v52 }
 0x181   :  { %1020 = vst.msk [vmem:[#allocation2 + $0x38] sm:$0xff] %vm1012_vm5, %v931_v8  ;;  %1019 = vst.msk [vmem:[#allocation2 + $0x30] sm:$0xff] %vm1012_vm5, %v929_v9  ;;  %4678 = vmatpush3.bf16.msra.mxu0 %v4675_v52  ;;  %4686 = vmatpush3.bf16.msra.mxu1 %v4675_v52  ;;  %v4138_v52 = vld [vmem:[%s7735_s0 + $0x152] sm:$0xff] }
 0x182   :  { %1305 = vrot.lane.b32.xlu1 %v4083_v12, %s4704_s25  ;;  %1303 = vrot.lane.b32.xlu0 %v4082_v16, %s4704_s25  ;;  %v3295_v12 = vld [vmem:[%s7736_s1 + $0x18] sm:$0xff] }
 0x183   :  { %v4679_v16 = vpack.c.bf16 %v3295_v12, %v3294_v57  ;;  %v4141_v57 = vld [vmem:[%s7735_s0 + $0x172] sm:$0xff]  ;;  %v4140_v12 = vld [vmem:[%s7735_s0 + $0x16a] sm:$0xff] }
 0x184   :  { %v935_v14 = vpop.permute.xlu1 %934  ;;  %v933_v15 = vpop.permute.xlu0 %932 }
 0x185   :  { %1022 = vst.msk [vmem:[#allocation2 + $0x48] sm:$0xff] %vm1012_vm5, %v935_v14  ;;  %1021 = vst.msk [vmem:[#allocation2 + $0x40] sm:$0xff] %vm1012_vm5, %v933_v15  ;;  %4680 = vmatprep.subr.bf16.mxu0 %v4679_v16  ;;  %4684 = vmatprep.subr.bf16.mxu1 %v4679_v16  ;;  %v4112_v14 = vld [vmem:[%s7735_s0 + $0x199] sm:$0xff] }
 0x186   :  { %1309 = vrot.lane.b32.xlu1 %v4085_v10, %s4704_s25  ;;  %1307 = vrot.lane.b32.xlu0 %v4084_v11, %s4704_s25  ;;  %v3296_v10 = vld [vmem:[%s7736_s1 + $0x20] sm:$0xf] }
 0x187   :  { %v4113_v11 = vld [vmem:[%s7735_s0 + $0x1a1] sm:$0xff]  ;;  %4682 = vmatpush3.bf16.msra.mxu0 %v4679_v16  ;;  %4687 = vmatpush3.bf16.msra.mxu1 %v4679_v16  ;;  %v4147_v16 = vld [vmem:[%s7735_s0 + $0x1b8] sm:$0xff] }
 0x188   :  { %v939_v29 = vpop.permute.xlu1 %938  ;;  %v937_v30 = vpop.permute.xlu0 %936  ;;  %4577 = vmatprep.subr.msk.mxu0 %vm3497_vm7, %v3296_v10  ;;  %4685 = vmatprep.subr.msk.mxu1 %vm3497_vm7, %v3296_v10  ;;  %1659 = vst.msk [vmem:[#allocation2 + $0x108] sm:$0xff] %vm46_vm0, %v4147_v16  ;;  %v4194_v16 = vld [vmem:[%s7735_s0 + $0x271] sm:$0xff] }
 0x189   :  { %1024 = vst.msk [vmem:[#allocation2 + $0x58] sm:$0xff] %vm1012_vm5, %v939_v29  ;;  %1023 = vst.msk [vmem:[#allocation2 + $0x50] sm:$0xff] %vm1012_vm5, %v937_v30  ;;  %v4117_v30 = vld [vmem:[%s7735_s0 + $0x52] sm:$0xff] }
 0x18a   :  { %1313 = vrot.lane.b32.xlu1 %v4087_v18, %s4704_s25  ;;  %1311 = vrot.lane.b32.xlu0 %v4086_v21, %s4704_s25  ;;  %v4114_v18 = vld [vmem:[%s7735_s0 + $0x32] sm:$0xff] }
 0x18b   :  { %4578 = vmatpush3.msk.msra.mxu0 %vm3497_vm7, %v3296_v10  ;;  %4688 = vmatpush3.msk.msra.mxu1 %vm3497_vm7, %v3296_v10  ;;  %v4146_v10 = vld [vmem:[%s7735_s0 + $0x1b0] sm:$0xff] }
 0x18c   :  { %v943_v46 = vpop.permute.xlu1 %942  ;;  %v941_v47 = vpop.permute.xlu0 %940  ;;  %1658 = vst.msk [vmem:[#allocation2 + $0x100] sm:$0xff] %vm46_vm0, %v4146_v10  ;;  %v4168_v10 = vld [vmem:[%s7735_s0 + $0x2b8] sm:$0xff] }
 0x18d   :  { %1026 = vst.msk [vmem:[#allocation2 + $0x68] sm:$0xff] %vm1012_vm5, %v943_v46  ;;  %1025 = vst.msk [vmem:[#allocation2 + $0x60] sm:$0xff] %vm1012_vm5, %v941_v47  ;;  %v4119_v47 = vld [vmem:[%s7735_s0 + $0x6a] sm:$0xff] }
 0x18e   :  { %1317 = vrot.lane.b32.xlu1 %v4089_v42, %s4704_s25  ;;  %1315 = vrot.lane.b32.xlu0 %v4088_v43, %s4704_s25  ;;  %v4116_v42 = vld [vmem:[%s7735_s0 + $0x4a] sm:$0xff]  ;;  %1680 = vst.msk [vmem:[#allocation2 + $0x1b0] sm:$0xff] %vm46_vm0, %v4168_v10  ;;  %v4211_v10 = vld [vmem:[%s7735_s0 + $0x1ba] sm:$0xff] }
 0x190   :  { %v947_v54 = vpop.permute.xlu1 %946  ;;  %v945_v55 = vpop.permute.xlu0 %944 }
 0x191   :  { %1028 = vst.msk [vmem:[#allocation2 + $0x78] sm:$0xff] %vm1012_vm5, %v947_v54  ;;  %1027 = vst.msk [vmem:[#allocation2 + $0x70] sm:$0xff] %vm1012_vm5, %v945_v55  ;;  %v4121_v55 = vld [vmem:[%s7735_s0 + $0x82] sm:$0xff] }
 0x192   :  { %1321 = vrot.lane.b32.xlu1 %v4091_v50, %s4704_s25  ;;  %1319 = vrot.lane.b32.xlu0 %v4090_v51, %s4704_s25  ;;  %v4118_v50 = vld [vmem:[%s7735_s0 + $0x62] sm:$0xff] }
 0x194   :  { %v951_v59 = vpop.permute.xlu1 %950  ;;  %v949_v3 = vpop.permute.xlu0 %948 }
 0x195   :  { %1030 = vst.msk [vmem:[#allocation2 + $0x88] sm:$0xff] %vm1012_vm5, %v951_v59  ;;  %1029 = vst.msk [vmem:[#allocation2 + $0x80] sm:$0xff] %vm1012_vm5, %v949_v3  ;;  %v4123_v3 = vld [vmem:[%s7735_s0 + $0x9a] sm:$0xff] }
 0x196   :  { %1325 = vrot.lane.b32.xlu1 %v4093_v13, %s4704_s25  ;;  %1323 = vrot.lane.b32.xlu0 %v4092_v58, %s4704_s25  ;;  %v4120_v13 = vld [vmem:[%s7735_s0 + $0x7a] sm:$0xff] }
 0x198   :  { %v955_v17 = vpop.permute.xlu1 %954  ;;  %v953_v62 = vpop.permute.xlu0 %952 }
 0x199   :  { %1032 = vst.msk [vmem:[#allocation2 + $0x98] sm:$0xff] %vm1012_vm5, %v955_v17  ;;  %1031 = vst.msk [vmem:[#allocation2 + $0x90] sm:$0xff] %vm1012_vm5, %v953_v62  ;;  %v4125_v62 = vld [vmem:[%s7735_s0 + $0xb2] sm:$0xff] }
 0x19a   :  { %1329 = vrot.lane.b32.xlu1 %v4095_v0, %s4704_s25  ;;  %1327 = vrot.lane.b32.xlu0 %v4094_v2, %s4704_s25  ;;  %v4122_v0 = vld [vmem:[%s7735_s0 + $0x92] sm:$0xff] }
 0x19c   :  { %v959_v6 = vpop.permute.xlu1 %958  ;;  %v957_v7 = vpop.permute.xlu0 %956 }
 0x19d   :  { %1034 = vst.msk [vmem:[#allocation2 + $0xa8] sm:$0xff] %vm1012_vm5, %v959_v6  ;;  %1033 = vst.msk [vmem:[#allocation2 + $0xa0] sm:$0xff] %vm1012_vm5, %v957_v7  ;;  %v4127_v7 = vld [vmem:[%s7735_s0 + $0xca] sm:$0xff] }
 0x19e   :  { %1333 = vrot.lane.b32.xlu1 %v4097_v4, %s4704_s25  ;;  %1331 = vrot.lane.b32.xlu0 %v4096_v5, %s4704_s25  ;;  %v4124_v4 = vld [vmem:[%s7735_s0 + $0xaa] sm:$0xff] }
 0x1a0   :  { %v963_v22 = vpop.permute.xlu1 %962  ;;  %v961_v23 = vpop.permute.xlu0 %960 }
 0x1a1   :  { %1036 = vst.msk [vmem:[#allocation2 + $0xb8] sm:$0xff] %vm1012_vm5, %v963_v22  ;;  %1035 = vst.msk [vmem:[#allocation2 + $0xb0] sm:$0xff] %vm1012_vm5, %v961_v23  ;;  %v4129_v23 = vld [vmem:[%s7735_s0 + $0xe2] sm:$0xff] }
 0x1a2   :  { %1337 = vrot.lane.b32.xlu1 %v4099_v19, %s4704_s25  ;;  %1335 = vrot.lane.b32.xlu0 %v4098_v20, %s4704_s25  ;;  %v4126_v19 = vld [vmem:[%s7735_s0 + $0xc2] sm:$0xff] }
 0x1a4   :  { %v967_v26 = vpop.permute.xlu1 %966  ;;  %v965_v27 = vpop.permute.xlu0 %964 }
 0x1a5   :  { %1038 = vst.msk [vmem:[#allocation2 + $0xc8] sm:$0xff] %vm1012_vm5, %v967_v26  ;;  %1037 = vst.msk [vmem:[#allocation2 + $0xc0] sm:$0xff] %vm1012_vm5, %v965_v27  ;;  %v4131_v27 = vld [vmem:[%s7735_s0 + $0xfa] sm:$0xff] }
 0x1a6   :  { %1341 = vrot.lane.b32.xlu1 %v4101_v24, %s4704_s25  ;;  %1339 = vrot.lane.b32.xlu0 %v4100_v25, %s4704_s25  ;;  %v4128_v24 = vld [vmem:[%s7735_s0 + $0xda] sm:$0xff] }
 0x1a8   :  { %v971_v32 = vpop.permute.xlu1 %970  ;;  %v969_v33 = vpop.permute.xlu0 %968 }
 0x1a9   :  { %1040 = vst.msk [vmem:[#allocation2 + $0xd8] sm:$0xff] %vm1012_vm5, %v971_v32  ;;  %1039 = vst.msk [vmem:[#allocation2 + $0xd0] sm:$0xff] %vm1012_vm5, %v969_v33  ;;  %v4133_v33 = vld [vmem:[%s7735_s0 + $0x112] sm:$0xff] }
 0x1aa   :  { %1345 = vrot.lane.b32.xlu1 %v4103_v28, %s4704_s25  ;;  %1343 = vrot.lane.b32.xlu0 %v4102_v31, %s4704_s25  ;;  %v4130_v28 = vld [vmem:[%s7735_s0 + $0xf2] sm:$0xff] }
 0x1ac   :  { %v975_v36 = vpop.permute.xlu1 %974  ;;  %v973_v37 = vpop.permute.xlu0 %972 }
 0x1ad   :  { %1042 = vst.msk [vmem:[#allocation2 + $0xe8] sm:$0xff] %vm1012_vm5, %v975_v36  ;;  %1041 = vst.msk [vmem:[#allocation2 + $0xe0] sm:$0xff] %vm1012_vm5, %v973_v37  ;;  %v4135_v37 = vld [vmem:[%s7735_s0 + $0x12a] sm:$0xff] }
 0x1ae   :  { %1349 = vrot.lane.b32.xlu1 %v4105_v34, %s4704_s25  ;;  %1347 = vrot.lane.b32.xlu0 %v4104_v35, %s4704_s25  ;;  %v4132_v34 = vld [vmem:[%s7735_s0 + $0x10a] sm:$0xff] }
 0x1b0   :  { %v979_v40 = vpop.permute.xlu1 %978  ;;  %v977_v41 = vpop.permute.xlu0 %976 }
 0x1b1   :  { %1044 = vst.msk [vmem:[#allocation2 + $0xf8] sm:$0xff] %vm1012_vm5, %v979_v40  ;;  %1043 = vst.msk [vmem:[#allocation2 + $0xf0] sm:$0xff] %vm1012_vm5, %v977_v41  ;;  %v4137_v41 = vld [vmem:[%s7735_s0 + $0x142] sm:$0xff] }
 0x1b2   :  { %1353 = vrot.lane.b32.xlu1 %v4107_v38, %s4704_s25  ;;  %1351 = vrot.lane.b32.xlu0 %v4106_v39, %s4704_s25  ;;  %v4134_v38 = vld [vmem:[%s7735_s0 + $0x122] sm:$0xff] }
 0x1b4   :  { %v1113_v53 = vpop.permute.xlu1 %1112  ;;  %v1111_v56 = vpop.permute.xlu0 %1110 }
 0x1b5   :  { %1208 = vst.msk [vmem:[#allocation2 + $0x8] sm:$0xff] %vm1206_vm6, %v1113_v53  ;;  %1207 = vst.msk [vmem:[#allocation2] sm:$0xff] %vm1206_vm6, %v1111_v56 }
 0x1b6   :  { %1357 = vrot.lane.b32.xlu1 %v4109_v48, %s4704_s25  ;;  %1355 = vrot.lane.b32.xlu0 %v4108_v49, %s4704_s25  ;;  %v4139_v49 = vld [vmem:[%s7735_s0 + $0x15a] sm:$0xff] }
 0x1b8   :  { %v1117_v8 = vpop.permute.xlu1 %1116  ;;  %v1115_v9 = vpop.permute.xlu0 %1114 }
 0x1b9   :  { %1210 = vst.msk [vmem:[#allocation2 + $0x18] sm:$0xff] %vm1206_vm6, %v1117_v8  ;;  %1209 = vst.msk [vmem:[#allocation2 + $0x10] sm:$0xff] %vm1206_vm6, %v1115_v9 }
 0x1ba   :  { %1361 = vrot.lane.b32.xlu1 %v5585_v61, %s4704_s25  ;;  %1359 = vrot.lane.b32.xlu0 %v5590_v60, %s4704_s25  ;;  %v4115_v60 = vld [vmem:[%s7735_s0 + $0x3a] sm:$0xff] }
 0x1bc   :  { %v1121_v15 = vpop.permute.xlu1 %1120  ;;  %v1119_v61 = vpop.permute.xlu0 %1118 }
 0x1bd   :  { %1212 = vst.msk [vmem:[#allocation2 + $0x28] sm:$0xff] %vm1206_vm6, %v1121_v15  ;;  %1211 = vst.msk [vmem:[#allocation2 + $0x20] sm:$0xff] %vm1206_vm6, %v1119_v61  ;;  %v6137_v61 = vld [vmem:[%s7735_s0 + $0x1c8] sm:$0xff] }
 0x1be   :  { %1365 = vrot.lane.b32.xlu1 %v4113_v11, %s4704_s25  ;;  %1363 = vrot.lane.b32.xlu0 %v4112_v14, %s4704_s25  ;;  %v6130_v11 = vld [vmem:[%s7735_s0 + $0x1d0] sm:$0xff]  ;;  %1660 = vst.msk [vmem:[#allocation2 + $0x110] sm:$0xff] %vm46_vm0, %v6137_v61 }
 0x1bf   :  { %1661 = vst.msk [vmem:[#allocation2 + $0x118] sm:$0xff] %vm46_vm0, %v6130_v11 }
 0x1c0   :  { %v1125_v21 = vpop.permute.xlu1 %1124  ;;  %v1123_v29 = vpop.permute.xlu0 %1122 }
 0x1c1   :  { %1214 = vst.msk [vmem:[#allocation2 + $0x38] sm:$0xff] %vm1206_vm6, %v1125_v21  ;;  %1213 = vst.msk [vmem:[#allocation2 + $0x30] sm:$0xff] %vm1206_vm6, %v1123_v29  ;;  %v6156_v21 = vld [vmem:[%s7735_s0 + $0x1e8] sm:$0xff] }
 0x1c2   :  { %1498 = vrot.lane.b32.xlu1 %v4115_v60, %s4705_s11  ;;  %1496 = vrot.lane.b32.xlu0 %v4114_v18, %s4705_s11  ;;  %v4145_v60 = vld [vmem:[%s7735_s0 + $0x1a2] sm:$0xff]  ;;  %v4144_v18 = vld [vmem:[%s7735_s0 + $0x19a] sm:$0xff]  ;;  %1663 = vst.msk [vmem:[#allocation2 + $0x128] sm:$0xff] %vm46_vm0, %v6156_v21 }
 0x1c4   :  { %v1129_v43 = vpop.permute.xlu1 %1128  ;;  %v1127_v46 = vpop.permute.xlu0 %1126 }
 0x1c5   :  { %1216 = vst.msk [vmem:[#allocation2 + $0x48] sm:$0xff] %vm1206_vm6, %v1129_v43  ;;  %1215 = vst.msk [vmem:[#allocation2 + $0x40] sm:$0xff] %vm1206_vm6, %v1127_v46  ;;  %v4178_v43 = vld [vmem:[%s7735_s0 + $0x1b1] sm:$0xff] }
 0x1c6   :  { %1502 = vrot.lane.b32.xlu1 %v4117_v30, %s4705_s11  ;;  %1500 = vrot.lane.b32.xlu0 %v4116_v42, %s4705_s11  ;;  %v4179_v42 = vld [vmem:[%s7735_s0 + $0x1b9] sm:$0xff] }
 0x1c8   :  { %v1133_v51 = vpop.permute.xlu1 %1132  ;;  %v1131_v54 = vpop.permute.xlu0 %1130 }
 0x1c9   :  { %1218 = vst.msk [vmem:[#allocation2 + $0x58] sm:$0xff] %vm1206_vm6, %v1133_v51  ;;  %1217 = vst.msk [vmem:[#allocation2 + $0x50] sm:$0xff] %vm1206_vm6, %v1131_v54  ;;  %v6198_v51 = vld [vmem:[%s7735_s0 + $0x218] sm:$0xff] }
 0x1ca   :  { %1506 = vrot.lane.b32.xlu1 %v4119_v47, %s4705_s11  ;;  %1504 = vrot.lane.b32.xlu0 %v4118_v50, %s4705_s11  ;;  %v6187_v50 = vld [vmem:[%s7735_s0 + $0x1f8] sm:$0xff]  ;;  %1667 = vst.msk [vmem:[#allocation2 + $0x148] sm:$0xff] %vm46_vm0, %v6198_v51 }
 0x1cb   :  { %1664 = vst.msk [vmem:[#allocation2 + $0x130] sm:$0xff] %vm46_vm0, %v6187_v50  ;;  %v6203_v54 = vld [vmem:[%s7735_s0 + $0x1d1] sm:$0xff] }
 0x1cc   :  { %v1137_v58 = vpop.permute.xlu1 %1136  ;;  %v1135_v59 = vpop.permute.xlu0 %1134 }
 0x1cd   :  { %1220 = vst.msk [vmem:[#allocation2 + $0x68] sm:$0xff] %vm1206_vm6, %v1137_v58  ;;  %1219 = vst.msk [vmem:[#allocation2 + $0x60] sm:$0xff] %vm1206_vm6, %v1135_v59  ;;  %v6215_v59 = vld [vmem:[%s7735_s0 + $0x210] sm:$0xff] }
 0x1ce   :  { %1510 = vrot.lane.b32.xlu1 %v4121_v55, %s4705_s11  ;;  %1508 = vrot.lane.b32.xlu0 %v4120_v13, %s4705_s11  ;;  %v6208_v55 = vld [vmem:[%s7735_s0 + $0x1c9] sm:$0xff]  ;;  %1666 = vst.msk [vmem:[#allocation2 + $0x140] sm:$0xff] %vm46_vm0, %v6215_v59 }
 0x1d0   :  { %v1141_v2 = vpop.permute.xlu1 %1140  ;;  %v1139_v17 = vpop.permute.xlu0 %1138 }
 0x1d1   :  { %1222 = vst.msk [vmem:[#allocation2 + $0x78] sm:$0xff] %vm1206_vm6, %v1141_v2  ;;  %1221 = vst.msk [vmem:[#allocation2 + $0x70] sm:$0xff] %vm1206_vm6, %v1139_v17  ;;  %v6238_v2 = vld [vmem:[%s7735_s0 + $0x1e1] sm:$0xff] }
 0x1d2   :  { %1514 = vrot.lane.b32.xlu1 %v4123_v3, %s4705_s11  ;;  %1512 = vrot.lane.b32.xlu0 %v4122_v0, %s4705_s11  ;;  %v6228_v3 = vld [vmem:[%s7735_s0 + $0x230] sm:$0xff] }
 0x1d3   :  { %v6233_v0 = vld [vmem:[%s7735_s0 + $0x1e9] sm:$0xff]  ;;  %1669 = vst.msk [vmem:[#allocation2 + $0x158] sm:$0xff] %vm46_vm0, %v6228_v3 }
 0x1d4   :  { %v1145_v5 = vpop.permute.xlu1 %1144  ;;  %v1143_v6 = vpop.permute.xlu0 %1142 }
 0x1d5   :  { %1224 = vst.msk [vmem:[#allocation2 + $0x88] sm:$0xff] %vm1206_vm6, %v1145_v5  ;;  %1223 = vst.msk [vmem:[#allocation2 + $0x80] sm:$0xff] %vm1206_vm6, %v1143_v6  ;;  %v6258_v5 = vld [vmem:[%s7735_s0 + $0x248] sm:$0xff] }
 0x1d6   :  { %1518 = vrot.lane.b32.xlu1 %v4125_v62, %s4705_s11  ;;  %1516 = vrot.lane.b32.xlu0 %v4124_v4, %s4705_s11  ;;  %v6245_v4 = vld [vmem:[%s7735_s0 + $0x228] sm:$0xff]  ;;  %1671 = vst.msk [vmem:[#allocation2 + $0x168] sm:$0xff] %vm46_vm0, %v6258_v5 }
 0x1d7   :  { %1668 = vst.msk [vmem:[#allocation2 + $0x150] sm:$0xff] %vm46_vm0, %v6245_v4  ;;  %v4185_v6 = vld [vmem:[%s7735_s0 + $0x201] sm:$0xff] }
 0x1d8   :  { %v1149_v20 = vpop.permute.xlu1 %1148  ;;  %v1147_v22 = vpop.permute.xlu0 %1146 }
 0x1d9   :  { %1226 = vst.msk [vmem:[#allocation2 + $0x98] sm:$0xff] %vm1206_vm6, %v1149_v20  ;;  %1225 = vst.msk [vmem:[#allocation2 + $0x90] sm:$0xff] %vm1206_vm6, %v1147_v22  ;;  %v6273_v22 = vld [vmem:[%s7735_s0 + $0x240] sm:$0xff] }
 0x1da   :  { %1522 = vrot.lane.b32.xlu1 %v4127_v7, %s4705_s11  ;;  %1520 = vrot.lane.b32.xlu0 %v4126_v19, %s4705_s11  ;;  %v6266_v7 = vld [vmem:[%s7735_s0 + $0x1f9] sm:$0xff]  ;;  %1670 = vst.msk [vmem:[#allocation2 + $0x160] sm:$0xff] %vm46_vm0, %v6273_v22 }
 0x1dc   :  { %v1153_v25 = vpop.permute.xlu1 %1152  ;;  %v1151_v26 = vpop.permute.xlu0 %1150 }
 0x1dd   :  { %1228 = vst.msk [vmem:[#allocation2 + $0xa8] sm:$0xff] %vm1206_vm6, %v1153_v25  ;;  %1227 = vst.msk [vmem:[#allocation2 + $0xa0] sm:$0xff] %vm1206_vm6, %v1151_v26  ;;  %v4186_v25 = vld [vmem:[%s7735_s0 + $0x211] sm:$0xff] }
 0x1de   :  { %1526 = vrot.lane.b32.xlu1 %v4129_v23, %s4705_s11  ;;  %1524 = vrot.lane.b32.xlu0 %v4128_v24, %s4705_s11  ;;  %v6285_v23 = vld [vmem:[%s7735_s0 + $0x260] sm:$0xff] }
 0x1df   :  { %v4187_v24 = vld [vmem:[%s7735_s0 + $0x219] sm:$0xff]  ;;  %1673 = vst.msk [vmem:[#allocation2 + $0x178] sm:$0xff] %vm46_vm0, %v6285_v23 }
 0x1e0   :  { %v1157_v31 = vpop.permute.xlu1 %1156  ;;  %v1155_v32 = vpop.permute.xlu0 %1154 }
 0x1e1   :  { %1230 = vst.msk [vmem:[#allocation2 + $0xb8] sm:$0xff] %vm1206_vm6, %v1157_v31  ;;  %1229 = vst.msk [vmem:[#allocation2 + $0xb0] sm:$0xff] %vm1206_vm6, %v1155_v32  ;;  %v6309_v31 = vld [vmem:[%s7735_s0 + $0x278] sm:$0xff] }
 0x1e2   :  { %1530 = vrot.lane.b32.xlu1 %v4131_v27, %s4705_s11  ;;  %1528 = vrot.lane.b32.xlu0 %v4130_v28, %s4705_s11  ;;  %v6298_v28 = vld [vmem:[%s7735_s0 + $0x258] sm:$0xff]  ;;  %1675 = vst.msk [vmem:[#allocation2 + $0x188] sm:$0xff] %vm46_vm0, %v6309_v31 }
 0x1e3   :  { %1672 = vst.msk [vmem:[#allocation2 + $0x170] sm:$0xff] %vm46_vm0, %v6298_v28  ;;  %v4189_v32 = vld [vmem:[%s7735_s0 + $0x231] sm:$0xff] }
 0x1e4   :  { %v1161_v35 = vpop.permute.xlu1 %1160  ;;  %v1159_v36 = vpop.permute.xlu0 %1158 }
 0x1e5   :  { %1232 = vst.msk [vmem:[#allocation2 + $0xc8] sm:$0xff] %vm1206_vm6, %v1161_v35  ;;  %1231 = vst.msk [vmem:[#allocation2 + $0xc0] sm:$0xff] %vm1206_vm6, %v1159_v36  ;;  %v6322_v36 = vld [vmem:[%s7735_s0 + $0x270] sm:$0xff] }
 0x1e6   :  { %1534 = vrot.lane.b32.xlu1 %v4133_v33, %s4705_s11  ;;  %1532 = vrot.lane.b32.xlu0 %v4132_v34, %s4705_s11  ;;  %v4188_v33 = vld [vmem:[%s7735_s0 + $0x229] sm:$0xff]  ;;  %1674 = vst.msk [vmem:[#allocation2 + $0x180] sm:$0xff] %vm46_vm0, %v6322_v36 }
 0x1e8   :  { %v1165_v39 = vpop.permute.xlu1 %1164  ;;  %v1163_v40 = vpop.permute.xlu0 %1162 }
 0x1e9   :  { %1234 = vst.msk [vmem:[#allocation2 + $0xd8] sm:$0xff] %vm1206_vm6, %v1165_v39  ;;  %1233 = vst.msk [vmem:[#allocation2 + $0xd0] sm:$0xff] %vm1206_vm6, %v1163_v40  ;;  %v4190_v39 = vld [vmem:[%s7735_s0 + $0x241] sm:$0xff] }
 0x1ea   :  { %1538 = vrot.lane.b32.xlu1 %v4135_v37, %s4705_s11  ;;  %1536 = vrot.lane.b32.xlu0 %v4134_v38, %s4705_s11  ;;  %v6333_v37 = vld [vmem:[%s7735_s0 + $0x290] sm:$0xff] }
 0x1eb   :  { %v4191_v38 = vld [vmem:[%s7735_s0 + $0x249] sm:$0xff]  ;;  %1677 = vst.msk [vmem:[#allocation2 + $0x198] sm:$0xff] %vm46_vm0, %v6333_v37 }
 0x1ec   :  { %v1169_v45 = vpop.permute.xlu1 %1168  ;;  %v1167_v48 = vpop.permute.xlu0 %1166 }
 0x1ed   :  { %1236 = vst.msk [vmem:[#allocation2 + $0xe8] sm:$0xff] %vm1206_vm6, %v1169_v45  ;;  %1235 = vst.msk [vmem:[#allocation2 + $0xe0] sm:$0xff] %vm1206_vm6, %v1167_v48  ;;  %v6357_v45 = vld [vmem:[%s7735_s0 + $0x2a8] sm:$0xff] }
 0x1ee   :  { %1542 = vrot.lane.b32.xlu1 %v4137_v41, %s4705_s11  ;;  %1540 = vrot.lane.b32.xlu0 %v4136_v44, %s4705_s11  ;;  %v6346_v44 = vld [vmem:[%s7735_s0 + $0x288] sm:$0xff]  ;;  %1679 = vst.msk [vmem:[#allocation2 + $0x1a8] sm:$0xff] %vm46_vm0, %v6357_v45 }
 0x1ef   :  { %1676 = vst.msk [vmem:[#allocation2 + $0x190] sm:$0xff] %vm46_vm0, %v6346_v44  ;;  %v4193_v48 = vld [vmem:[%s7735_s0 + $0x261] sm:$0xff] }
 0x1f0   :  { %v1173_v53 = vpop.permute.xlu1 %1172  ;;  %v1171_v56 = vpop.permute.xlu0 %1170 }
 0x1f1   :  { %1238 = vst.msk [vmem:[#allocation2 + $0xf8] sm:$0xff] %vm1206_vm6, %v1173_v53  ;;  %1237 = vst.msk [vmem:[#allocation2 + $0xf0] sm:$0xff] %vm1206_vm6, %v1171_v56  ;;  %v6370_v56 = vld [vmem:[%s7735_s0 + $0x2a0] sm:$0xff] }
 0x1f2   :  { %1546 = vrot.lane.b32.xlu1 %v4139_v49, %s4705_s11  ;;  %1544 = vrot.lane.b32.xlu0 %v4138_v52, %s4705_s11  ;;  %v4192_v49 = vld [vmem:[%s7735_s0 + $0x259] sm:$0xff]  ;;  %1678 = vst.msk [vmem:[#allocation2 + $0x1a0] sm:$0xff] %vm46_vm0, %v6370_v56 }
 0x1f4   :  { %v1306_v8 = vpop.permute.xlu1 %1305  ;;  %v1304_v9 = vpop.permute.xlu0 %1303 }
 0x1f5   :  { %1401 = vst.msk [vmem:[#allocation2 + $0x8] sm:$0xff] %vm1399_vm8, %v1306_v8  ;;  %1400 = vst.msk [vmem:[#allocation2] sm:$0xff] %vm1399_vm8, %v1304_v9 }
 0x1f6   :  { %1550 = vrot.lane.b32.xlu1 %v4141_v57, %s4705_s11  ;;  %1548 = vrot.lane.b32.xlu0 %v4140_v12, %s4705_s11  ;;  %v4169_v57 = vld [vmem:[%s7735_s0 + $0x2c0] sm:$0xff] }
 0x1f7   :  { %v4195_v12 = vld [vmem:[%s7735_s0 + $0x279] sm:$0xff]  ;;  %1681 = vst.msk [vmem:[#allocation2 + $0x1b8] sm:$0xff] %vm46_vm0, %v4169_v57 }
 0x1f8   :  { %v1310_v14 = vpop.permute.xlu1 %1309  ;;  %v1308_v15 = vpop.permute.xlu0 %1307  ;;  %v4208_v57 = vld [vmem:[%s7735_s0 + $0x319] sm:$0xff] }
 0x1f9   :  { %1403 = vst.msk [vmem:[#allocation2 + $0x18] sm:$0xff] %vm1399_vm8, %v1310_v14  ;;  %1402 = vst.msk [vmem:[#allocation2 + $0x10] sm:$0xff] %vm1399_vm8, %v1308_v15  ;;  %v4171_v14 = vld [vmem:[%s7735_s0 + $0x2d8] sm:$0xff] }
 0x1fa   :  { %1554 = vrot.lane.b32.xlu1 %v5691_v63, %s4705_s11  ;;  %1552 = vrot.lane.b32.xlu0 %v5696_v1, %s4705_s11  ;;  %v6163_v63 = vld [vmem:[%s7735_s0 + $0x1e0] sm:$0xff]  ;;  %v4197_v15 = vld [vmem:[%s7735_s0 + $0x291] sm:$0xff]  ;;  %1683 = vst.msk [vmem:[#allocation2 + $0x1c8] sm:$0xff] %vm46_vm0, %v4171_v14 }
 0x1fb   :  { %1662 = vst.msk [vmem:[#allocation2 + $0x120] sm:$0xff] %vm46_vm0, %v6163_v63  ;;  %v6174_v1 = vld [vmem:[%s7735_s0 + $0x200] sm:$0xff]  ;;  %v4210_v14 = vld [vmem:[%s7735_s0 + $0x1b2] sm:$0xff] }
 0x1fc   :  { %v1314_v29 = vpop.permute.xlu1 %1313  ;;  %v1312_v30 = vpop.permute.xlu0 %1311  ;;  %1665 = vst.msk [vmem:[#allocation2 + $0x138] sm:$0xff] %vm46_vm0, %v6174_v1 }
 0x1fd   :  { %1405 = vst.msk [vmem:[#allocation2 + $0x28] sm:$0xff] %vm1399_vm8, %v1314_v29  ;;  %1404 = vst.msk [vmem:[#allocation2 + $0x20] sm:$0xff] %vm1399_vm8, %v1312_v30  ;;  %v4170_v30 = vld [vmem:[%s7735_s0 + $0x2d0] sm:$0xff] }
 0x1fe   :  { %1558 = vrot.lane.b32.xlu1 %v4145_v60, %s4705_s11  ;;  %1556 = vrot.lane.b32.xlu0 %v4144_v18, %s4705_s11  ;;  %v4196_v60 = vld [vmem:[%s7735_s0 + $0x289] sm:$0xff]  ;;  %1682 = vst.msk [vmem:[#allocation2 + $0x1c0] sm:$0xff] %vm46_vm0, %v4170_v30  ;;  %v6515_v30 = vld [vmem:[%s7735_s0 + $0x1d2] sm:$0xff] }
 0x200   :  { %v1318_v46 = vpop.permute.xlu1 %1317  ;;  %v1316_v47 = vpop.permute.xlu0 %1315 }
 0x201   :  { %1407 = vst.msk [vmem:[#allocation2 + $0x38] sm:$0xff] %vm1399_vm8, %v1318_v46  ;;  %1406 = vst.msk [vmem:[#allocation2 + $0x30] sm:$0xff] %vm1399_vm8, %v1316_v47  ;;  %v4198_v46 = vld [vmem:[%s7735_s0 + $0x2a1] sm:$0xff] }
 0x202   :  { %1756 = vrot.lane.b32.xlu1 %v4179_v42, %s4698_s16  ;;  %1754 = vrot.lane.b32.xlu0 %v4178_v43, %s4698_s16  ;;  %v4173_v42 = vld [vmem:[%s7735_s0 + $0x2f0] sm:$0xff] }
 0x203   :  { %v4199_v43 = vld [vmem:[%s7735_s0 + $0x2a9] sm:$0xff]  ;;  %1685 = vst.msk [vmem:[#allocation2 + $0x1d8] sm:$0xff] %vm46_vm0, %v4173_v42 }
 0x204   :  { %v1322_v13 = vpop.permute.xlu1 %1321  ;;  %v1320_v58 = vpop.permute.xlu0 %1319  ;;  %v6520_v42 = vld [vmem:[%s7735_s0 + $0x1ca] sm:$0xff] }
 0x205   :  { %1409 = vst.msk [vmem:[#allocation2 + $0x48] sm:$0xff] %vm1399_vm8, %v1322_v13  ;;  %1408 = vst.msk [vmem:[#allocation2 + $0x40] sm:$0xff] %vm1399_vm8, %v1320_v58  ;;  %v4172_v58 = vld [vmem:[%s7735_s0 + $0x2e8] sm:$0xff] }
 0x206   :  { %1760 = vrot.lane.b32.xlu1 %v6203_v54, %s4698_s16  ;;  %1758 = vrot.lane.b32.xlu0 %v6208_v55, %s4698_s16  ;;  %1684 = vst.msk [vmem:[#allocation2 + $0x1d0] sm:$0xff] %vm46_vm0, %v4172_v58  ;;  %v6533_v58 = vld [vmem:[%s7735_s0 + $0x1ea] sm:$0xff] }
 0x208   :  { %v1326_v17 = vpop.permute.xlu1 %1325  ;;  %v1324_v62 = vpop.permute.xlu0 %1323 }
 0x209   :  { %1411 = vst.msk [vmem:[#allocation2 + $0x58] sm:$0xff] %vm1399_vm8, %v1326_v17  ;;  %1410 = vst.msk [vmem:[#allocation2 + $0x50] sm:$0xff] %vm1399_vm8, %v1324_v62  ;;  %v4175_v17 = vld [vmem:[%s7735_s0 + $0x308] sm:$0xff] }
 0x20a   :  { %1764 = vrot.lane.b32.xlu1 %v6233_v0, %s4698_s16  ;;  %1762 = vrot.lane.b32.xlu0 %v6238_v2, %s4698_s16  ;;  %v4201_v62 = vld [vmem:[%s7735_s0 + $0x2c1] sm:$0xff]  ;;  %1687 = vst.msk [vmem:[#allocation2 + $0x1e8] sm:$0xff] %vm46_vm0, %v4175_v17 }
 0x20b   :  { %v6538_v17 = vld [vmem:[%s7735_s0 + $0x1e2] sm:$0xff] }
 0x20c   :  { %v1330_v19 = vpop.permute.xlu1 %1329  ;;  %v1328_v20 = vpop.permute.xlu0 %1327 }
 0x20d   :  { %1413 = vst.msk [vmem:[#allocation2 + $0x68] sm:$0xff] %vm1399_vm8, %v1330_v19  ;;  %1412 = vst.msk [vmem:[#allocation2 + $0x60] sm:$0xff] %vm1399_vm8, %v1328_v20 }
 0x20e   :  { %1768 = vrot.lane.b32.xlu1 %v4185_v6, %s4698_s16  ;;  %1766 = vrot.lane.b32.xlu0 %v6266_v7, %s4698_s16  ;;  %v4200_v6 = vld [vmem:[%s7735_s0 + $0x2b9] sm:$0xff] }
 0x210   :  { %v1334_v26 = vpop.permute.xlu1 %1333  ;;  %v1332_v27 = vpop.permute.xlu0 %1331 }
 0x211   :  { %1415 = vst.msk [vmem:[#allocation2 + $0x78] sm:$0xff] %vm1399_vm8, %v1334_v26  ;;  %1414 = vst.msk [vmem:[#allocation2 + $0x70] sm:$0xff] %vm1399_vm8, %v1332_v27  ;;  %v4203_v26 = vld [vmem:[%s7735_s0 + $0x2d9] sm:$0xff]  ;;  %v4202_v27 = vld [vmem:[%s7735_s0 + $0x2d1] sm:$0xff] }
 0x212   :  { %1772 = vrot.lane.b32.xlu1 %v4187_v24, %s4698_s16  ;;  %1770 = vrot.lane.b32.xlu0 %v4186_v25, %s4698_s16  ;;  %v4174_v24 = vld [vmem:[%s7735_s0 + $0x300] sm:$0xff] }
 0x213   :  { %1686 = vst.msk [vmem:[#allocation2 + $0x1e0] sm:$0xff] %vm46_vm0, %v4174_v24  ;;  %v4177_v25 = vld [vmem:[%s7735_s0 + $0x320] sm:$0xff] }
 0x214   :  { %v1338_v34 = vpop.permute.xlu1 %1337  ;;  %v1336_v35 = vpop.permute.xlu0 %1335  ;;  %1689 = vst.msk [vmem:[#allocation2 + $0x1f8] sm:$0xff] %vm46_vm0, %v4177_v25  ;;  %v6551_v24 = vld [vmem:[%s7735_s0 + $0x202] sm:$0xff]  ;;  %v6556_v25 = vld [vmem:[%s7735_s0 + $0x1fa] sm:$0xff] }
 0x215   :  { %1417 = vst.msk [vmem:[#allocation2 + $0x88] sm:$0xff] %vm1399_vm8, %v1338_v34  ;;  %1416 = vst.msk [vmem:[#allocation2 + $0x80] sm:$0xff] %vm1399_vm8, %v1336_v35  ;;  %v4176_v34 = vld [vmem:[%s7735_s0 + $0x318] sm:$0xff] }
 0x216   :  { %1776 = vrot.lane.b32.xlu1 %v4189_v32, %s4698_s16  ;;  %1774 = vrot.lane.b32.xlu0 %v4188_v33, %s4698_s16  ;;  %1688 = vst.msk [vmem:[#allocation2 + $0x1f0] sm:$0xff] %vm46_vm0, %v4176_v34  ;;  %v4205_v35 = vld [vmem:[%s7735_s0 + $0x2f1] sm:$0xff]  ;;  %v6569_v34 = vld [vmem:[%s7735_s0 + $0x21a] sm:$0xff] }
 0x218   :  { %v1342_v40 = vpop.permute.xlu1 %1341  ;;  %v1340_v41 = vpop.permute.xlu0 %1339 }
 0x219   :  { %1419 = vst.msk [vmem:[#allocation2 + $0x98] sm:$0xff] %vm1399_vm8, %v1342_v40  ;;  %1418 = vst.msk [vmem:[#allocation2 + $0x90] sm:$0xff] %vm1399_vm8, %v1340_v41  ;;  %v4207_v41 = vld [vmem:[%s7735_s0 + $0x309] sm:$0xff] }
 0x21a   :  { %1780 = vrot.lane.b32.xlu1 %v4191_v38, %s4698_s16  ;;  %1778 = vrot.lane.b32.xlu0 %v4190_v39, %s4698_s16  ;;  %v4204_v38 = vld [vmem:[%s7735_s0 + $0x2e9] sm:$0xff] }
 0x21c   :  { %v1346_v52 = vpop.permute.xlu1 %1345  ;;  %v1344_v53 = vpop.permute.xlu0 %1343 }
 0x21d   :  { %1421 = vst.msk [vmem:[#allocation2 + $0xa8] sm:$0xff] %vm1399_vm8, %v1346_v52  ;;  %1420 = vst.msk [vmem:[#allocation2 + $0xa0] sm:$0xff] %vm1399_vm8, %v1344_v53  ;;  %v4209_v53 = vld [vmem:[%s7735_s0 + $0x321] sm:$0xff] }
 0x21e   :  { %1784 = vrot.lane.b32.xlu1 %v4193_v48, %s4698_s16  ;;  %1782 = vrot.lane.b32.xlu0 %v4192_v49, %s4698_s16  ;;  %v4206_v48 = vld [vmem:[%s7735_s0 + $0x301] sm:$0xff] }
 0x220   :  { %v1350_v8 = vpop.permute.xlu1 %1349  ;;  %v1348_v9 = vpop.permute.xlu0 %1347 }
 0x221   :  { %1423 = vst.msk [vmem:[#allocation2 + $0xb8] sm:$0xff] %vm1399_vm8, %v1350_v8  ;;  %1422 = vst.msk [vmem:[#allocation2 + $0xb0] sm:$0xff] %vm1399_vm8, %v1348_v9 }
 0x222   :  { %1788 = vrot.lane.b32.xlu1 %v4195_v12, %s4698_s16  ;;  %1786 = vrot.lane.b32.xlu0 %v4194_v16, %s4698_s16 }
 0x224   :  { %v1354_v18 = vpop.permute.xlu1 %1353  ;;  %v1352_v29 = vpop.permute.xlu0 %1351 }
 0x225   :  { %1425 = vst.msk [vmem:[#allocation2 + $0xc8] sm:$0xff] %vm1399_vm8, %v1354_v18  ;;  %1424 = vst.msk [vmem:[#allocation2 + $0xc0] sm:$0xff] %vm1399_vm8, %v1352_v29 }
 0x226   :  { %1792 = vrot.lane.b32.xlu1 %v4197_v15, %s4698_s16  ;;  %1790 = vrot.lane.b32.xlu0 %v4196_v60, %s4698_s16 }
 0x228   :  { %v1358_v47 = vpop.permute.xlu1 %1357  ;;  %v1356_v13 = vpop.permute.xlu0 %1355 }
 0x229   :  { %1427 = vst.msk [vmem:[#allocation2 + $0xd8] sm:$0xff] %vm1399_vm8, %v1358_v47  ;;  %1426 = vst.msk [vmem:[#allocation2 + $0xd0] sm:$0xff] %vm1399_vm8, %v1356_v13 }
 0x22a   :  { %1796 = vrot.lane.b32.xlu1 %v4199_v43, %s4698_s16  ;;  %1794 = vrot.lane.b32.xlu0 %v4198_v46, %s4698_s16 }
 0x22c   :  { %v1362_v19 = vpop.permute.xlu1 %1361  ;;  %v1360_v20 = vpop.permute.xlu0 %1359 }
 0x22d   :  { %1429 = vst.msk [vmem:[#allocation2 + $0xe8] sm:$0xff] %vm1399_vm8, %v1362_v19  ;;  %1428 = vst.msk [vmem:[#allocation2 + $0xe0] sm:$0xff] %vm1399_vm8, %v1360_v20 }
 0x22e   :  { %1800 = vrot.lane.b32.xlu1 %v4201_v62, %s4698_s16  ;;  %1798 = vrot.lane.b32.xlu0 %v4200_v6, %s4698_s16 }
 0x230   :  { %v1366_v32 = vpop.permute.xlu1 %1365  ;;  %v1364_v33 = vpop.permute.xlu0 %1363 }
 0x231   :  { %1431 = vst.msk [vmem:[#allocation2 + $0xf8] sm:$0xff] %vm1399_vm8, %v1366_v32  ;;  %1430 = vst.msk [vmem:[#allocation2 + $0xf0] sm:$0xff] %vm1399_vm8, %v1364_v33 }
 0x232   :  { %1804 = vrot.lane.b32.xlu1 %v4203_v26, %s4698_s16  ;;  %1802 = vrot.lane.b32.xlu0 %v4202_v27, %s4698_s16 }
 0x234   :  { %v1499_v39 = vpop.permute.xlu1 %1498  ;;  %v1497_v40 = vpop.permute.xlu0 %1496 }
 0x235   :  { %1594 = vst.msk [vmem:[#allocation2 + $0x8] sm:$0xff] %vm1592_vm9, %v1499_v39  ;;  %1593 = vst.msk [vmem:[#allocation2] sm:$0xff] %vm1592_vm9, %v1497_v40 }
 0x236   :  { %1808 = vrot.lane.b32.xlu1 %v4205_v35, %s4698_s16  ;;  %1806 = vrot.lane.b32.xlu0 %v4204_v38, %s4698_s16  ;;  %v6574_v35 = vld [vmem:[%s7735_s0 + $0x212] sm:$0xff] }
 0x238   :  { %v1503_v49 = vpop.permute.xlu1 %1502  ;;  %v1501_v52 = vpop.permute.xlu0 %1500 }
 0x239   :  { %1596 = vst.msk [vmem:[#allocation2 + $0x18] sm:$0xff] %vm1592_vm9, %v1503_v49  ;;  %1595 = vst.msk [vmem:[#allocation2 + $0x10] sm:$0xff] %vm1592_vm9, %v1501_v52  ;;  %v6592_v49 = vld [vmem:[%s7735_s0 + $0x22a] sm:$0xff] }
 0x23a   :  { %1812 = vrot.lane.b32.xlu1 %v4207_v41, %s4698_s16  ;;  %1810 = vrot.lane.b32.xlu0 %v4206_v48, %s4698_s16  ;;  %v6587_v48 = vld [vmem:[%s7735_s0 + $0x232] sm:$0xff] }
 0x23c   :  { %v1507_v12 = vpop.permute.xlu1 %1506  ;;  %v1505_v16 = vpop.permute.xlu0 %1504  ;;  %v3228_v8 = vld [vmem:[#allocation2] sm:$0xff]  ;;  %v3229_v9 = vld [vmem:[#allocation2 + $0x8] sm:$0xff] }
 0x23d   :  { %1598 = vst.msk [vmem:[#allocation2 + $0x28] sm:$0xff] %vm1592_vm9, %v1507_v12  ;;  %1597 = vst.msk [vmem:[#allocation2 + $0x20] sm:$0xff] %vm1592_vm9, %v1505_v16  ;;  %4579 = vmatprep.mubr.msk.f32.mxu0 %vm3304_vm10, %v3228_v8  ;;  %v6605_v16 = vld [vmem:[%s7735_s0 + $0x24a] sm:$0xff]  ;;  %v6610_v8 = vld [vmem:[%s7735_s0 + $0x242] sm:$0xff] }
 0x23e   :  { %1816 = vrot.lane.b32.xlu1 %v4209_v53, %s4698_s16  ;;  %1814 = vrot.lane.b32.xlu0 %v4208_v57, %s4698_s16 }
 0x23f   :  { %4580 = vmatmul.mubr.msk.f32.vlgmr.msra.gmra.mrb[0].mxu0 %vm3304_vm10, %v3229_v9 }
 0x240   :  { %v1511_v15 = vpop.permute.xlu1 %1510  ;;  %v1509_v60 = vpop.permute.xlu0 %1508  ;;  %v3230_v18 = vld [vmem:[#allocation2 + $0x10] sm:$0xff]  ;;  %v3231_v29 = vld [vmem:[#allocation2 + $0x18] sm:$0xff] }
 0x241   :  { %1600 = vst.msk [vmem:[#allocation2 + $0x38] sm:$0xff] %vm1592_vm9, %v1511_v15  ;;  %1599 = vst.msk [vmem:[#allocation2 + $0x30] sm:$0xff] %vm1592_vm9, %v1509_v60  ;;  %4582 = vmatprep.mubr.msk.f32.mxu0 %vm3304_vm10, %v3230_v18  ;;  %v4225_v60 = vld [vmem:[%s7735_s0 + $0x262] sm:$0xff]  ;;  %v6626_v18 = vld [vmem:[%s7735_s0 + $0x25a] sm:$0xff] }
 0x242   :  { %1948 = vrot.lane.b32.xlu1 %v4211_v10, %s4699_s14  ;;  %1946 = vrot.lane.b32.xlu0 %v4210_v14, %s4699_s14 }
 0x243   :  { %4583 = vmatmul.mubr.msk.f32.gmra.mrb[2].mxu0 %vm3304_vm10, %v3231_v29 }
 0x244   :  { %v1515_v43 = vpop.permute.xlu1 %1514  ;;  %v1513_v46 = vpop.permute.xlu0 %1512  ;;  %v3232_v47 = vld [vmem:[#allocation2 + $0x20] sm:$0xff]  ;;  %v3233_v13 = vld [vmem:[#allocation2 + $0x28] sm:$0xff] }
 0x245   :  { %1602 = vst.msk [vmem:[#allocation2 + $0x48] sm:$0xff] %vm1592_vm9, %v1515_v43  ;;  %1601 = vst.msk [vmem:[#allocation2 + $0x40] sm:$0xff] %vm1592_vm9, %v1513_v46  ;;  %4585 = vmatprep.mubr.msk.f32.mxu0 %vm3304_vm10, %v3232_v47 }
 0x246   :  { %1952 = vrot.lane.b32.xlu1 %v6515_v30, %s4699_s14  ;;  %1950 = vrot.lane.b32.xlu0 %v6520_v42, %s4699_s14 }
 0x247   :  { %4586 = vmatmul.mubr.msk.f32.gmra.mrb[4].mxu0 %vm3304_vm10, %v3233_v13  ;;  %v4227_v13 = vld [vmem:[%s7735_s0 + $0x27a] sm:$0xff] }
 0x248   :  { %v1519_v62 = vpop.permute.xlu1 %1518  ;;  %v1517_v6 = vpop.permute.xlu0 %1516  ;;  %v3234_v19 = vld [vmem:[#allocation2 + $0x30] sm:$0xff]  ;;  %v3235_v20 = vld [vmem:[#allocation2 + $0x38] sm:$0xff] }
 0x249   :  { %1604 = vst.msk [vmem:[#allocation2 + $0x58] sm:$0xff] %vm1592_vm9, %v1519_v62  ;;  %1603 = vst.msk [vmem:[#allocation2 + $0x50] sm:$0xff] %vm1592_vm9, %v1517_v6  ;;  %4588 = vmatprep.mubr.msk.f32.mxu0 %vm3304_vm10, %v3234_v19  ;;  %v4226_v62 = vld [vmem:[%s7735_s0 + $0x272] sm:$0xff] }
 0x24a   :  { %1956 = vrot.lane.b32.xlu1 %v6533_v58, %s4699_s14  ;;  %1954 = vrot.lane.b32.xlu0 %v6538_v17, %s4699_s14 }
 0x24b   :  { %4589 = vmatmul.mubr.msk.f32.gmra.mrb[6].mxu0 %vm3304_vm10, %v3235_v20 }
 0x24c   :  { %v1523_v26 = vpop.permute.xlu1 %1522  ;;  %v1521_v27 = vpop.permute.xlu0 %1520  ;;  %v3236_v32 = vld [vmem:[#allocation2 + $0x40] sm:$0xff]  ;;  %v3237_v33 = vld [vmem:[#allocation2 + $0x48] sm:$0xff] }
 0x24d   :  { %1606 = vst.msk [vmem:[#allocation2 + $0x68] sm:$0xff] %vm1592_vm9, %v1523_v26  ;;  %1605 = vst.msk [vmem:[#allocation2 + $0x60] sm:$0xff] %vm1592_vm9, %v1521_v27  ;;  %4591 = vmatprep.mubr.msk.f32.mxu0 %vm3304_vm10, %v3236_v32  ;;  %v4229_v27 = vld [vmem:[%s7735_s0 + $0x292] sm:$0xff]  ;;  %v4228_v32 = vld [vmem:[%s7735_s0 + $0x28a] sm:$0xff] }
 0x24e   :  { %1960 = vrot.lane.b32.xlu1 %v6551_v24, %s4699_s14  ;;  %1958 = vrot.lane.b32.xlu0 %v6556_v25, %s4699_s14 }
 0x24f   :  { %4592 = vmatmul.mubr.msk.f32.gmra.mrb[8].mxu0 %vm3304_vm10, %v3237_v33 }
 0x250   :  { %v1527_v38 = vpop.permute.xlu1 %1526  ;;  %v1525_v39 = vpop.permute.xlu0 %1524  ;;  %v3238_v40 = vld [vmem:[#allocation2 + $0x50] sm:$0xff]  ;;  %v3239_v41 = vld [vmem:[#allocation2 + $0x58] sm:$0xff] }
 0x251   :  { %1608 = vst.msk [vmem:[#allocation2 + $0x78] sm:$0xff] %vm1592_vm9, %v1527_v38  ;;  %1607 = vst.msk [vmem:[#allocation2 + $0x70] sm:$0xff] %vm1592_vm9, %v1525_v39  ;;  %4594 = vmatprep.mubr.msk.f32.mxu0 %vm3304_vm10, %v3238_v40 }
 0x252   :  { %1964 = vrot.lane.b32.xlu1 %v6569_v34, %s4699_s14  ;;  %1962 = vrot.lane.b32.xlu0 %v6574_v35, %s4699_s14 }
 0x253   :  { %4595 = vmatmul.mubr.msk.f32.gmra.mrb[10].mxu0 %vm3304_vm10, %v3239_v41  ;;  %v4231_v41 = vld [vmem:[%s7735_s0 + $0x2aa] sm:$0xff] }
 0x254   :  { %v1531_v52 = vpop.permute.xlu1 %1530  ;;  %v1529_v53 = vpop.permute.xlu0 %1528  ;;  %v3240_v57 = vld [vmem:[#allocation2 + $0x60] sm:$0xff]  ;;  %v3241_v12 = vld [vmem:[#allocation2 + $0x68] sm:$0xff] }
 0x255   :  { %1610 = vst.msk [vmem:[#allocation2 + $0x88] sm:$0xff] %vm1592_vm9, %v1531_v52  ;;  %1609 = vst.msk [vmem:[#allocation2 + $0x80] sm:$0xff] %vm1592_vm9, %v1529_v53  ;;  %4597 = vmatprep.mubr.msk.f32.mxu0 %vm3304_vm10, %v3240_v57  ;;  %v4230_v52 = vld [vmem:[%s7735_s0 + $0x2a2] sm:$0xff] }
 0x256   :  { %1968 = vrot.lane.b32.xlu1 %v6587_v48, %s4699_s14  ;;  %1966 = vrot.lane.b32.xlu0 %v6592_v49, %s4699_s14 }
 0x257   :  { %4598 = vmatmul.mubr.msk.f32.gmra.mrb[12].mxu0 %vm3304_vm10, %v3241_v12 }
 0x258   :  { %v1535_v9 = vpop.permute.xlu1 %1534  ;;  %v1533_v10 = vpop.permute.xlu0 %1532  ;;  %v3242_v14 = vld [vmem:[#allocation2 + $0x70] sm:$0xff]  ;;  %v3243_v15 = vld [vmem:[#allocation2 + $0x78] sm:$0xff] }
 0x259   :  { %1612 = vst.msk [vmem:[#allocation2 + $0x98] sm:$0xff] %vm1592_vm9, %v1535_v9  ;;  %1611 = vst.msk [vmem:[#allocation2 + $0x90] sm:$0xff] %vm1592_vm9, %v1533_v10  ;;  %4600 = vmatprep.mubr.msk.f32.mxu0 %vm3304_vm10, %v3242_v14  ;;  %v4233_v10 = vld [vmem:[%s7735_s0 + $0x2c2] sm:$0xff]  ;;  %v4232_v14 = vld [vmem:[%s7735_s0 + $0x2ba] sm:$0xff] }
 0x25a   :  { %1972 = vrot.lane.b32.xlu1 %v6605_v16, %s4699_s14  ;;  %1970 = vrot.lane.b32.xlu0 %v6610_v8, %s4699_s14 }
 0x25b   :  { %4601 = vmatmul.mubr.msk.f32.gmra.mrb[14].mxu0 %vm3304_vm10, %v3243_v15 }
 0x25c   :  { %v1539_v29 = vpop.permute.xlu1 %1538  ;;  %v1537_v43 = vpop.permute.xlu0 %1536  ;;  %v3244_v46 = vld [vmem:[#allocation2 + $0x80] sm:$0xff]  ;;  %v3245_v47 = vld [vmem:[#allocation2 + $0x88] sm:$0xff] }
 0x25d   :  { %1614 = vst.msk [vmem:[#allocation2 + $0xa8] sm:$0xff] %vm1592_vm9, %v1539_v29  ;;  %1613 = vst.msk [vmem:[#allocation2 + $0xa0] sm:$0xff] %vm1592_vm9, %v1537_v43  ;;  %4603 = vmatprep.mubr.msk.f32.mxu0 %vm3304_vm10, %v3244_v46  ;;  %v4235_v46 = vld [vmem:[%s7735_s0 + $0x2da] sm:$0xff] }
 0x25e   :  { %1976 = vrot.lane.b32.xlu1 %v4225_v60, %s4699_s14  ;;  %1974 = vrot.lane.b32.xlu0 %v6626_v18, %s4699_s14 }
 0x25f   :  { %4604 = vmatmul.mubr.msk.f32.gmra.mrb[16].mxu0 %vm3304_vm10, %v3245_v47  ;;  %v4234_v47 = vld [vmem:[%s7735_s0 + $0x2d2] sm:$0xff] }
 0x260   :  { %v1543_v6 = vpop.permute.xlu1 %1542  ;;  %v1541_v19 = vpop.permute.xlu0 %1540  ;;  %v3246_v20 = vld [vmem:[#allocation2 + $0x90] sm:$0xff]  ;;  %v3247_v26 = vld [vmem:[#allocation2 + $0x98] sm:$0xff] }
 0x261   :  { %1616 = vst.msk [vmem:[#allocation2 + $0xb8] sm:$0xff] %vm1592_vm9, %v1543_v6  ;;  %1615 = vst.msk [vmem:[#allocation2 + $0xb0] sm:$0xff] %vm1592_vm9, %v1541_v19  ;;  %4606 = vmatprep.mubr.msk.f32.mxu0 %vm3304_vm10, %v3246_v20  ;;  %v4237_v20 = vld [vmem:[%s7735_s0 + $0x2f2] sm:$0xff] }
 0x262   :  { %1980 = vrot.lane.b32.xlu1 %v4227_v13, %s4699_s14  ;;  %1978 = vrot.lane.b32.xlu0 %v4226_v62, %s4699_s14 }
 0x263   :  { %4607 = vmatmul.mubr.msk.f32.gmra.mrb[18].mxu0 %vm3304_vm10, %v3247_v26  ;;  %v4236_v26 = vld [vmem:[%s7735_s0 + $0x2ea] sm:$0xff] }
 0x264   :  { %v1547_v33 = vpop.permute.xlu1 %1546  ;;  %v1545_v38 = vpop.permute.xlu0 %1544  ;;  %v3248_v39 = vld [vmem:[#allocation2 + $0xa0] sm:$0xff]  ;;  %v3249_v40 = vld [vmem:[#allocation2 + $0xa8] sm:$0xff] }
 0x265   :  { %1618 = vst.msk [vmem:[#allocation2 + $0xc8] sm:$0xff] %vm1592_vm9, %v1547_v33  ;;  %1617 = vst.msk [vmem:[#allocation2 + $0xc0] sm:$0xff] %vm1592_vm9, %v1545_v38  ;;  %4609 = vmatprep.mubr.msk.f32.mxu0 %vm3304_vm10, %v3248_v39  ;;  %v4239_v39 = vld [vmem:[%s7735_s0 + $0x30a] sm:$0xff] }
 0x266   :  { %1984 = vrot.lane.b32.xlu1 %v4229_v27, %s4699_s14  ;;  %1982 = vrot.lane.b32.xlu0 %v4228_v32, %s4699_s14 }
 0x267   :  { %4610 = vmatmul.mubr.msk.f32.gmra.mrb[20].mxu0 %vm3304_vm10, %v3249_v40  ;;  %v4238_v40 = vld [vmem:[%s7735_s0 + $0x302] sm:$0xff] }
 0x268   :  { %v1551_v53 = vpop.permute.xlu1 %1550  ;;  %v1549_v57 = vpop.permute.xlu0 %1548  ;;  %v3250_v12 = vld [vmem:[#allocation2 + $0xb0] sm:$0xff]  ;;  %v3251_v9 = vld [vmem:[#allocation2 + $0xb8] sm:$0xff] }
 0x269   :  { %1620 = vst.msk [vmem:[#allocation2 + $0xd8] sm:$0xff] %vm1592_vm9, %v1551_v53  ;;  %1619 = vst.msk [vmem:[#allocation2 + $0xd0] sm:$0xff] %vm1592_vm9, %v1549_v57  ;;  %4612 = vmatprep.mubr.msk.f32.mxu0 %vm3304_vm10, %v3250_v12  ;;  %v4241_v12 = vld [vmem:[%s7735_s0 + $0x322] sm:$0xff] }
 0x26a   :  { %1988 = vrot.lane.b32.xlu1 %v4231_v41, %s4699_s14  ;;  %1986 = vrot.lane.b32.xlu0 %v4230_v52, %s4699_s14 }
 0x26b   :  { %4613 = vmatmul.mubr.msk.f32.gmra.mrb[22].mxu0 %vm3304_vm10, %v3251_v9  ;;  %v4240_v9 = vld [vmem:[%s7735_s0 + $0x31a] sm:$0xff] }
 0x26c   :  { %v1555_v15 = vpop.permute.xlu1 %1554  ;;  %v1553_v60 = vpop.permute.xlu0 %1552  ;;  %v3252_v29 = vld [vmem:[#allocation2 + $0xc0] sm:$0xff]  ;;  %v3253_v43 = vld [vmem:[#allocation2 + $0xc8] sm:$0xff] }
 0x26d   :  { %1622 = vst.msk [vmem:[#allocation2 + $0xe8] sm:$0xff] %vm1592_vm9, %v1555_v15  ;;  %1621 = vst.msk [vmem:[#allocation2 + $0xe0] sm:$0xff] %vm1592_vm9, %v1553_v60  ;;  %4615 = vmatprep.mubr.msk.f32.mxu0 %vm3304_vm10, %v3252_v29 }
 0x26e   :  { %1992 = vrot.lane.b32.xlu1 %v4233_v10, %s4699_s14  ;;  %1990 = vrot.lane.b32.xlu0 %v4232_v14, %s4699_s14 }
 0x26f   :  { %4616 = vmatmul.mubr.msk.f32.gmra.mrb[24].mxu0 %vm3304_vm10, %v3253_v43 }
 0x270   :  { %v1559_v13 = vpop.permute.xlu1 %1558  ;;  %v1557_v62 = vpop.permute.xlu0 %1556  ;;  %v3254_v6 = vld [vmem:[#allocation2 + $0xd0] sm:$0xff]  ;;  %v3255_v19 = vld [vmem:[#allocation2 + $0xd8] sm:$0xff] }
 0x271   :  { %1624 = vst.msk [vmem:[#allocation2 + $0xf8] sm:$0xff] %vm1592_vm9, %v1559_v13  ;;  %1623 = vst.msk [vmem:[#allocation2 + $0xf0] sm:$0xff] %vm1592_vm9, %v1557_v62  ;;  %4618 = vmatprep.mubr.msk.f32.mxu0 %vm3304_vm10, %v3254_v6 }
 0x272   :  { %1996 = vrot.lane.b32.xlu1 %v4235_v46, %s4699_s14  ;;  %1994 = vrot.lane.b32.xlu0 %v4234_v47, %s4699_s14 }
 0x273   :  { %4619 = vmatmul.mubr.msk.f32.gmra.mrb[26].mxu0 %vm3304_vm10, %v3255_v19 }
 0x274   :  { %v1757_v27 = vpop.permute.xlu1 %1756  ;;  %v1755_v32 = vpop.permute.xlu0 %1754  ;;  %v3256_v33 = vld [vmem:[#allocation2 + $0xe0] sm:$0xff]  ;;  %v3257_v38 = vld [vmem:[#allocation2 + $0xe8] sm:$0xff] }
 0x275   :  { %1851 = vst.msk [vmem:[#allocation2 + $0x108] sm:$0xff] %vm239_vm1, %v1757_v27  ;;  %1850 = vst.msk [vmem:[#allocation2 + $0x100] sm:$0xff] %vm239_vm1, %v1755_v32  ;;  %4621 = vmatprep.mubr.msk.f32.mxu0 %vm3304_vm10, %v3256_v33 }
 0x276   :  { %2000 = vrot.lane.b32.xlu1 %v4237_v20, %s4699_s14  ;;  %1998 = vrot.lane.b32.xlu0 %v4236_v26, %s4699_s14 }
 0x277   :  { %4622 = vmatmul.mubr.msk.f32.gmra.mrb[28].mxu0 %vm3304_vm10, %v3257_v38 }
 0x278   :  { %v1761_v41 = vpop.permute.xlu1 %1760  ;;  %v1759_v52 = vpop.permute.xlu0 %1758  ;;  %v3258_v53 = vld [vmem:[#allocation2 + $0xf0] sm:$0xff]  ;;  %v3259_v57 = vld [vmem:[#allocation2 + $0xf8] sm:$0xff] }
 0x279   :  { %1853 = vst.msk [vmem:[#allocation2 + $0x118] sm:$0xff] %vm239_vm1, %v1761_v41  ;;  %1852 = vst.msk [vmem:[#allocation2 + $0x110] sm:$0xff] %vm239_vm1, %v1759_v52  ;;  %4624 = vmatprep.mubr.msk.f32.mxu0 %vm3304_vm10, %v3258_v53 }
 0x27a   :  { %2004 = vrot.lane.b32.xlu1 %v4239_v39, %s4699_s14  ;;  %2002 = vrot.lane.b32.xlu0 %v4238_v40, %s4699_s14 }
 0x27b   :  { %4625 = vmatmul.mubr.msk.f32.gmra.mrb[30].mxu0 %vm3304_vm10, %v3259_v57 }
 0x27c   :  { %v1765_v10 = vpop.permute.xlu1 %1764  ;;  %v1763_v14 = vpop.permute.xlu0 %1762 }
 0x27d   :  { %1855 = vst.msk [vmem:[#allocation2 + $0x128] sm:$0xff] %vm239_vm1, %v1765_v10  ;;  %1854 = vst.msk [vmem:[#allocation2 + $0x120] sm:$0xff] %vm239_vm1, %v1763_v14 }
 0x27e   :  { %2008 = vrot.lane.b32.xlu1 %v4241_v12, %s4699_s14  ;;  %2006 = vrot.lane.b32.xlu0 %v4240_v9, %s4699_s14 }
 0x280   :  { %v1769_v15 = vpop.permute.xlu1 %1768  ;;  %v1767_v60 = vpop.permute.xlu0 %1766 }
 0x281   :  { %1857 = vst.msk [vmem:[#allocation2 + $0x138] sm:$0xff] %vm239_vm1, %v1769_v15  ;;  %1856 = vst.msk [vmem:[#allocation2 + $0x130] sm:$0xff] %vm239_vm1, %v1767_v60 }
 0x282   :  { %2141 = vrot.lane.b32.xlu1 %v6130_v11, %s4700_s26  ;;  %2139 = vrot.lane.b32.xlu0 %v6137_v61, %s4700_s26 }
 0x284   :  { %v1773_v29 = vpop.permute.xlu1 %1772  ;;  %v1771_v43 = vpop.permute.xlu0 %1770 }
 0x285   :  { %1859 = vst.msk [vmem:[#allocation2 + $0x148] sm:$0xff] %vm239_vm1, %v1773_v29  ;;  %1858 = vst.msk [vmem:[#allocation2 + $0x140] sm:$0xff] %vm239_vm1, %v1771_v43 }
 0x286   :  { %2145 = vrot.lane.b32.xlu1 %v6156_v21, %s4700_s26  ;;  %2143 = vrot.lane.b32.xlu0 %v6163_v63, %s4700_s26 }
 0x288   :  { %v1777_v46 = vpop.permute.xlu1 %1776  ;;  %v1775_v47 = vpop.permute.xlu0 %1774 }
 0x289   :  { %1861 = vst.msk [vmem:[#allocation2 + $0x158] sm:$0xff] %vm239_vm1, %v1777_v46  ;;  %1860 = vst.msk [vmem:[#allocation2 + $0x150] sm:$0xff] %vm239_vm1, %v1775_v47  ;;  %v4374_v47 = vld [vmem:[%s7735_s0 + $0x211] sm:$0xff] }
 0x28a   :  { %2149 = vrot.lane.b32.xlu1 %v6174_v1, %s4700_s26  ;;  %2147 = vrot.lane.b32.xlu0 %v6187_v50, %s4700_s26 }
 0x28c   :  { %v1781_v11 = vpop.permute.xlu1 %1780  ;;  %v1779_v61 = vpop.permute.xlu0 %1778 }
 0x28d   :  { %1863 = vst.msk [vmem:[#allocation2 + $0x168] sm:$0xff] %vm239_vm1, %v1781_v11  ;;  %1862 = vst.msk [vmem:[#allocation2 + $0x160] sm:$0xff] %vm239_vm1, %v1779_v61 }
 0x28e   :  { %2153 = vrot.lane.b32.xlu1 %v6198_v51, %s4700_s26  ;;  %2151 = vrot.lane.b32.xlu0 %v6215_v59, %s4700_s26 }
 0x290   :  { %v1785_v13 = vpop.permute.xlu1 %1784  ;;  %v1783_v62 = vpop.permute.xlu0 %1782 }
 0x291   :  { %1865 = vst.msk [vmem:[#allocation2 + $0x178] sm:$0xff] %vm239_vm1, %v1785_v13  ;;  %1864 = vst.msk [vmem:[#allocation2 + $0x170] sm:$0xff] %vm239_vm1, %v1783_v62 }
 0x292   :  { %2157 = vrot.lane.b32.xlu1 %v6228_v3, %s4700_s26  ;;  %2155 = vrot.lane.b32.xlu0 %v6245_v4, %s4700_s26 }
 0x294   :  { %v1789_v6 = vpop.permute.xlu1 %1788  ;;  %v1787_v19 = vpop.permute.xlu0 %1786 }
 0x295   :  { %1867 = vst.msk [vmem:[#allocation2 + $0x188] sm:$0xff] %vm239_vm1, %v1789_v6  ;;  %1866 = vst.msk [vmem:[#allocation2 + $0x180] sm:$0xff] %vm239_vm1, %v1787_v19 }
 0x296   :  { %2161 = vrot.lane.b32.xlu1 %v6258_v5, %s4700_s26  ;;  %2159 = vrot.lane.b32.xlu0 %v6273_v22, %s4700_s26 }
 0x298   :  { %v1793_v20 = vpop.permute.xlu1 %1792  ;;  %v1791_v26 = vpop.permute.xlu0 %1790 }
 0x299   :  { %1869 = vst.msk [vmem:[#allocation2 + $0x198] sm:$0xff] %vm239_vm1, %v1793_v20  ;;  %1868 = vst.msk [vmem:[#allocation2 + $0x190] sm:$0xff] %vm239_vm1, %v1791_v26  ;;  %v4376_v26 = vld [vmem:[%s7735_s0 + $0x229] sm:$0xff] }
 0x29a   :  { %2165 = vrot.lane.b32.xlu1 %v6285_v23, %s4700_s26  ;;  %2163 = vrot.lane.b32.xlu0 %v6298_v28, %s4700_s26 }
 0x29c   :  { %v1797_v27 = vpop.permute.xlu1 %1796  ;;  %v1795_v32 = vpop.permute.xlu0 %1794 }
 0x29d   :  { %1871 = vst.msk [vmem:[#allocation2 + $0x1a8] sm:$0xff] %vm239_vm1, %v1797_v27  ;;  %1870 = vst.msk [vmem:[#allocation2 + $0x1a0] sm:$0xff] %vm239_vm1, %v1795_v32 }
 0x29e   :  { %2169 = vrot.lane.b32.xlu1 %v6309_v31, %s4700_s26  ;;  %2167 = vrot.lane.b32.xlu0 %v6322_v36, %s4700_s26 }
 0x2a0   :  { %v1801_v33 = vpop.permute.xlu1 %1800  ;;  %v1799_v38 = vpop.permute.xlu0 %1798 }
 0x2a1   :  { %1873 = vst.msk [vmem:[#allocation2 + $0x1b8] sm:$0xff] %vm239_vm1, %v1801_v33  ;;  %1872 = vst.msk [vmem:[#allocation2 + $0x1b0] sm:$0xff] %vm239_vm1, %v1799_v38 }
 0x2a2   :  { %2173 = vrot.lane.b32.xlu1 %v6333_v37, %s4700_s26  ;;  %2171 = vrot.lane.b32.xlu0 %v6346_v44, %s4700_s26 }
 0x2a4   :  { %v1805_v39 = vpop.permute.xlu1 %1804  ;;  %v1803_v40 = vpop.permute.xlu0 %1802 }
 0x2a5   :  { %1875 = vst.msk [vmem:[#allocation2 + $0x1c8] sm:$0xff] %vm239_vm1, %v1805_v39  ;;  %1874 = vst.msk [vmem:[#allocation2 + $0x1c0] sm:$0xff] %vm239_vm1, %v1803_v40 }
 0x2a6   :  { %2331 = vrot.lane.b32.xlu1 %v6208_v55, %s4701_s4  ;;  %2175 = vrot.lane.b32.xlu0 %v6370_v56, %s4700_s26 }
 0x2a8   :  { %v1809_v41 = vpop.permute.xlu1 %1808  ;;  %v1807_v52 = vpop.permute.xlu0 %1806 }
 0x2a9   :  { %1877 = vst.msk [vmem:[#allocation2 + $0x1d8] sm:$0xff] %vm239_vm1, %v1809_v41  ;;  %1876 = vst.msk [vmem:[#allocation2 + $0x1d0] sm:$0xff] %vm239_vm1, %v1807_v52  ;;  %v4378_v52 = vld [vmem:[%s7735_s0 + $0x241] sm:$0xff] }
 0x2aa   :  { %2523 = vrot.lane.b32.xlu1 %v6520_v42, %s4702_s9  ;;  %2333 = vrot.lane.b32.xlu0 %v6203_v54, %s4701_s4 }
 0x2ac   :  { %v1813_v53 = vpop.permute.xlu1 %1812  ;;  %v1811_v57 = vpop.permute.xlu0 %1810 }
 0x2ad   :  { %1879 = vst.msk [vmem:[#allocation2 + $0x1e8] sm:$0xff] %vm239_vm1, %v1813_v53  ;;  %1878 = vst.msk [vmem:[#allocation2 + $0x1e0] sm:$0xff] %vm239_vm1, %v1811_v57 }
 0x2ae   :  { %2716 = vrot.lane.b32.xlu1 %v6163_v63, %s4703_s15  ;;  %2525 = vrot.lane.b32.xlu0 %v6515_v30, %s4702_s9 }
 0x2b0   :  { %v1817_v55 = vpop.permute.xlu1 %1816  ;;  %v1815_v12 = vpop.permute.xlu0 %1814 }
 0x2b1   :  { %1881 = vst.msk [vmem:[#allocation2 + $0x1f8] sm:$0xff] %vm239_vm1, %v1817_v55  ;;  %1880 = vst.msk [vmem:[#allocation2 + $0x1f0] sm:$0xff] %vm239_vm1, %v1815_v12 }
 0x2b2   :  { %2908 = vrot.lane.b32.xlu1 %v6238_v2, %s4704_s25  ;;  %2718 = vrot.lane.b32.xlu0 %v6156_v21, %s4703_s15 }
 0x2b4   :  { %v1949_v54 = vpop.permute.xlu1 %1948  ;;  %v1947_v42 = vpop.permute.xlu0 %1946 }
 0x2b5   :  { %2043 = vst.msk [vmem:[#allocation2 + $0x108] sm:$0xff] %vm432_vm2, %v1949_v54  ;;  %2042 = vst.msk [vmem:[#allocation2 + $0x100] sm:$0xff] %vm432_vm2, %v1947_v42 }
 0x2b6   :  { %2910 = vrot.lane.b32.xlu1 %v6233_v0, %s4704_s25  ;;  %2335 = vrot.lane.b32.xlu0 %v6238_v2, %s4701_s4 }
 0x2b8   :  { %v1953_v63 = vpop.permute.xlu1 %1952  ;;  %v1951_v30 = vpop.permute.xlu0 %1950 }
 0x2b9   :  { %2045 = vst.msk [vmem:[#allocation2 + $0x118] sm:$0xff] %vm432_vm2, %v1953_v63  ;;  %2044 = vst.msk [vmem:[#allocation2 + $0x110] sm:$0xff] %vm432_vm2, %v1951_v30  ;;  %v6957_v30 = vld [vmem:[%s7737_s2] ss:$0 sm:$0xff] }
 0x2ba   :  { %2337 = vrot.lane.b32.xlu1 %v6233_v0, %s4701_s4  ;;  %3100 = vrot.lane.b32.xlu0 %v6538_v17, %s4705_s11 }
 0x2bc   :  { %v1957_v21 = vpop.permute.xlu1 %1956  ;;  %v1955_v9 = vpop.permute.xlu0 %1954 }
 0x2bd   :  { %2047 = vst.msk [vmem:[#allocation2 + $0x128] sm:$0xff] %vm432_vm2, %v1957_v21  ;;  %2046 = vst.msk [vmem:[#allocation2 + $0x120] sm:$0xff] %vm432_vm2, %v1955_v9 }
 0x2be   :  { %3102 = vrot.lane.b32.xlu1 %v6533_v58, %s4705_s11  ;;  %2527 = vrot.lane.b32.xlu0 %v6538_v17, %s4702_s9  ;;  %v4373_v17 = vld [vmem:[%s7735_s0 + $0x201] sm:$0xff] }
 0x2c0   :  { %v1961_v2 = vpop.permute.xlu1 %1960  ;;  %v1959_v10 = vpop.permute.xlu0 %1958 }
 0x2c1   :  { %2049 = vst.msk [vmem:[#allocation2 + $0x138] sm:$0xff] %vm432_vm2, %v1961_v2  ;;  %2048 = vst.msk [vmem:[#allocation2 + $0x130] sm:$0xff] %vm432_vm2, %v1959_v10  ;;  %v4380_v2 = vld [vmem:[%s7735_s0 + $0x259] sm:$0xff] }
 0x2c2   :  { %2720 = vrot.lane.b32.xlu1 %v6187_v50, %s4703_s15  ;;  %2529 = vrot.lane.b32.xlu0 %v6533_v58, %s4702_s9  ;;  %v4278_v50 = vld [vmem:[%s7735_s0 + $0x1f9] sm:$0xff] }
 0x2c4   :  { %v1965_v0 = vpop.permute.xlu1 %1964  ;;  %v1963_v14 = vpop.permute.xlu0 %1962 }
 0x2c5   :  { %2051 = vst.msk [vmem:[#allocation2 + $0x148] sm:$0xff] %vm432_vm2, %v1965_v0  ;;  %2050 = vst.msk [vmem:[#allocation2 + $0x140] sm:$0xff] %vm432_vm2, %v1963_v14 }
 0x2c6   :  { %2912 = vrot.lane.b32.xlu1 %v6266_v7, %s4704_s25  ;;  %2722 = vrot.lane.b32.xlu0 %v6174_v1, %s4703_s15 }
 0x2c8   :  { %v1969_v58 = vpop.permute.xlu1 %1968  ;;  %v1967_v15 = vpop.permute.xlu0 %1966 }
 0x2c9   :  { %2053 = vst.msk [vmem:[#allocation2 + $0x158] sm:$0xff] %vm432_vm2, %v1969_v58  ;;  %2052 = vst.msk [vmem:[#allocation2 + $0x150] sm:$0xff] %vm432_vm2, %v1967_v15 }
 0x2ca   :  { %2914 = vrot.lane.b32.xlu1 %v4373_v17, %s4704_s25  ;;  %2339 = vrot.lane.b32.xlu0 %v4278_v50, %s4701_s4  ;;  %v4381_v50 = vld [vmem:[%s7735_s0 + $0x261] sm:$0xff] }
 0x2cc   :  { %v1973_v7 = vpop.permute.xlu1 %1972  ;;  %v1971_v1 = vpop.permute.xlu0 %1970 }
 0x2cd   :  { %2055 = vst.msk [vmem:[#allocation2 + $0x168] sm:$0xff] %vm432_vm2, %v1973_v7  ;;  %2054 = vst.msk [vmem:[#allocation2 + $0x160] sm:$0xff] %vm432_vm2, %v1971_v1 }
 0x2ce   :  { %2341 = vrot.lane.b32.xlu1 %v4373_v17, %s4701_s4  ;;  %3104 = vrot.lane.b32.xlu0 %v6556_v25, %s4705_s11 }
 0x2d0   :  { %v1977_v60 = vpop.permute.xlu1 %1976  ;;  %v1975_v29 = vpop.permute.xlu0 %1974 }
 0x2d1   :  { %2057 = vst.msk [vmem:[#allocation2 + $0x178] sm:$0xff] %vm432_vm2, %v1977_v60  ;;  %2056 = vst.msk [vmem:[#allocation2 + $0x170] sm:$0xff] %vm432_vm2, %v1975_v29 }
 0x2d2   :  { %3106 = vrot.lane.b32.xlu1 %v6551_v24, %s4705_s11  ;;  %2531 = vrot.lane.b32.xlu0 %v6556_v25, %s4702_s9 }
 0x2d4   :  { %v1981_v43 = vpop.permute.xlu1 %1980  ;;  %v1979_v46 = vpop.permute.xlu0 %1978 }
 0x2d5   :  { %2059 = vst.msk [vmem:[#allocation2 + $0x188] sm:$0xff] %vm432_vm2, %v1981_v43  ;;  %2058 = vst.msk [vmem:[#allocation2 + $0x180] sm:$0xff] %vm432_vm2, %v1979_v46 }
 0x2d6   :  { %2724 = vrot.lane.b32.xlu1 %v6215_v59, %s4703_s15  ;;  %2533 = vrot.lane.b32.xlu0 %v6551_v24, %s4702_s9  ;;  %v4375_v59 = vld [vmem:[%s7735_s0 + $0x219] sm:$0xff] }
 0x2d8   :  { %v1985_v11 = vpop.permute.xlu1 %1984  ;;  %v1983_v61 = vpop.permute.xlu0 %1982 }
 0x2d9   :  { %2061 = vst.msk [vmem:[#allocation2 + $0x198] sm:$0xff] %vm432_vm2, %v1985_v11  ;;  %2060 = vst.msk [vmem:[#allocation2 + $0x190] sm:$0xff] %vm432_vm2, %v1983_v61 }
 0x2da   :  { %2916 = vrot.lane.b32.xlu1 %v4374_v47, %s4704_s25  ;;  %2726 = vrot.lane.b32.xlu0 %v6198_v51, %s4703_s15 }
 0x2dc   :  { %v1989_v24 = vpop.permute.xlu1 %1988  ;;  %v1987_v25 = vpop.permute.xlu0 %1986 }
 0x2dd   :  { %2063 = vst.msk [vmem:[#allocation2 + $0x1a8] sm:$0xff] %vm432_vm2, %v1989_v24  ;;  %2062 = vst.msk [vmem:[#allocation2 + $0x1a0] sm:$0xff] %vm432_vm2, %v1987_v25  ;;  %v4318_v24 = vld [vmem:[%s7735_s0 + $0x25a] sm:$0xff] }
 0x2de   :  { %2918 = vrot.lane.b32.xlu1 %v4375_v59, %s4704_s25  ;;  %2343 = vrot.lane.b32.xlu0 %v4374_v47, %s4701_s4 }
 0x2e0   :  { %v1993_v13 = vpop.permute.xlu1 %1992  ;;  %v1991_v62 = vpop.permute.xlu0 %1990 }
 0x2e1   :  { %2065 = vst.msk [vmem:[#allocation2 + $0x1b8] sm:$0xff] %vm432_vm2, %v1993_v13  ;;  %2064 = vst.msk [vmem:[#allocation2 + $0x1b0] sm:$0xff] %vm432_vm2, %v1991_v62 }
 0x2e2   :  { %2345 = vrot.lane.b32.xlu1 %v4375_v59, %s4701_s4  ;;  %3108 = vrot.lane.b32.xlu0 %v6574_v35, %s4705_s11  ;;  %v4413_v59 = vld [vmem:[%s7735_s0 + $0x262] sm:$0xff] }
 0x2e4   :  { %v1997_v51 = vpop.permute.xlu1 %1996  ;;  %v1995_v6 = vpop.permute.xlu0 %1994 }
 0x2e5   :  { %2067 = vst.msk [vmem:[#allocation2 + $0x1c8] sm:$0xff] %vm432_vm2, %v1997_v51  ;;  %2066 = vst.msk [vmem:[#allocation2 + $0x1c0] sm:$0xff] %vm432_vm2, %v1995_v6 }
 0x2e6   :  { %3110 = vrot.lane.b32.xlu1 %v6569_v34, %s4705_s11  ;;  %2535 = vrot.lane.b32.xlu0 %v6574_v35, %s4702_s9 }
 0x2e8   :  { %v2001_v19 = vpop.permute.xlu1 %2000  ;;  %v1999_v20 = vpop.permute.xlu0 %1998 }
 0x2e9   :  { %2069 = vst.msk [vmem:[#allocation2 + $0x1d8] sm:$0xff] %vm432_vm2, %v2001_v19  ;;  %2068 = vst.msk [vmem:[#allocation2 + $0x1d0] sm:$0xff] %vm432_vm2, %v1999_v20 }
 0x2ea   :  { %2728 = vrot.lane.b32.xlu1 %v6245_v4, %s4703_s15  ;;  %2537 = vrot.lane.b32.xlu0 %v6569_v34, %s4702_s9  ;;  %v4377_v4 = vld [vmem:[%s7735_s0 + $0x231] sm:$0xff] }
 0x2ec   :  { %v2005_v27 = vpop.permute.xlu1 %2004  ;;  %v2003_v32 = vpop.permute.xlu0 %2002 }
 0x2ed   :  { %2071 = vst.msk [vmem:[#allocation2 + $0x1e8] sm:$0xff] %vm432_vm2, %v2005_v27  ;;  %2070 = vst.msk [vmem:[#allocation2 + $0x1e0] sm:$0xff] %vm432_vm2, %v2003_v32 }
 0x2ee   :  { %2920 = vrot.lane.b32.xlu1 %v4376_v26, %s4704_s25  ;;  %2730 = vrot.lane.b32.xlu0 %v6228_v3, %s4703_s15 }
 0x2f0   :  { %v2009_v34 = vpop.permute.xlu1 %2008  ;;  %v2007_v35 = vpop.permute.xlu0 %2006 }
 0x2f1   :  { %2073 = vst.msk [vmem:[#allocation2 + $0x1f8] sm:$0xff] %vm432_vm2, %v2009_v34  ;;  %2072 = vst.msk [vmem:[#allocation2 + $0x1f0] sm:$0xff] %vm432_vm2, %v2007_v35  ;;  %v4382_v34 = vld [vmem:[%s7735_s0 + $0x271] sm:$0xff] }
 0x2f2   :  { %2922 = vrot.lane.b32.xlu1 %v4377_v4, %s4704_s25  ;;  %2347 = vrot.lane.b32.xlu0 %v4376_v26, %s4701_s4 }
 0x2f4   :  { %v2142_v33 = vpop.permute.xlu1 %2141  ;;  %v2140_v38 = vpop.permute.xlu0 %2139 }
 0x2f5   :  { %2236 = vst.msk [vmem:[#allocation2 + $0x108] sm:$0xff] %vm626_vm3, %v2142_v33  ;;  %2235 = vst.msk [vmem:[#allocation2 + $0x100] sm:$0xff] %vm626_vm3, %v2140_v38 }
 0x2f6   :  { %2349 = vrot.lane.b32.xlu1 %v4377_v4, %s4701_s4  ;;  %3112 = vrot.lane.b32.xlu0 %v6592_v49, %s4705_s11 }
 0x2f8   :  { %v2146_v3 = vpop.permute.xlu1 %2145  ;;  %v2144_v39 = vpop.permute.xlu0 %2143 }
 0x2f9   :  { %2238 = vst.msk [vmem:[#allocation2 + $0x118] sm:$0xff] %vm626_vm3, %v2146_v3  ;;  %2237 = vst.msk [vmem:[#allocation2 + $0x110] sm:$0xff] %vm626_vm3, %v2144_v39 }
 0x2fa   :  { %3114 = vrot.lane.b32.xlu1 %v6587_v48, %s4705_s11  ;;  %2539 = vrot.lane.b32.xlu0 %v6592_v49, %s4702_s9 }
 0x2fc   :  { %v2150_v40 = vpop.permute.xlu1 %2149  ;;  %v2148_v41 = vpop.permute.xlu0 %2147 }
 0x2fd   :  { %2240 = vst.msk [vmem:[#allocation2 + $0x128] sm:$0xff] %vm626_vm3, %v2150_v40  ;;  %2239 = vst.msk [vmem:[#allocation2 + $0x120] sm:$0xff] %vm626_vm3, %v2148_v41  ;;  %v4383_v40 = vld [vmem:[%s7735_s0 + $0x279] sm:$0xff] }
 0x2fe   :  { %2732 = vrot.lane.b32.xlu1 %v6273_v22, %s4703_s15  ;;  %2541 = vrot.lane.b32.xlu0 %v6587_v48, %s4702_s9  ;;  %v4379_v22 = vld [vmem:[%s7735_s0 + $0x249] sm:$0xff] }
 0x300   :  { %v2154_v53 = vpop.permute.xlu1 %2153  ;;  %v2152_v57 = vpop.permute.xlu0 %2151 }
 0x301   :  { %2242 = vst.msk [vmem:[#allocation2 + $0x138] sm:$0xff] %vm626_vm3, %v2154_v53  ;;  %2241 = vst.msk [vmem:[#allocation2 + $0x130] sm:$0xff] %vm626_vm3, %v2152_v57 }
 0x302   :  { %2924 = vrot.lane.b32.xlu1 %v4378_v52, %s4704_s25  ;;  %2734 = vrot.lane.b32.xlu0 %v6258_v5, %s4703_s15 }
 0x304   :  { %v2158_v48 = vpop.permute.xlu1 %2157  ;;  %v2156_v49 = vpop.permute.xlu0 %2155 }
 0x305   :  { %2244 = vst.msk [vmem:[#allocation2 + $0x148] sm:$0xff] %vm626_vm3, %v2158_v48  ;;  %2243 = vst.msk [vmem:[#allocation2 + $0x140] sm:$0xff] %vm626_vm3, %v2156_v49  ;;  %v4414_v48 = vld [vmem:[%s7735_s0 + $0x272] sm:$0xff] }
 0x306   :  { %2926 = vrot.lane.b32.xlu1 %v4379_v22, %s4704_s25  ;;  %2351 = vrot.lane.b32.xlu0 %v4378_v52, %s4701_s4 }
 0x308   :  { %v2162_v55 = vpop.permute.xlu1 %2161  ;;  %v2160_v12 = vpop.permute.xlu0 %2159 }
 0x309   :  { %2246 = vst.msk [vmem:[#allocation2 + $0x158] sm:$0xff] %vm626_vm3, %v2162_v55  ;;  %2245 = vst.msk [vmem:[#allocation2 + $0x150] sm:$0xff] %vm626_vm3, %v2160_v12 }
 0x30a   :  { %2353 = vrot.lane.b32.xlu1 %v4379_v22, %s4701_s4  ;;  %3116 = vrot.lane.b32.xlu0 %v6610_v8, %s4705_s11 }
 0x30c   :  { %v2166_v5 = vpop.permute.xlu1 %2165  ;;  %v2164_v54 = vpop.permute.xlu0 %2163 }
 0x30d   :  { %2248 = vst.msk [vmem:[#allocation2 + $0x168] sm:$0xff] %vm626_vm3, %v2166_v5  ;;  %2247 = vst.msk [vmem:[#allocation2 + $0x160] sm:$0xff] %vm626_vm3, %v2164_v54 }
 0x30e   :  { %3118 = vrot.lane.b32.xlu1 %v6605_v16, %s4705_s11  ;;  %2543 = vrot.lane.b32.xlu0 %v6610_v8, %s4702_s9 }
 0x310   :  { %v2170_v42 = vpop.permute.xlu1 %2169  ;;  %v2168_v63 = vpop.permute.xlu0 %2167 }
 0x311   :  { %2250 = vst.msk [vmem:[#allocation2 + $0x178] sm:$0xff] %vm626_vm3, %v2170_v42  ;;  %2249 = vst.msk [vmem:[#allocation2 + $0x170] sm:$0xff] %vm626_vm3, %v2168_v63  ;;  %v4415_v63 = vld [vmem:[%s7735_s0 + $0x27a] sm:$0xff] }
 0x312   :  { %v4581_v21 = vpop.f32.mrb[0].mxu0  ;;  %2736 = vrot.lane.b32.xlu1 %v6298_v28, %s4703_s15  ;;  %2545 = vrot.lane.b32.xlu0 %v6605_v16, %s4702_s9 }
 0x313   :  { %v3573_v8 = vadd.f32 %v4581_v21, %v6957_v30  ;;  %v3567_v9 = vpop.f32.mrb[1].mxu0 }
 0x314   :  { %v3568_v10 = vadd.f32 %v6957_v30, %v3567_v9  ;;  %v2174_v0 = vpop.permute.xlu1 %2173  ;;  %v2172_v14 = vpop.permute.xlu0 %2171 }
 0x315   :  { %3887 = vst [vmem:[%s7738_s3 + $0x8] sm:$0xff] %v3573_v8  ;;  %2252 = vst.msk [vmem:[#allocation2 + $0x188] sm:$0xff] %vm626_vm3, %v2174_v0 }
 0x316   :  { %2251 = vst.msk [vmem:[#allocation2 + $0x180] sm:$0xff] %vm626_vm3, %v2172_v14  ;;  %3886 = vst [vmem:[%s7738_s3] sm:$0xff] %v3568_v10  ;;  %v4584_v28 = vpop.f32.mrb[2].mxu0  ;;  %2928 = vrot.lane.b32.xlu1 %v4380_v2, %s4704_s25  ;;  %2738 = vrot.lane.b32.xlu0 %v6285_v23, %s4703_s15 }
 0x317   :  { %v3583_v16 = vadd.f32 %v4584_v28, %v6957_v30  ;;  %v3577_v17 = vpop.f32.mrb[3].mxu0 }
 0x318   :  { %v3578_v58 = vadd.f32 %v6957_v30, %v3577_v17  ;;  %v2332_v15 = vpop.permute.xlu1 %2331  ;;  %v2176_v7 = vpop.permute.xlu0 %2175 }
 0x319   :  { %3889 = vst [vmem:[%s7738_s3 + $0x18] sm:$0xff] %v3583_v16  ;;  %2427 = vst.msk [vmem:[#allocation2 + $0x100] sm:$0xff] %vm819_vm4, %v2332_v15 }
 0x31a   :  { %2253 = vst.msk [vmem:[#allocation2 + $0x190] sm:$0xff] %vm626_vm3, %v2176_v7  ;;  %3888 = vst [vmem:[%s7738_s3 + $0x10] sm:$0xff] %v3578_v58  ;;  %v4587_v23 = vpop.f32.mrb[4].mxu0  ;;  %2930 = vrot.lane.b32.xlu1 %v4381_v50, %s4704_s25  ;;  %2355 = vrot.lane.b32.xlu0 %v4380_v2, %s4701_s4 }
 0x31b   :  { %v3593_v1 = vadd.f32 %v4587_v23, %v6957_v30  ;;  %v3587_v60 = vpop.f32.mrb[5].mxu0  ;;  %v4384_v23 = vld [vmem:[%s7735_s0 + $0x289] sm:$0xff] }
 0x31c   :  { %v3588_v29 = vadd.f32 %v6957_v30, %v3587_v60  ;;  %v2524_v43 = vpop.permute.xlu1 %2523  ;;  %v2334_v46 = vpop.permute.xlu0 %2333 }
 0x31d   :  { %3891 = vst [vmem:[%s7738_s3 + $0x28] sm:$0xff] %v3593_v1  ;;  %2619 = vst.msk [vmem:[#allocation2 + $0x100] sm:$0xff] %vm1012_vm5, %v2524_v43 }
 0x31e   :  { %2428 = vst.msk [vmem:[#allocation2 + $0x108] sm:$0xff] %vm819_vm4, %v2334_v46  ;;  %3890 = vst [vmem:[%s7738_s3 + $0x20] sm:$0xff] %v3588_v29  ;;  %v4590_v47 = vpop.f32.mrb[6].mxu0  ;;  %2357 = vrot.lane.b32.xlu1 %v4381_v50, %s4701_s4  ;;  %3120 = vrot.lane.b32.xlu0 %v6626_v18, %s4705_s11 }
 0x31f   :  { %v3603_v11 = vadd.f32 %v4590_v47, %v6957_v30  ;;  %v3597_v61 = vpop.f32.mrb[7].mxu0  ;;  %v4385_v47 = vld [vmem:[%s7735_s0 + $0x291] sm:$0xff] }
 0x320   :  { %v3598_v25 = vadd.f32 %v6957_v30, %v3597_v61  ;;  %v2717_v13 = vpop.permute.xlu1 %2716  ;;  %v2526_v62 = vpop.permute.xlu0 %2525 }
 0x321   :  { %3893 = vst [vmem:[%s7738_s3 + $0x38] sm:$0xff] %v3603_v11  ;;  %2812 = vst.msk [vmem:[#allocation2 + $0x100] sm:$0xff] %vm1206_vm6, %v2717_v13  ;;  %v4416_v13 = vld [vmem:[%s7735_s0 + $0x28a] sm:$0xff] }
 0x322   :  { %2620 = vst.msk [vmem:[#allocation2 + $0x108] sm:$0xff] %vm1012_vm5, %v2526_v62  ;;  %3892 = vst [vmem:[%s7738_s3 + $0x30] sm:$0xff] %v3598_v25  ;;  %v4593_v18 = vpop.f32.mrb[8].mxu0  ;;  %3122 = vrot.lane.b32.xlu1 %v4413_v59, %s4705_s11  ;;  %2547 = vrot.lane.b32.xlu0 %v4318_v24, %s4702_s9 }
 0x323   :  { %v3613_v51 = vadd.f32 %v4593_v18, %v6957_v30  ;;  %v3607_v6 = vpop.f32.mrb[9].mxu0 }
 0x324   :  { %v3608_v19 = vadd.f32 %v6957_v30, %v3607_v6  ;;  %v2909_v20 = vpop.permute.xlu1 %2908  ;;  %v2719_v26 = vpop.permute.xlu0 %2718 }
 0x325   :  { %3895 = vst [vmem:[%s7738_s3 + $0x48] sm:$0xff] %v3613_v51  ;;  %3004 = vst.msk [vmem:[#allocation2 + $0x100] sm:$0xff] %vm1399_vm8, %v2909_v20 }
 0x326   :  { %2813 = vst.msk [vmem:[#allocation2 + $0x108] sm:$0xff] %vm1206_vm6, %v2719_v26  ;;  %3894 = vst [vmem:[%s7738_s3 + $0x40] sm:$0xff] %v3608_v19  ;;  %v4596_v27 = vpop.f32.mrb[10].mxu0  ;;  %2740 = vrot.lane.b32.xlu1 %v6322_v36, %s4703_s15  ;;  %2549 = vrot.lane.b32.xlu0 %v4413_v59, %s4702_s9  ;;  %v4417_v26 = vld [vmem:[%s7735_s0 + $0x292] sm:$0xff] }
 0x327   :  { %v3623_v32 = vadd.f32 %v4596_v27, %v6957_v30  ;;  %v3617_v4 = vpop.f32.mrb[11].mxu0 }
 0x328   :  { %v3618_v35 = vadd.f32 %v6957_v30, %v3617_v4  ;;  %v2911_v33 = vpop.permute.xlu1 %2910  ;;  %v2336_v38 = vpop.permute.xlu0 %2335 }
 0x329   :  { %3897 = vst [vmem:[%s7738_s3 + $0x58] sm:$0xff] %v3623_v32  ;;  %3005 = vst.msk [vmem:[#allocation2 + $0x108] sm:$0xff] %vm1399_vm8, %v2911_v33 }
 0x32a   :  { %2429 = vst.msk [vmem:[#allocation2 + $0x110] sm:$0xff] %vm819_vm4, %v2336_v38  ;;  %3896 = vst [vmem:[%s7738_s3 + $0x50] sm:$0xff] %v3618_v35  ;;  %v4599_v36 = vpop.f32.mrb[12].mxu0  ;;  %2932 = vrot.lane.b32.xlu1 %v4382_v34, %s4704_s25  ;;  %2742 = vrot.lane.b32.xlu0 %v6309_v31, %s4703_s15 }
 0x32b   :  { %v3633_v3 = vadd.f32 %v4599_v36, %v6957_v30  ;;  %v3627_v39 = vpop.f32.mrb[13].mxu0 }
 0x32c   :  { %v3628_v41 = vadd.f32 %v6957_v30, %v3627_v39  ;;  %v2338_v52 = vpop.permute.xlu1 %2337  ;;  %v3101_v53 = vpop.permute.xlu0 %3100 }
 0x32d   :  { %3899 = vst [vmem:[%s7738_s3 + $0x68] sm:$0xff] %v3633_v3  ;;  %2430 = vst.msk [vmem:[#allocation2 + $0x118] sm:$0xff] %vm819_vm4, %v2338_v52 }
 0x32e   :  { %3196 = vst.msk [vmem:[#allocation2 + $0x100] sm:$0xff] %vm1592_vm9, %v3101_v53  ;;  %3898 = vst [vmem:[%s7738_s3 + $0x60] sm:$0xff] %v3628_v41  ;;  %v4602_v31 = vpop.f32.mrb[14].mxu0  ;;  %2934 = vrot.lane.b32.xlu1 %v4383_v40, %s4704_s25  ;;  %2359 = vrot.lane.b32.xlu0 %v4382_v34, %s4701_s4 }
 0x32f   :  { %v3643_v57 = vadd.f32 %v4602_v31, %v6957_v30  ;;  %v3637_v22 = vpop.f32.mrb[15].mxu0  ;;  %v4386_v31 = vld [vmem:[%s7735_s0 + $0x2a1] sm:$0xff] }
 0x330   :  { %v3638_v49 = vadd.f32 %v6957_v30, %v3637_v22  ;;  %v3103_v55 = vpop.permute.xlu1 %3102  ;;  %v2528_v12 = vpop.permute.xlu0 %2527 }
 0x331   :  { %3901 = vst [vmem:[%s7738_s3 + $0x78] sm:$0xff] %v3643_v57  ;;  %3197 = vst.msk [vmem:[#allocation2 + $0x108] sm:$0xff] %vm1592_vm9, %v3103_v55  ;;  %v4418_v55 = vld [vmem:[%s7735_s0 + $0x2a2] sm:$0xff] }
 0x332   :  { %2621 = vst.msk [vmem:[#allocation2 + $0x110] sm:$0xff] %vm1012_vm5, %v2528_v12  ;;  %3900 = vst [vmem:[%s7738_s3 + $0x70] sm:$0xff] %v3638_v49  ;;  %v4605_v5 = vpop.f32.mrb[16].mxu0  ;;  %2361 = vrot.lane.b32.xlu1 %v4383_v40, %s4701_s4  ;;  %3124 = vrot.lane.b32.xlu0 %v4414_v48, %s4705_s11  ;;  %v4387_v49 = vld [vmem:[%s7735_s0 + $0x2a9] sm:$0xff] }
 0x333   :  { %v3653_v54 = vadd.f32 %v4605_v5, %v6957_v30  ;;  %v3647_v42 = vpop.f32.mrb[17].mxu0 }
 0x334   :  { %v3648_v21 = vadd.f32 %v6957_v30, %v3647_v42  ;;  %v2721_v8 = vpop.permute.xlu1 %2720  ;;  %v2530_v9 = vpop.permute.xlu0 %2529 }
 0x335   :  { %v3260_v2 = vld [vmem:[#allocation2 + $0x100] sm:$0xff]  ;;  %3903 = vst [vmem:[%s7738_s3 + $0x88] sm:$0xff] %v3653_v54  ;;  %2814 = vst.msk [vmem:[#allocation2 + $0x110] sm:$0xff] %vm1206_vm6, %v2721_v8 }
 0x336   :  { %2622 = vst.msk [vmem:[#allocation2 + $0x118] sm:$0xff] %vm1012_vm5, %v2530_v9  ;;  %4627 = vmatprep.mubr.msk.f32.mxu1 %vm3304_vm10, %v3260_v2  ;;  %3902 = vst [vmem:[%s7738_s3 + $0x80] sm:$0xff] %v3648_v21  ;;  %v4608_v10 = vpop.f32.mrb[18].mxu0  ;;  %3126 = vrot.lane.b32.xlu1 %v4415_v63, %s4705_s11  ;;  %v4356_v2 = vld [vmem:[%s7735_s0 + $0x2b8] sm:$0xff] }
 0x337   :  { %2551 = vrot.lane.b32.xlu0 %v4414_v48, %s4702_s9  ;;  %v3663_v0 = vadd.f32 %v4608_v10, %v6957_v30  ;;  %v3657_v14 = vpop.f32.mrb[19].mxu0 }
 0x338   :  { %v3658_v28 = vadd.f32 %v6957_v30, %v3657_v14  ;;  %v2913_v16 = vpop.permute.xlu1 %2912  ;;  %v2723_v17 = vpop.permute.xlu0 %2722  ;;  %v3261_v50 = vld [vmem:[#allocation2 + $0x108] sm:$0xff]  ;;  %v4357_v14 = vld [vmem:[%s7735_s0 + $0x2c0] sm:$0xff] }
 0x339   :  { %3905 = vst [vmem:[%s7738_s3 + $0x98] sm:$0xff] %v3663_v0  ;;  %3006 = vst.msk [vmem:[#allocation2 + $0x110] sm:$0xff] %vm1399_vm8, %v2913_v16  ;;  %4628 = vmatmul.mubr.msk.f32.vlgmr.msra.gmra.mrb[0].mxu1 %vm3304_vm10, %v3261_v50 }
 0x33a   :  { %2815 = vst.msk [vmem:[#allocation2 + $0x118] sm:$0xff] %vm1206_vm6, %v2723_v17  ;;  %3904 = vst [vmem:[%s7738_s3 + $0x90] sm:$0xff] %v3658_v28  ;;  %v4611_v58 = vpop.f32.mrb[20].mxu0  ;;  %2744 = vrot.lane.b32.xlu1 %v6346_v44, %s4703_s15  ;;  %v4388_v28 = vld [vmem:[%s7735_s0 + $0x2b9] sm:$0xff] }
 0x33b   :  { %2553 = vrot.lane.b32.xlu0 %v4415_v63, %s4702_s9  ;;  %v3673_v15 = vadd.f32 %v4611_v58, %v6957_v30  ;;  %v3667_v7 = vpop.f32.mrb[21].mxu0  ;;  %v4419_v63 = vld [vmem:[%s7735_s0 + $0x2aa] sm:$0xff] }
 0x33c   :  { %v3668_v1 = vadd.f32 %v6957_v30, %v3667_v7  ;;  %v2915_v60 = vpop.permute.xlu1 %2914  ;;  %v2340_v29 = vpop.permute.xlu0 %2339  ;;  %v4420_v7 = vld [vmem:[%s7735_s0 + $0x2ba] sm:$0xff] }
 0x33d   :  { %3907 = vst [vmem:[%s7738_s3 + $0xa8] sm:$0xff] %v3673_v15  ;;  %3007 = vst.msk [vmem:[#allocation2 + $0x118] sm:$0xff] %vm1399_vm8, %v2915_v60  ;;  %v4389_v15 = vld [vmem:[%s7735_s0 + $0x2c1] sm:$0xff] }
 0x33e   :  { %2431 = vst.msk [vmem:[#allocation2 + $0x120] sm:$0xff] %vm819_vm4, %v2340_v29  ;;  %3906 = vst [vmem:[%s7738_s3 + $0xa0] sm:$0xff] %v3668_v1  ;;  %v4614_v44 = vpop.f32.mrb[22].mxu0  ;;  %2936 = vrot.lane.b32.xlu1 %v4384_v23, %s4704_s25 }
 0x33f   :  { %2746 = vrot.lane.b32.xlu0 %v6333_v37, %s4703_s15  ;;  %v3683_v43 = vadd.f32 %v4614_v44, %v6957_v30  ;;  %v3677_v46 = vpop.f32.mrb[23].mxu0 }
 0x340   :  { %v3678_v11 = vadd.f32 %v6957_v30, %v3677_v46  ;;  %v2342_v61 = vpop.permute.xlu1 %2341  ;;  %v3105_v59 = vpop.permute.xlu0 %3104  ;;  %v4421_v46 = vld [vmem:[%s7735_s0 + $0x2c2] sm:$0xff] }
 0x341   :  { %3909 = vst [vmem:[%s7738_s3 + $0xb8] sm:$0xff] %v3683_v43  ;;  %2432 = vst.msk [vmem:[#allocation2 + $0x128] sm:$0xff] %vm819_vm4, %v2342_v61  ;;  %v4358_v61 = vld [vmem:[%s7735_s0 + $0x2d0] sm:$0xff] }
 0x342   :  { %3198 = vst.msk [vmem:[#allocation2 + $0x110] sm:$0xff] %vm1592_vm9, %v3105_v59  ;;  %3908 = vst [vmem:[%s7738_s3 + $0xb0] sm:$0xff] %v3678_v11  ;;  %v4617_v37 = vpop.f32.mrb[24].mxu0  ;;  %2938 = vrot.lane.b32.xlu1 %v4385_v47, %s4704_s25 }
 0x343   :  { %2363 = vrot.lane.b32.xlu0 %v4384_v23, %s4701_s4  ;;  %v3693_v24 = vadd.f32 %v4617_v37, %v6957_v30  ;;  %v3687_v25 = vpop.f32.mrb[25].mxu0 }
 0x344   :  { %v3688_v62 = vadd.f32 %v6957_v30, %v3687_v25  ;;  %v3107_v18 = vpop.permute.xlu1 %3106  ;;  %v2532_v51 = vpop.permute.xlu0 %2531  ;;  %v4390_v25 = vld [vmem:[%s7735_s0 + $0x2d1] sm:$0xff] }
 0x345   :  { %3911 = vst [vmem:[%s7738_s3 + $0xc8] sm:$0xff] %v3693_v24  ;;  %3199 = vst.msk [vmem:[#allocation2 + $0x118] sm:$0xff] %vm1592_vm9, %v3107_v18  ;;  %v4359_v24 = vld [vmem:[%s7735_s0 + $0x2d8] sm:$0xff] }
 0x346   :  { %2623 = vst.msk [vmem:[#allocation2 + $0x120] sm:$0xff] %vm1012_vm5, %v2532_v51  ;;  %3910 = vst [vmem:[%s7738_s3 + $0xc0] sm:$0xff] %v3688_v62  ;;  %v4620_v6 = vpop.f32.mrb[26].mxu0  ;;  %2365 = vrot.lane.b32.xlu1 %v4385_v47, %s4701_s4 }
 0x347   :  { %3128 = vrot.lane.b32.xlu0 %v4416_v13, %s4705_s11  ;;  %v3703_v19 = vadd.f32 %v4620_v6, %v6957_v30  ;;  %v3697_v20 = vpop.f32.mrb[27].mxu0 }
 0x348   :  { %v3698_v27 = vadd.f32 %v6957_v30, %v3697_v20  ;;  %v2725_v32 = vpop.permute.xlu1 %2724  ;;  %v2534_v4 = vpop.permute.xlu0 %2533  ;;  %v4422_v20 = vld [vmem:[%s7735_s0 + $0x2d2] sm:$0xff] }
 0x349   :  { %v3262_v34 = vld [vmem:[#allocation2 + $0x110] sm:$0xff]  ;;  %3913 = vst [vmem:[%s7738_s3 + $0xd8] sm:$0xff] %v3703_v19  ;;  %2816 = vst.msk [vmem:[#allocation2 + $0x120] sm:$0xff] %vm1206_vm6, %v2725_v32  ;;  %v4391_v19 = vld [vmem:[%s7735_s0 + $0x2d9] sm:$0xff] }
 0x34a   :  { %2624 = vst.msk [vmem:[#allocation2 + $0x128] sm:$0xff] %vm1012_vm5, %v2534_v4  ;;  %4630 = vmatprep.mubr.msk.f32.mxu1 %vm3304_vm10, %v3262_v34  ;;  %3912 = vst [vmem:[%s7738_s3 + $0xd0] sm:$0xff] %v3698_v27  ;;  %v4623_v35 = vpop.f32.mrb[28].mxu0  ;;  %3130 = vrot.lane.b32.xlu1 %v4417_v26, %s4705_s11 }
 0x34b   :  { %2555 = vrot.lane.b32.xlu0 %v4416_v13, %s4702_s9  ;;  %v3713_v33 = vadd.f32 %v4623_v35, %v6957_v30  ;;  %v3707_v38 = vpop.f32.mrb[29].mxu0  ;;  %v4423_v35 = vld [vmem:[%s7735_s0 + $0x2da] sm:$0xff] }
 0x34c   :  { %v3708_v36 = vadd.f32 %v6957_v30, %v3707_v38  ;;  %v2917_v3 = vpop.permute.xlu1 %2916  ;;  %v2727_v39 = vpop.permute.xlu0 %2726  ;;  %v3263_v40 = vld [vmem:[#allocation2 + $0x118] sm:$0xff] }
 0x34d   :  { %3915 = vst [vmem:[%s7738_s3 + $0xe8] sm:$0xff] %v3713_v33  ;;  %3008 = vst.msk [vmem:[#allocation2 + $0x120] sm:$0xff] %vm1399_vm8, %v2917_v3  ;;  %4631 = vmatmul.mubr.msk.f32.gmra.mrb[2].mxu1 %vm3304_vm10, %v3263_v40  ;;  %v4361_v40 = vld [vmem:[%s7735_s0 + $0x2f0] sm:$0xff] }
 0x34e   :  { %2817 = vst.msk [vmem:[#allocation2 + $0x128] sm:$0xff] %vm1206_vm6, %v2727_v39  ;;  %3914 = vst [vmem:[%s7738_s3 + $0xe0] sm:$0xff] %v3708_v36  ;;  %v4626_v41 = vpop.f32.mrb[30].mxu0  ;;  %2748 = vrot.lane.b32.xlu1 %v6370_v56, %s4703_s15  ;;  %v4360_v36 = vld [vmem:[%s7735_s0 + $0x2e8] sm:$0xff] }
 0x34f   :  { %2557 = vrot.lane.b32.xlu0 %v4417_v26, %s4702_s9  ;;  %v3723_v52 = vadd.f32 %v4626_v41, %v6957_v30  ;;  %v3717_v53 = vpop.f32.mrb[31].mxu0  ;;  %v4392_v41 = vld [vmem:[%s7735_s0 + $0x2e9] sm:$0xff] }
 0x350   :  { %v3718_v57 = vadd.f32 %v6957_v30, %v3717_v53  ;;  %v2919_v22 = vpop.permute.xlu1 %2918  ;;  %v2344_v48 = vpop.permute.xlu0 %2343 }
 0x351   :  { %3917 = vst [vmem:[%s7738_s3 + $0xf8] sm:$0xff] %v3723_v52  ;;  %3009 = vst.msk [vmem:[#allocation2 + $0x128] sm:$0xff] %vm1399_vm8, %v2919_v22 }
 0x352   :  { %2433 = vst.msk [vmem:[#allocation2 + $0x130] sm:$0xff] %vm819_vm4, %v2344_v48  ;;  %3916 = vst [vmem:[%s7738_s3 + $0xf0] sm:$0xff] %v3718_v57  ;;  %2940 = vrot.lane.b32.xlu1 %v4386_v31, %s4704_s25 }
 0x353   :  { %2750 = vrot.lane.b32.xlu0 %v6357_v45, %s4703_s15 }
 0x354   :  { %v2346_v56 = vpop.permute.xlu1 %2345  ;;  %v3109_v30 = vpop.permute.xlu0 %3108 }
 0x355   :  { %2434 = vst.msk [vmem:[#allocation2 + $0x138] sm:$0xff] %vm819_vm4, %v2346_v56  ;;  %v4393_v56 = vld [vmem:[%s7735_s0 + $0x2f1] sm:$0xff] }
 0x356   :  { %3200 = vst.msk [vmem:[#allocation2 + $0x120] sm:$0xff] %vm1592_vm9, %v3109_v30  ;;  %2367 = vrot.lane.b32.xlu1 %v4386_v31, %s4701_s4  ;;  %v4424_v30 = vld [vmem:[%s7735_s0 + $0x2ea] sm:$0xff] }
 0x357   :  { %2177 = vrot.lane.b32.xlu0 %v6357_v45, %s4700_s26 }
 0x358   :  { %v3111_v12 = vpop.permute.xlu1 %3110  ;;  %v2536_v5 = vpop.permute.xlu0 %2535 }
 0x359   :  { %3201 = vst.msk [vmem:[#allocation2 + $0x128] sm:$0xff] %vm1592_vm9, %v3111_v12 }
 0x35a   :  { %2625 = vst.msk [vmem:[#allocation2 + $0x130] sm:$0xff] %vm1012_vm5, %v2536_v5  ;;  %3132 = vrot.lane.b32.xlu1 %v4418_v55, %s4705_s11 }
 0x35b   :  { %2942 = vrot.lane.b32.xlu0 %v4387_v49, %s4704_s25 }
 0x35c   :  { %v2729_v45 = vpop.permute.xlu1 %2728  ;;  %v2538_v54 = vpop.permute.xlu0 %2537 }
 0x35d   :  { %v3264_v42 = vld [vmem:[#allocation2 + $0x120] sm:$0xff]  ;;  %2818 = vst.msk [vmem:[#allocation2 + $0x130] sm:$0xff] %vm1206_vm6, %v2729_v45  ;;  %v4425_v45 = vld [vmem:[%s7735_s0 + $0x2f2] sm:$0xff] }
 0x35e   :  { %2626 = vst.msk [vmem:[#allocation2 + $0x138] sm:$0xff] %vm1012_vm5, %v2538_v54  ;;  %4633 = vmatprep.mubr.msk.f32.mxu1 %vm3304_vm10, %v3264_v42  ;;  %2559 = vrot.lane.b32.xlu1 %v4418_v55, %s4702_s9 }
 0x35f   :  { %2369 = vrot.lane.b32.xlu0 %v4387_v49, %s4701_s4 }
 0x360   :  { %v2921_v21 = vpop.permute.xlu1 %2920  ;;  %v2731_v8 = vpop.permute.xlu0 %2730  ;;  %v3265_v9 = vld [vmem:[#allocation2 + $0x128] sm:$0xff] }
 0x361   :  { %3010 = vst.msk [vmem:[#allocation2 + $0x130] sm:$0xff] %vm1399_vm8, %v2921_v21  ;;  %4634 = vmatmul.mubr.msk.f32.gmra.mrb[4].mxu1 %vm3304_vm10, %v3265_v9 }
 0x362   :  { %2819 = vst.msk [vmem:[#allocation2 + $0x138] sm:$0xff] %vm1206_vm6, %v2731_v8  ;;  %2561 = vrot.lane.b32.xlu1 %v4419_v63, %s4702_s9 }
 0x363   :  { %3134 = vrot.lane.b32.xlu0 %v4419_v63, %s4705_s11  ;;  %v4362_v63 = vld [vmem:[%s7735_s0 + $0x300] sm:$0xff] }
 0x364   :  { %v2923_v10 = vpop.permute.xlu1 %2922  ;;  %v2348_v0 = vpop.permute.xlu0 %2347 }
 0x365   :  { %3011 = vst.msk [vmem:[#allocation2 + $0x138] sm:$0xff] %vm1399_vm8, %v2923_v10  ;;  %v4394_v10 = vld [vmem:[%s7735_s0 + $0x301] sm:$0xff] }
 0x366   :  { %2435 = vst.msk [vmem:[#allocation2 + $0x140] sm:$0xff] %vm819_vm4, %v2348_v0  ;;  %2179 = vrot.lane.b32.xlu1 %v4356_v2, %s4700_s26 }
 0x367   :  { %2752 = vrot.lane.b32.xlu0 %v4356_v2, %s4703_s15  ;;  %v4363_v2 = vld [vmem:[%s7735_s0 + $0x308] sm:$0xff] }
 0x368   :  { %v2350_v16 = vpop.permute.xlu1 %2349  ;;  %v3113_v17 = vpop.permute.xlu0 %3112 }
 0x369   :  { %2436 = vst.msk [vmem:[#allocation2 + $0x148] sm:$0xff] %vm819_vm4, %v2350_v16 }
 0x36a   :  { %3202 = vst.msk [vmem:[#allocation2 + $0x130] sm:$0xff] %vm1592_vm9, %v3113_v17  ;;  %2944 = vrot.lane.b32.xlu1 %v4388_v28, %s4704_s25 }
 0x36b   :  { %2754 = vrot.lane.b32.xlu0 %v4357_v14, %s4703_s15 }
 0x36c   :  { %v3115_v50 = vpop.permute.xlu1 %3114  ;;  %v2540_v58 = vpop.permute.xlu0 %2539 }
 0x36d   :  { %3203 = vst.msk [vmem:[#allocation2 + $0x138] sm:$0xff] %vm1592_vm9, %v3115_v50  ;;  %v4395_v50 = vld [vmem:[%s7735_s0 + $0x309] sm:$0xff] }
 0x36e   :  { %2627 = vst.msk [vmem:[#allocation2 + $0x140] sm:$0xff] %vm1012_vm5, %v2540_v58  ;;  %2371 = vrot.lane.b32.xlu1 %v4388_v28, %s4701_s4  ;;  %v4426_v58 = vld [vmem:[%s7735_s0 + $0x302] sm:$0xff] }
 0x36f   :  { %2181 = vrot.lane.b32.xlu0 %v4357_v14, %s4700_s26 }
 0x370   :  { %v2733_v23 = vpop.permute.xlu1 %2732  ;;  %v2542_v1 = vpop.permute.xlu0 %2541 }
 0x371   :  { %v3266_v60 = vld [vmem:[#allocation2 + $0x130] sm:$0xff]  ;;  %2820 = vst.msk [vmem:[#allocation2 + $0x140] sm:$0xff] %vm1206_vm6, %v2733_v23 }
 0x372   :  { %2628 = vst.msk [vmem:[#allocation2 + $0x148] sm:$0xff] %vm1012_vm5, %v2542_v1  ;;  %4636 = vmatprep.mubr.msk.f32.mxu1 %vm3304_vm10, %v3266_v60  ;;  %3136 = vrot.lane.b32.xlu1 %v4420_v7, %s4705_s11  ;;  %v4427_v60 = vld [vmem:[%s7735_s0 + $0x30a] sm:$0xff] }
 0x373   :  { %2946 = vrot.lane.b32.xlu0 %v4389_v15, %s4704_s25 }
 0x374   :  { %v2925_v29 = vpop.permute.xlu1 %2924  ;;  %v2735_v44 = vpop.permute.xlu0 %2734  ;;  %v3267_v43 = vld [vmem:[#allocation2 + $0x138] sm:$0xff] }
 0x375   :  { %3012 = vst.msk [vmem:[#allocation2 + $0x140] sm:$0xff] %vm1399_vm8, %v2925_v29  ;;  %4637 = vmatmul.mubr.msk.f32.gmra.mrb[6].mxu1 %vm3304_vm10, %v3267_v43 }
 0x376   :  { %2821 = vst.msk [vmem:[#allocation2 + $0x148] sm:$0xff] %vm1206_vm6, %v2735_v44  ;;  %2563 = vrot.lane.b32.xlu1 %v4420_v7, %s4702_s9 }
 0x377   :  { %2373 = vrot.lane.b32.xlu0 %v4389_v15, %s4701_s4 }
 0x378   :  { %v2927_v47 = vpop.permute.xlu1 %2926  ;;  %v2352_v11 = vpop.permute.xlu0 %2351 }
 0x379   :  { %3013 = vst.msk [vmem:[#allocation2 + $0x148] sm:$0xff] %vm1399_vm8, %v2927_v47 }
 0x37a   :  { %2437 = vst.msk [vmem:[#allocation2 + $0x150] sm:$0xff] %vm819_vm4, %v2352_v11  ;;  %2565 = vrot.lane.b32.xlu1 %v4421_v46, %s4702_s9 }
 0x37b   :  { %3138 = vrot.lane.b32.xlu0 %v4421_v46, %s4705_s11  ;;  %v4364_v46 = vld [vmem:[%s7735_s0 + $0x318] sm:$0xff] }
 0x37c   :  { %v2354_v59 = vpop.permute.xlu1 %2353  ;;  %v3117_v37 = vpop.permute.xlu0 %3116 }
 0x37d   :  { %2438 = vst.msk [vmem:[#allocation2 + $0x158] sm:$0xff] %vm819_vm4, %v2354_v59  ;;  %v4365_v59 = vld [vmem:[%s7735_s0 + $0x320] sm:$0xff] }
 0x37e   :  { %3204 = vst.msk [vmem:[#allocation2 + $0x140] sm:$0xff] %vm1592_vm9, %v3117_v37  ;;  %2183 = vrot.lane.b32.xlu1 %v4358_v61, %s4700_s26  ;;  %v4396_v37 = vld [vmem:[%s7735_s0 + $0x319] sm:$0xff] }
 0x37f   :  { %2756 = vrot.lane.b32.xlu0 %v4358_v61, %s4703_s15 }
 0x380   :  { %v3119_v13 = vpop.permute.xlu1 %3118  ;;  %v2544_v62 = vpop.permute.xlu0 %2543 }
 0x381   :  { %3205 = vst.msk [vmem:[#allocation2 + $0x148] sm:$0xff] %vm1592_vm9, %v3119_v13 }
 0x382   :  { %2629 = vst.msk [vmem:[#allocation2 + $0x150] sm:$0xff] %vm1012_vm5, %v2544_v62  ;;  %2948 = vrot.lane.b32.xlu1 %v4390_v25, %s4704_s25 }
 0x383   :  { %2758 = vrot.lane.b32.xlu0 %v4359_v24, %s4703_s15 }
 0x384   :  { %v2737_v18 = vpop.permute.xlu1 %2736  ;;  %v2546_v51 = vpop.permute.xlu0 %2545 }
 0x385   :  { %v3268_v6 = vld [vmem:[#allocation2 + $0x140] sm:$0xff]  ;;  %2822 = vst.msk [vmem:[#allocation2 + $0x150] sm:$0xff] %vm1206_vm6, %v2737_v18 }
 0x386   :  { %2630 = vst.msk [vmem:[#allocation2 + $0x158] sm:$0xff] %vm1012_vm5, %v2546_v51  ;;  %4639 = vmatprep.mubr.msk.f32.mxu1 %vm3304_vm10, %v3268_v6  ;;  %2375 = vrot.lane.b32.xlu1 %v4390_v25, %s4701_s4  ;;  %v4397_v18 = vld [vmem:[%s7735_s0 + $0x321] sm:$0xff] }
 0x387   :  { %2185 = vrot.lane.b32.xlu0 %v4359_v24, %s4700_s26  ;;  %v4428_v51 = vld [vmem:[%s7735_s0 + $0x31a] sm:$0xff] }
 0x388   :  { %v2929_v26 = vpop.permute.xlu1 %2928  ;;  %v2739_v27 = vpop.permute.xlu0 %2738  ;;  %v3269_v32 = vld [vmem:[#allocation2 + $0x148] sm:$0xff] }
 0x389   :  { %3014 = vst.msk [vmem:[#allocation2 + $0x150] sm:$0xff] %vm1399_vm8, %v2929_v26  ;;  %4640 = vmatmul.mubr.msk.f32.gmra.mrb[8].mxu1 %vm3304_vm10, %v3269_v32  ;;  %v4429_v32 = vld [vmem:[%s7735_s0 + $0x322] sm:$0xff] }
 0x38a   :  { %2823 = vst.msk [vmem:[#allocation2 + $0x158] sm:$0xff] %vm1206_vm6, %v2739_v27  ;;  %3140 = vrot.lane.b32.xlu1 %v4422_v20, %s4705_s11 }
 0x38b   :  { %2950 = vrot.lane.b32.xlu0 %v4391_v19, %s4704_s25 }
 0x38c   :  { %v2931_v4 = vpop.permute.xlu1 %2930  ;;  %v2356_v34 = vpop.permute.xlu0 %2355 }
 0x38d   :  { %3015 = vst.msk [vmem:[#allocation2 + $0x158] sm:$0xff] %vm1399_vm8, %v2931_v4 }
 0x38e   :  { %2439 = vst.msk [vmem:[#allocation2 + $0x160] sm:$0xff] %vm819_vm4, %v2356_v34  ;;  %2567 = vrot.lane.b32.xlu1 %v4422_v20, %s4702_s9 }
 0x38f   :  { %2377 = vrot.lane.b32.xlu0 %v4391_v19, %s4701_s4 }
 0x390   :  { %v2358_v33 = vpop.permute.xlu1 %2357  ;;  %v3121_v38 = vpop.permute.xlu0 %3120 }
 0x391   :  { %2440 = vst.msk [vmem:[#allocation2 + $0x168] sm:$0xff] %vm819_vm4, %v2358_v33 }
 0x392   :  { %3206 = vst.msk [vmem:[#allocation2 + $0x150] sm:$0xff] %vm1592_vm9, %v3121_v38  ;;  %2569 = vrot.lane.b32.xlu1 %v4423_v35, %s4702_s9 }
 0x393   :  { %3142 = vrot.lane.b32.xlu0 %v4423_v35, %s4705_s11  ;;  %v4366_v35 = vld [vmem:[%s7735_s0 + $0x330] sm:$0xff] }
 0x394   :  { %v3123_v3 = vpop.permute.xlu1 %3122  ;;  %v2548_v39 = vpop.permute.xlu0 %2547 }
 0x395   :  { %3207 = vst.msk [vmem:[#allocation2 + $0x158] sm:$0xff] %vm1592_vm9, %v3123_v3  ;;  %v4367_v3 = vld [vmem:[%s7735_s0 + $0x338] sm:$0xff] }
 0x396   :  { %2631 = vst.msk [vmem:[#allocation2 + $0x160] sm:$0xff] %vm1012_vm5, %v2548_v39  ;;  %2187 = vrot.lane.b32.xlu1 %v4360_v36, %s4700_s26  ;;  %v4398_v39 = vld [vmem:[%s7735_s0 + $0x331] sm:$0xff] }
 0x397   :  { %2760 = vrot.lane.b32.xlu0 %v4360_v36, %s4703_s15 }
 0x398   :  { %v2741_v52 = vpop.permute.xlu1 %2740  ;;  %v2550_v53 = vpop.permute.xlu0 %2549 }
 0x399   :  { %v3270_v31 = vld [vmem:[#allocation2 + $0x150] sm:$0xff]  ;;  %2824 = vst.msk [vmem:[#allocation2 + $0x160] sm:$0xff] %vm1206_vm6, %v2741_v52 }
 0x39a   :  { %2632 = vst.msk [vmem:[#allocation2 + $0x168] sm:$0xff] %vm1012_vm5, %v2550_v53  ;;  %4642 = vmatprep.mubr.msk.f32.mxu1 %vm3304_vm10, %v3270_v31  ;;  %2952 = vrot.lane.b32.xlu1 %v4392_v41, %s4704_s25  ;;  %v4399_v31 = vld [vmem:[%s7735_s0 + $0x339] sm:$0xff] }
 0x39b   :  { %2762 = vrot.lane.b32.xlu0 %v4361_v40, %s4703_s15 }
 0x39c   :  { %v2933_v57 = vpop.permute.xlu1 %2932  ;;  %v2743_v22 = vpop.permute.xlu0 %2742  ;;  %v3271_v48 = vld [vmem:[#allocation2 + $0x158] sm:$0xff] }
 0x39d   :  { %3016 = vst.msk [vmem:[#allocation2 + $0x160] sm:$0xff] %vm1399_vm8, %v2933_v57  ;;  %4643 = vmatmul.mubr.msk.f32.gmra.mrb[10].mxu1 %vm3304_vm10, %v3271_v48  ;;  %v4430_v57 = vld [vmem:[%s7735_s0 + $0x332] sm:$0xff] }
 0x39e   :  { %2825 = vst.msk [vmem:[#allocation2 + $0x168] sm:$0xff] %vm1206_vm6, %v2743_v22  ;;  %2379 = vrot.lane.b32.xlu1 %v4392_v41, %s4701_s4 }
 0x39f   :  { %2189 = vrot.lane.b32.xlu0 %v4361_v40, %s4700_s26 }
 0x3a0   :  { %v2935_v49 = vpop.permute.xlu1 %2934  ;;  %v2360_v55 = vpop.permute.xlu0 %2359 }
 0x3a1   :  { %3017 = vst.msk [vmem:[#allocation2 + $0x168] sm:$0xff] %vm1399_vm8, %v2935_v49 }
 0x3a2   :  { %2441 = vst.msk [vmem:[#allocation2 + $0x170] sm:$0xff] %vm819_vm4, %v2360_v55  ;;  %3144 = vrot.lane.b32.xlu1 %v4424_v30, %s4705_s11  ;;  %v4431_v55 = vld [vmem:[%s7735_s0 + $0x33a] sm:$0xff] }
 0x3a3   :  { %2954 = vrot.lane.b32.xlu0 %v4393_v56, %s4704_s25 }
 0x3a4   :  { %v2362_v12 = vpop.permute.xlu1 %2361  ;;  %v3125_v5 = vpop.permute.xlu0 %3124 }
 0x3a5   :  { %2442 = vst.msk [vmem:[#allocation2 + $0x178] sm:$0xff] %vm819_vm4, %v2362_v12 }
 0x3a6   :  { %3208 = vst.msk [vmem:[#allocation2 + $0x160] sm:$0xff] %vm1592_vm9, %v3125_v5  ;;  %2571 = vrot.lane.b32.xlu1 %v4424_v30, %s4702_s9 }
 0x3a7   :  { %2381 = vrot.lane.b32.xlu0 %v4393_v56, %s4701_s4 }
 0x3a8   :  { %v3127_v54 = vpop.permute.xlu1 %3126 }
 0x3a9   :  { %v2552_v42 = vpop.permute.xlu0 %2551  ;;  %3209 = vst.msk [vmem:[#allocation2 + $0x168] sm:$0xff] %vm1592_vm9, %v3127_v54  ;;  %v4369_v54 = vld [vmem:[%s7735_s0 + $0x350] sm:$0xff] }
 0x3aa   :  { %2633 = vst.msk [vmem:[#allocation2 + $0x170] sm:$0xff] %vm1012_vm5, %v2552_v42  ;;  %2573 = vrot.lane.b32.xlu1 %v4425_v45, %s4702_s9 }
 0x3ab   :  { %3146 = vrot.lane.b32.xlu0 %v4425_v45, %s4705_s11  ;;  %v4368_v45 = vld [vmem:[%s7735_s0 + $0x348] sm:$0xff] }
 0x3ac   :  { %v2745_v21 = vpop.permute.xlu1 %2744 }
 0x3ad   :  { %v2554_v8 = vpop.permute.xlu0 %2553  ;;  %v3272_v9 = vld [vmem:[#allocation2 + $0x160] sm:$0xff]  ;;  %2826 = vst.msk [vmem:[#allocation2 + $0x170] sm:$0xff] %vm1206_vm6, %v2745_v21 }
 0x3ae   :  { %2634 = vst.msk [vmem:[#allocation2 + $0x178] sm:$0xff] %vm1012_vm5, %v2554_v8  ;;  %4645 = vmatprep.mubr.msk.f32.mxu1 %vm3304_vm10, %v3272_v9  ;;  %2191 = vrot.lane.b32.xlu1 %v4362_v63, %s4700_s26  ;;  %v4400_v8 = vld [vmem:[%s7735_s0 + $0x349] sm:$0xff]  ;;  %v4401_v9 = vld [vmem:[%s7735_s0 + $0x351] sm:$0xff] }
 0x3af   :  { %2764 = vrot.lane.b32.xlu0 %v4362_v63, %s4703_s15 }
 0x3b0   :  { %v2937_v0 = vpop.permute.xlu1 %2936  ;;  %v3273_v28 = vld [vmem:[#allocation2 + $0x168] sm:$0xff] }
 0x3b1   :  { %v2747_v14 = vpop.permute.xlu0 %2746  ;;  %3018 = vst.msk [vmem:[#allocation2 + $0x170] sm:$0xff] %vm1399_vm8, %v2937_v0  ;;  %4646 = vmatmul.mubr.msk.f32.gmra.mrb[12].mxu1 %vm3304_vm10, %v3273_v28  ;;  %v4432_v0 = vld [vmem:[%s7735_s0 + $0x34a] sm:$0xff] }
 0x3b2   :  { %2827 = vst.msk [vmem:[#allocation2 + $0x178] sm:$0xff] %vm1206_vm6, %v2747_v14  ;;  %2956 = vrot.lane.b32.xlu1 %v4394_v10, %s4704_s25  ;;  %v4433_v14 = vld [vmem:[%s7735_s0 + $0x352] sm:$0xff] }
 0x3b3   :  { %2766 = vrot.lane.b32.xlu0 %v4363_v2, %s4703_s15 }
 0x3b4   :  { %v2939_v16 = vpop.permute.xlu1 %2938 }
 0x3b5   :  { %v2364_v17 = vpop.permute.xlu0 %2363  ;;  %3019 = vst.msk [vmem:[#allocation2 + $0x178] sm:$0xff] %vm1399_vm8, %v2939_v16 }
 0x3b6   :  { %2443 = vst.msk [vmem:[#allocation2 + $0x180] sm:$0xff] %vm819_vm4, %v2364_v17  ;;  %2383 = vrot.lane.b32.xlu1 %v4394_v10, %s4701_s4 }
 0x3b7   :  { %2193 = vrot.lane.b32.xlu0 %v4363_v2, %s4700_s26 }
 0x3b8   :  { %v2366_v15 = vpop.permute.xlu1 %2365 }
 0x3b9   :  { %v3129_v7 = vpop.permute.xlu0 %3128  ;;  %2444 = vst.msk [vmem:[#allocation2 + $0x188] sm:$0xff] %vm819_vm4, %v2366_v15 }
 0x3ba   :  { %3210 = vst.msk [vmem:[#allocation2 + $0x170] sm:$0xff] %vm1592_vm9, %v3129_v7  ;;  %3148 = vrot.lane.b32.xlu1 %v4426_v58, %s4705_s11 }
 0x3bb   :  { %2958 = vrot.lane.b32.xlu0 %v4395_v50, %s4704_s25 }
 0x3bc   :  { %v3131_v23 = vpop.permute.xlu1 %3130 }
 0x3bd   :  { %v2556_v1 = vpop.permute.xlu0 %2555  ;;  %3211 = vst.msk [vmem:[#allocation2 + $0x178] sm:$0xff] %vm1592_vm9, %v3131_v23 }
 0x3be   :  { %2635 = vst.msk [vmem:[#allocation2 + $0x180] sm:$0xff] %vm1012_vm5, %v2556_v1  ;;  %2575 = vrot.lane.b32.xlu1 %v4426_v58, %s4702_s9 }
 0x3bf   :  { %2385 = vrot.lane.b32.xlu0 %v4395_v50, %s4701_s4 }
 0x3c0   :  { %v2749_v44 = vpop.permute.xlu1 %2748 }
 0x3c1   :  { %v2558_v29 = vpop.permute.xlu0 %2557  ;;  %v3274_v43 = vld [vmem:[#allocation2 + $0x170] sm:$0xff]  ;;  %2828 = vst.msk [vmem:[#allocation2 + $0x180] sm:$0xff] %vm1206_vm6, %v2749_v44 }
 0x3c2   :  { %2636 = vst.msk [vmem:[#allocation2 + $0x188] sm:$0xff] %vm1012_vm5, %v2558_v29  ;;  %4648 = vmatprep.mubr.msk.f32.mxu1 %vm3304_vm10, %v3274_v43  ;;  %2577 = vrot.lane.b32.xlu1 %v4427_v60, %s4702_s9  ;;  %v7542_v43 = vld [vmem:[%s7737_s2] ss:$0 sm:$0xff] }
 0x3c3   :  { %3150 = vrot.lane.b32.xlu0 %v4427_v60, %s4705_s11 }
 0x3c4   :  { %v2941_v11 = vpop.permute.xlu1 %2940  ;;  %v3275_v61 = vld [vmem:[#allocation2 + $0x178] sm:$0xff] }
 0x3c5   :  { %v2751_v47 = vpop.permute.xlu0 %2750  ;;  %3020 = vst.msk [vmem:[#allocation2 + $0x180] sm:$0xff] %vm1399_vm8, %v2941_v11  ;;  %4649 = vmatmul.mubr.msk.f32.gmra.mrb[14].mxu1 %vm3304_vm10, %v3275_v61 }
 0x3c6   :  { %2829 = vst.msk [vmem:[#allocation2 + $0x188] sm:$0xff] %vm1206_vm6, %v2751_v47  ;;  %2195 = vrot.lane.b32.xlu1 %v4364_v46, %s4700_s26 }
 0x3c7   :  { %2768 = vrot.lane.b32.xlu0 %v4364_v46, %s4703_s15 }
 0x3c8   :  { %v2368_v25 = vpop.permute.xlu1 %2367 }
 0x3c9   :  { %v2178_v24 = vpop.permute.xlu0 %2177  ;;  %2445 = vst.msk [vmem:[#allocation2 + $0x190] sm:$0xff] %vm819_vm4, %v2368_v25 }
 0x3ca   :  { %2254 = vst.msk [vmem:[#allocation2 + $0x198] sm:$0xff] %vm626_vm3, %v2178_v24  ;;  %2960 = vrot.lane.b32.xlu1 %v4396_v37, %s4704_s25 }
 0x3cb   :  { %2770 = vrot.lane.b32.xlu0 %v4365_v59, %s4703_s15 }
 0x3cc   :  { %v3133_v62 = vpop.permute.xlu1 %3132 }
 0x3cd   :  { %v2943_v13 = vpop.permute.xlu0 %2942  ;;  %3212 = vst.msk [vmem:[#allocation2 + $0x180] sm:$0xff] %vm1592_vm9, %v3133_v62 }
 0x3ce   :  { %3021 = vst.msk [vmem:[#allocation2 + $0x188] sm:$0xff] %vm1399_vm8, %v2943_v13  ;;  %2387 = vrot.lane.b32.xlu1 %v4396_v37, %s4701_s4 }
 0x3cf   :  { %2197 = vrot.lane.b32.xlu0 %v4365_v59, %s4700_s26 }
 0x3d0   :  { %v2560_v19 = vpop.permute.xlu1 %2559 }
 0x3d1   :  { %v2370_v6 = vpop.permute.xlu0 %2369  ;;  %2637 = vst.msk [vmem:[#allocation2 + $0x190] sm:$0xff] %vm1012_vm5, %v2560_v19 }
 0x3d2   :  { %2446 = vst.msk [vmem:[#allocation2 + $0x198] sm:$0xff] %vm819_vm4, %v2370_v6  ;;  %3152 = vrot.lane.b32.xlu1 %v4428_v51, %s4705_s11 }
 0x3d3   :  { %2962 = vrot.lane.b32.xlu0 %v4397_v18, %s4704_s25 }
 0x3d4   :  { %v2562_v26 = vpop.permute.xlu1 %2561  ;;  %v3276_v27 = vld [vmem:[#allocation2 + $0x180] sm:$0xff] }
 0x3d5   :  { %v3135_v20 = vpop.permute.xlu0 %3134  ;;  %2638 = vst.msk [vmem:[#allocation2 + $0x198] sm:$0xff] %vm1012_vm5, %v2562_v26  ;;  %4651 = vmatprep.mubr.msk.f32.mxu1 %vm3304_vm10, %v3276_v27 }
 0x3d6   :  { %3213 = vst.msk [vmem:[#allocation2 + $0x188] sm:$0xff] %vm1592_vm9, %v3135_v20  ;;  %2579 = vrot.lane.b32.xlu1 %v4428_v51, %s4702_s9 }
 0x3d7   :  { %2389 = vrot.lane.b32.xlu0 %v4397_v18, %s4701_s4 }
 0x3d8   :  { %v2180_v34 = vpop.permute.xlu1 %2179 }
 0x3d9   :  { %v2753_v4 = vpop.permute.xlu0 %2752  ;;  %2255 = vst.msk [vmem:[#allocation2 + $0x1a0] sm:$0xff] %vm626_vm3, %v2180_v34 }
 0x3da   :  { %2830 = vst.msk [vmem:[#allocation2 + $0x190] sm:$0xff] %vm1206_vm6, %v2753_v4  ;;  %2581 = vrot.lane.b32.xlu1 %v4429_v32, %s4702_s9 }
 0x3db   :  { %3154 = vrot.lane.b32.xlu0 %v4429_v32, %s4705_s11 }
 0x3dc   :  { %v2945_v38 = vpop.permute.xlu1 %2944 }
 0x3dd   :  { %v2755_v33 = vpop.permute.xlu0 %2754  ;;  %v3277_v36 = vld [vmem:[#allocation2 + $0x188] sm:$0xff]  ;;  %3022 = vst.msk [vmem:[#allocation2 + $0x190] sm:$0xff] %vm1399_vm8, %v2945_v38 }
 0x3de   :  { %2831 = vst.msk [vmem:[#allocation2 + $0x198] sm:$0xff] %vm1206_vm6, %v2755_v33  ;;  %4652 = vmatmul.mubr.msk.f32.gmra.mrb[16].mxu1 %vm3304_vm10, %v3277_v36  ;;  %2199 = vrot.lane.b32.xlu1 %v4366_v35, %s4700_s26 }
 0x3df   :  { %2772 = vrot.lane.b32.xlu0 %v4366_v35, %s4703_s15 }
 0x3e0   :  { %v2372_v41 = vpop.permute.xlu1 %2371 }
 0x3e1   :  { %v2182_v40 = vpop.permute.xlu0 %2181  ;;  %2447 = vst.msk [vmem:[#allocation2 + $0x1a0] sm:$0xff] %vm819_vm4, %v2372_v41 }
 0x3e2   :  { %2256 = vst.msk [vmem:[#allocation2 + $0x1a8] sm:$0xff] %vm626_vm3, %v2182_v40  ;;  %2964 = vrot.lane.b32.xlu1 %v4398_v39, %s4704_s25 }
 0x3e3   :  { %2774 = vrot.lane.b32.xlu0 %v4367_v3, %s4703_s15 }
 0x3e4   :  { %v3137_v53 = vpop.permute.xlu1 %3136 }
 0x3e5   :  { %v2947_v52 = vpop.permute.xlu0 %2946  ;;  %3214 = vst.msk [vmem:[#allocation2 + $0x190] sm:$0xff] %vm1592_vm9, %v3137_v53 }
 0x3e6   :  { %3023 = vst.msk [vmem:[#allocation2 + $0x198] sm:$0xff] %vm1399_vm8, %v2947_v52  ;;  %2391 = vrot.lane.b32.xlu1 %v4398_v39, %s4701_s4 }
 0x3e7   :  { %2201 = vrot.lane.b32.xlu0 %v4367_v3, %s4700_s26 }
 0x3e8   :  { %v2564_v48 = vpop.permute.xlu1 %2563 }
 0x3e9   :  { %v2374_v22 = vpop.permute.xlu0 %2373  ;;  %2639 = vst.msk [vmem:[#allocation2 + $0x1a0] sm:$0xff] %vm1012_vm5, %v2564_v48 }
 0x3ea   :  { %2448 = vst.msk [vmem:[#allocation2 + $0x1a8] sm:$0xff] %vm819_vm4, %v2374_v22  ;;  %3156 = vrot.lane.b32.xlu1 %v4430_v57, %s4705_s11 }
 0x3eb   :  { %2966 = vrot.lane.b32.xlu0 %v4399_v31, %s4704_s25 }
 0x3ec   :  { %v2566_v30 = vpop.permute.xlu1 %2565  ;;  %v3278_v49 = vld [vmem:[#allocation2 + $0x190] sm:$0xff] }
 0x3ed   :  { %v3139_v56 = vpop.permute.xlu0 %3138  ;;  %2640 = vst.msk [vmem:[#allocation2 + $0x1a8] sm:$0xff] %vm1012_vm5, %v2566_v30  ;;  %4654 = vmatprep.mubr.msk.f32.mxu1 %vm3304_vm10, %v3278_v49 }
 0x3ee   :  { %3215 = vst.msk [vmem:[#allocation2 + $0x198] sm:$0xff] %vm1592_vm9, %v3139_v56  ;;  %2583 = vrot.lane.b32.xlu1 %v4430_v57, %s4702_s9 }
 0x3ef   :  { %2393 = vrot.lane.b32.xlu0 %v4399_v31, %s4701_s4 }
 0x3f0   :  { %v2184_v5 = vpop.permute.xlu1 %2183 }
 0x3f1   :  { %v2757_v12 = vpop.permute.xlu0 %2756  ;;  %2257 = vst.msk [vmem:[#allocation2 + $0x1b0] sm:$0xff] %vm626_vm3, %v2184_v5 }
 0x3f2   :  { %2832 = vst.msk [vmem:[#allocation2 + $0x1a0] sm:$0xff] %vm1206_vm6, %v2757_v12  ;;  %2585 = vrot.lane.b32.xlu1 %v4431_v55, %s4702_s9 }
 0x3f3   :  { %3158 = vrot.lane.b32.xlu0 %v4431_v55, %s4705_s11 }
 0x3f4   :  { %v2949_v63 = vpop.permute.xlu1 %2948 }
 0x3f5   :  { %v2759_v42 = vpop.permute.xlu0 %2758  ;;  %v3279_v21 = vld [vmem:[#allocation2 + $0x198] sm:$0xff]  ;;  %3024 = vst.msk [vmem:[#allocation2 + $0x1a0] sm:$0xff] %vm1399_vm8, %v2949_v63 }
 0x3f6   :  { %2833 = vst.msk [vmem:[#allocation2 + $0x1a8] sm:$0xff] %vm1206_vm6, %v2759_v42  ;;  %4655 = vmatmul.mubr.msk.f32.gmra.mrb[18].mxu1 %vm3304_vm10, %v3279_v21  ;;  %2778 = vrot.lane.b32.xlu1 %v4369_v54, %s4703_s15 }
 0x3f7   :  { %2776 = vrot.lane.b32.xlu0 %v4368_v45, %s4703_s15 }
 0x3f8   :  { %v2376_v10 = vpop.permute.xlu1 %2375 }
 0x3f9   :  { %v2186_v2 = vpop.permute.xlu0 %2185  ;;  %2449 = vst.msk [vmem:[#allocation2 + $0x1b0] sm:$0xff] %vm819_vm4, %v2376_v10 }
 0x3fa   :  { %2258 = vst.msk [vmem:[#allocation2 + $0x1b8] sm:$0xff] %vm626_vm3, %v2186_v2  ;;  %2970 = vrot.lane.b32.xlu1 %v4401_v9, %s4704_s25 }
 0x3fb   :  { %2968 = vrot.lane.b32.xlu0 %v4400_v8, %s4704_s25 }
 0x3fc   :  { %v3141_v16 = vpop.permute.xlu1 %3140 }
 0x3fd   :  { %v2951_v28 = vpop.permute.xlu0 %2950  ;;  %3216 = vst.msk [vmem:[#allocation2 + $0x1a0] sm:$0xff] %vm1592_vm9, %v3141_v16 }
 0x3fe   :  { %3025 = vst.msk [vmem:[#allocation2 + $0x1a8] sm:$0xff] %vm1399_vm8, %v2951_v28  ;;  %3162 = vrot.lane.b32.xlu1 %v4433_v14, %s4705_s11 }
 0x3ff   :  { %3160 = vrot.lane.b32.xlu0 %v4432_v0, %s4705_s11 }
 0x400   :  { %v2568_v50 = vpop.permute.xlu1 %2567 }
 0x401   :  { %v2378_v17 = vpop.permute.xlu0 %2377  ;;  %2641 = vst.msk [vmem:[#allocation2 + $0x1b0] sm:$0xff] %vm1012_vm5, %v2568_v50 }
 0x402   :  { %2450 = vst.msk [vmem:[#allocation2 + $0x1b8] sm:$0xff] %vm819_vm4, %v2378_v17 }
 0x404   :  { %v2570_v15 = vpop.permute.xlu1 %2569  ;;  %v3280_v7 = vld [vmem:[#allocation2 + $0x1a0] sm:$0xff] }
 0x405   :  { %v3143_v58 = vpop.permute.xlu0 %3142  ;;  %2642 = vst.msk [vmem:[#allocation2 + $0x1b8] sm:$0xff] %vm1012_vm5, %v2570_v15  ;;  %4657 = vmatprep.mubr.msk.f32.mxu1 %vm3304_vm10, %v3280_v7 }
 0x406   :  { %3217 = vst.msk [vmem:[#allocation2 + $0x1a8] sm:$0xff] %vm1592_vm9, %v3143_v58 }
 0x408   :  { %v2188_v1 = vpop.permute.xlu1 %2187 }
 0x409   :  { %v2761_v23 = vpop.permute.xlu0 %2760  ;;  %2259 = vst.msk [vmem:[#allocation2 + $0x1c0] sm:$0xff] %vm626_vm3, %v2188_v1 }
 0x40a   :  { %2834 = vst.msk [vmem:[#allocation2 + $0x1b0] sm:$0xff] %vm1206_vm6, %v2761_v23 }
 0x40c   :  { %v4629_v60 = vpop.f32.mrb[0].mxu1  ;;  %v2953_v47 = vpop.permute.xlu1 %2952 }
 0x40d   :  { %v2763_v29 = vpop.permute.xlu0 %2762  ;;  %v3281_v44 = vld [vmem:[#allocation2 + $0x1a8] sm:$0xff]  ;;  %v3733_v46 = vadd.f32 %v7542_v43, %v4629_v60  ;;  %v3727_v11 = vpop.f32.mrb[1].mxu1  ;;  %3026 = vst.msk [vmem:[#allocation2 + $0x1b0] sm:$0xff] %vm1399_vm8, %v2953_v47 }
 0x40e   :  { %2835 = vst.msk [vmem:[#allocation2 + $0x1b8] sm:$0xff] %vm1206_vm6, %v2763_v29  ;;  %4658 = vmatmul.mubr.msk.f32.gmra.mrb[20].mxu1 %vm3304_vm10, %v3281_v44  ;;  %v3728_v61 = vadd.f32 %v7542_v43, %v3727_v11 }
 0x40f   :  { %3919 = vst [vmem:[%s7738_s3 + $0x108] sm:$0xff] %v3733_v46 }
 0x410   :  { %3918 = vst [vmem:[%s7738_s3 + $0x100] sm:$0xff] %v3728_v61  ;;  %v2380_v37 = vpop.permute.xlu1 %2379 }
 0x411   :  { %v2190_v59 = vpop.permute.xlu0 %2189  ;;  %2451 = vst.msk [vmem:[#allocation2 + $0x1c0] sm:$0xff] %vm819_vm4, %v2380_v37 }
 0x412   :  { %2260 = vst.msk [vmem:[#allocation2 + $0x1c8] sm:$0xff] %vm626_vm3, %v2190_v59 }
 0x414   :  { %v3145_v25 = vpop.permute.xlu1 %3144 }
 0x415   :  { %v2955_v24 = vpop.permute.xlu0 %2954  ;;  %3218 = vst.msk [vmem:[#allocation2 + $0x1b0] sm:$0xff] %vm1592_vm9, %v3145_v25 }
 0x416   :  { %3027 = vst.msk [vmem:[#allocation2 + $0x1b8] sm:$0xff] %vm1399_vm8, %v2955_v24 }
 0x418   :  { %v2572_v62 = vpop.permute.xlu1 %2571 }
 0x419   :  { %v2382_v13 = vpop.permute.xlu0 %2381  ;;  %2643 = vst.msk [vmem:[#allocation2 + $0x1c0] sm:$0xff] %vm1012_vm5, %v2572_v62 }
 0x41a   :  { %2452 = vst.msk [vmem:[#allocation2 + $0x1c8] sm:$0xff] %vm819_vm4, %v2382_v13 }
 0x41c   :  { %v2574_v51 = vpop.permute.xlu1 %2573  ;;  %v3282_v6 = vld [vmem:[#allocation2 + $0x1b0] sm:$0xff] }
 0x41d   :  { %v3147_v18 = vpop.permute.xlu0 %3146  ;;  %2644 = vst.msk [vmem:[#allocation2 + $0x1c8] sm:$0xff] %vm1012_vm5, %v2574_v51  ;;  %4660 = vmatprep.mubr.msk.f32.mxu1 %vm3304_vm10, %v3282_v6 }
 0x41e   :  { %3219 = vst.msk [vmem:[#allocation2 + $0x1b8] sm:$0xff] %vm1592_vm9, %v3147_v18 }
 0x420   :  { %v4632_v19 = vpop.f32.mrb[2].mxu1  ;;  %v2192_v27 = vpop.permute.xlu1 %2191 }
 0x421   :  { %v2765_v20 = vpop.permute.xlu0 %2764  ;;  %v3743_v26 = vadd.f32 %v7542_v43, %v4632_v19  ;;  %v3737_v32 = vpop.f32.mrb[3].mxu1  ;;  %2261 = vst.msk [vmem:[#allocation2 + $0x1d0] sm:$0xff] %vm626_vm3, %v2192_v27 }
 0x422   :  { %2836 = vst.msk [vmem:[#allocation2 + $0x1c0] sm:$0xff] %vm1206_vm6, %v2765_v20  ;;  %v3738_v4 = vadd.f32 %v7542_v43, %v3737_v32 }
 0x423   :  { %3921 = vst [vmem:[%s7738_s3 + $0x118] sm:$0xff] %v3743_v26 }
 0x424   :  { %3920 = vst [vmem:[%s7738_s3 + $0x110] sm:$0xff] %v3738_v4  ;;  %v2957_v33 = vpop.permute.xlu1 %2956 }
 0x425   :  { %v2767_v34 = vpop.permute.xlu0 %2766  ;;  %v3283_v35 = vld [vmem:[#allocation2 + $0x1b8] sm:$0xff]  ;;  %3028 = vst.msk [vmem:[#allocation2 + $0x1c0] sm:$0xff] %vm1399_vm8, %v2957_v33 }
 0x426   :  { %2837 = vst.msk [vmem:[#allocation2 + $0x1c8] sm:$0xff] %vm1206_vm6, %v2767_v34  ;;  %4661 = vmatmul.mubr.msk.f32.gmra.mrb[22].mxu1 %vm3304_vm10, %v3283_v35 }
 0x428   :  { %v2384_v36 = vpop.permute.xlu1 %2383 }
 0x429   :  { %v2194_v38 = vpop.permute.xlu0 %2193  ;;  %2453 = vst.msk [vmem:[#allocation2 + $0x1d0] sm:$0xff] %vm819_vm4, %v2384_v36 }
 0x42a   :  { %2262 = vst.msk [vmem:[#allocation2 + $0x1d8] sm:$0xff] %vm626_vm3, %v2194_v38 }
 0x42c   :  { %v3149_v39 = vpop.permute.xlu1 %3148 }
 0x42d   :  { %v2959_v3 = vpop.permute.xlu0 %2958  ;;  %3220 = vst.msk [vmem:[#allocation2 + $0x1c0] sm:$0xff] %vm1592_vm9, %v3149_v39 }
 0x42e   :  { %3029 = vst.msk [vmem:[#allocation2 + $0x1c8] sm:$0xff] %vm1399_vm8, %v2959_v3 }
 0x430   :  { %v2576_v41 = vpop.permute.xlu1 %2575 }
 0x431   :  { %v2386_v40 = vpop.permute.xlu0 %2385  ;;  %2645 = vst.msk [vmem:[#allocation2 + $0x1d0] sm:$0xff] %vm1012_vm5, %v2576_v41 }
 0x432   :  { %2454 = vst.msk [vmem:[#allocation2 + $0x1d8] sm:$0xff] %vm819_vm4, %v2386_v40 }
 0x434   :  { %v4635_v52 = vpop.f32.mrb[4].mxu1  ;;  %v2578_v57 = vpop.permute.xlu1 %2577  ;;  %v3284_v48 = vld [vmem:[#allocation2 + $0x1c0] sm:$0xff] }
 0x435   :  { %v3151_v53 = vpop.permute.xlu0 %3150  ;;  %v3753_v31 = vadd.f32 %v7542_v43, %v4635_v52  ;;  %v3747_v22 = vpop.f32.mrb[5].mxu1  ;;  %2646 = vst.msk [vmem:[#allocation2 + $0x1d8] sm:$0xff] %vm1012_vm5, %v2578_v57  ;;  %4663 = vmatprep.mubr.msk.f32.mxu1 %vm3304_vm10, %v3284_v48 }
 0x436   :  { %3221 = vst.msk [vmem:[#allocation2 + $0x1c8] sm:$0xff] %vm1592_vm9, %v3151_v53  ;;  %v3748_v56 = vadd.f32 %v7542_v43, %v3747_v22 }
 0x437   :  { %3923 = vst [vmem:[%s7738_s3 + $0x128] sm:$0xff] %v3753_v31 }
 0x438   :  { %3922 = vst [vmem:[%s7738_s3 + $0x120] sm:$0xff] %v3748_v56  ;;  %v2196_v49 = vpop.permute.xlu1 %2195 }
 0x439   :  { %v2769_v30 = vpop.permute.xlu0 %2768  ;;  %2263 = vst.msk [vmem:[#allocation2 + $0x1e0] sm:$0xff] %vm626_vm3, %v2196_v49 }
 0x43a   :  { %2838 = vst.msk [vmem:[#allocation2 + $0x1d0] sm:$0xff] %vm1206_vm6, %v2769_v30 }
 0x43c   :  { %v2961_v5 = vpop.permute.xlu1 %2960 }
 0x43d   :  { %v2771_v55 = vpop.permute.xlu0 %2770  ;;  %v3285_v12 = vld [vmem:[#allocation2 + $0x1c8] sm:$0xff]  ;;  %3030 = vst.msk [vmem:[#allocation2 + $0x1d0] sm:$0xff] %vm1399_vm8, %v2961_v5 }
 0x43e   :  { %2839 = vst.msk [vmem:[#allocation2 + $0x1d8] sm:$0xff] %vm1206_vm6, %v2771_v55  ;;  %4664 = vmatmul.mubr.msk.f32.gmra.mrb[24].mxu1 %vm3304_vm10, %v3285_v12 }
 0x440   :  { %v2388_v54 = vpop.permute.xlu1 %2387 }
 0x441   :  { %v2198_v45 = vpop.permute.xlu0 %2197  ;;  %2455 = vst.msk [vmem:[#allocation2 + $0x1e0] sm:$0xff] %vm819_vm4, %v2388_v54 }
 0x442   :  { %2264 = vst.msk [vmem:[#allocation2 + $0x1e8] sm:$0xff] %vm626_vm3, %v2198_v45 }
 0x444   :  { %v3153_v63 = vpop.permute.xlu1 %3152 }
 0x445   :  { %v2963_v42 = vpop.permute.xlu0 %2962  ;;  %3222 = vst.msk [vmem:[#allocation2 + $0x1d0] sm:$0xff] %vm1592_vm9, %v3153_v63 }
 0x446   :  { %3031 = vst.msk [vmem:[#allocation2 + $0x1d8] sm:$0xff] %vm1399_vm8, %v2963_v42 }
 0x448   :  { %v4638_v21 = vpop.f32.mrb[6].mxu1  ;;  %v2580_v2 = vpop.permute.xlu1 %2579 }
 0x449   :  { %v2390_v8 = vpop.permute.xlu0 %2389  ;;  %v3763_v9 = vadd.f32 %v7542_v43, %v4638_v21  ;;  %v3757_v10 = vpop.f32.mrb[7].mxu1  ;;  %2647 = vst.msk [vmem:[#allocation2 + $0x1e0] sm:$0xff] %vm1012_vm5, %v2580_v2 }
 0x44a   :  { %2456 = vst.msk [vmem:[#allocation2 + $0x1e8] sm:$0xff] %vm819_vm4, %v2390_v8  ;;  %v3758_v0 = vadd.f32 %v7542_v43, %v3757_v10 }
 0x44b   :  { %3925 = vst [vmem:[%s7738_s3 + $0x138] sm:$0xff] %v3763_v9 }
 0x44c   :  { %3924 = vst [vmem:[%s7738_s3 + $0x130] sm:$0xff] %v3758_v0  ;;  %v2582_v28 = vpop.permute.xlu1 %2581  ;;  %v3286_v16 = vld [vmem:[#allocation2 + $0x1d0] sm:$0xff] }
 0x44d   :  { %v3155_v14 = vpop.permute.xlu0 %3154  ;;  %2648 = vst.msk [vmem:[#allocation2 + $0x1e8] sm:$0xff] %vm1012_vm5, %v2582_v28  ;;  %4666 = vmatprep.mubr.msk.f32.mxu1 %vm3304_vm10, %v3286_v16 }
 0x44e   :  { %3223 = vst.msk [vmem:[#allocation2 + $0x1d8] sm:$0xff] %vm1592_vm9, %v3155_v14 }
 0x450   :  { %v2200_v50 = vpop.permute.xlu1 %2199 }
 0x451   :  { %v2773_v17 = vpop.permute.xlu0 %2772  ;;  %2265 = vst.msk [vmem:[#allocation2 + $0x1f0] sm:$0xff] %vm626_vm3, %v2200_v50 }
 0x452   :  { %2840 = vst.msk [vmem:[#allocation2 + $0x1e0] sm:$0xff] %vm1206_vm6, %v2773_v17 }
 0x454   :  { %v2965_v7 = vpop.permute.xlu1 %2964 }
 0x455   :  { %v2775_v58 = vpop.permute.xlu0 %2774  ;;  %v3287_v15 = vld [vmem:[#allocation2 + $0x1d8] sm:$0xff]  ;;  %3032 = vst.msk [vmem:[#allocation2 + $0x1e0] sm:$0xff] %vm1399_vm8, %v2965_v7 }
 0x456   :  { %2841 = vst.msk [vmem:[#allocation2 + $0x1e8] sm:$0xff] %vm1206_vm6, %v2775_v58  ;;  %4667 = vmatmul.mubr.msk.f32.gmra.mrb[26].mxu1 %vm3304_vm10, %v3287_v15 }
 0x458   :  { %v2392_v1 = vpop.permute.xlu1 %2391 }
 0x459   :  { %v2202_v23 = vpop.permute.xlu0 %2201  ;;  %2457 = vst.msk [vmem:[#allocation2 + $0x1f0] sm:$0xff] %vm819_vm4, %v2392_v1 }
 0x45a   :  { %2266 = vst.msk [vmem:[#allocation2 + $0x1f8] sm:$0xff] %vm626_vm3, %v2202_v23 }
 0x45c   :  { %v4641_v60 = vpop.f32.mrb[8].mxu1  ;;  %v3157_v46 = vpop.permute.xlu1 %3156 }
 0x45d   :  { %v2967_v29 = vpop.permute.xlu0 %2966  ;;  %v3773_v44 = vadd.f32 %v7542_v43, %v4641_v60  ;;  %v3767_v47 = vpop.f32.mrb[9].mxu1  ;;  %3224 = vst.msk [vmem:[#allocation2 + $0x1e0] sm:$0xff] %vm1592_vm9, %v3157_v46 }
 0x45e   :  { %3033 = vst.msk [vmem:[#allocation2 + $0x1e8] sm:$0xff] %vm1399_vm8, %v2967_v29  ;;  %v3768_v11 = vadd.f32 %v7542_v43, %v3767_v47 }
 0x45f   :  { %3927 = vst [vmem:[%s7738_s3 + $0x148] sm:$0xff] %v3773_v44 }
 0x460   :  { %3926 = vst [vmem:[%s7738_s3 + $0x140] sm:$0xff] %v3768_v11  ;;  %v2584_v59 = vpop.permute.xlu1 %2583 }
 0x461   :  { %v2394_v61 = vpop.permute.xlu0 %2393  ;;  %2649 = vst.msk [vmem:[#allocation2 + $0x1f0] sm:$0xff] %vm1012_vm5, %v2584_v59 }
 0x462   :  { %2458 = vst.msk [vmem:[#allocation2 + $0x1f8] sm:$0xff] %vm819_vm4, %v2394_v61 }
 0x464   :  { %v2586_v24 = vpop.permute.xlu1 %2585  ;;  %v3288_v25 = vld [vmem:[#allocation2 + $0x1e0] sm:$0xff] }
 0x465   :  { %v3159_v37 = vpop.permute.xlu0 %3158  ;;  %2650 = vst.msk [vmem:[#allocation2 + $0x1f8] sm:$0xff] %vm1012_vm5, %v2586_v24  ;;  %4669 = vmatprep.mubr.msk.f32.mxu1 %vm3304_vm10, %v3288_v25 }
 0x466   :  { %3225 = vst.msk [vmem:[#allocation2 + $0x1e8] sm:$0xff] %vm1592_vm9, %v3159_v37 }
 0x468   :  { %v2779_v62 = vpop.permute.xlu1 %2778 }
 0x469   :  { %v2777_v13 = vpop.permute.xlu0 %2776  ;;  %2843 = vst.msk [vmem:[#allocation2 + $0x1f8] sm:$0xff] %vm1206_vm6, %v2779_v62 }
 0x46a   :  { %2842 = vst.msk [vmem:[#allocation2 + $0x1f0] sm:$0xff] %vm1206_vm6, %v2777_v13 }
 0x46c   :  { %v2971_v6 = vpop.permute.xlu1 %2970 }
 0x46d   :  { %v2969_v18 = vpop.permute.xlu0 %2968  ;;  %v3289_v51 = vld [vmem:[#allocation2 + $0x1e8] sm:$0xff]  ;;  %3035 = vst.msk [vmem:[#allocation2 + $0x1f8] sm:$0xff] %vm1399_vm8, %v2971_v6 }
 0x46e   :  { %3034 = vst.msk [vmem:[#allocation2 + $0x1f0] sm:$0xff] %vm1399_vm8, %v2969_v18  ;;  %4670 = vmatmul.mubr.msk.f32.gmra.mrb[28].mxu1 %vm3304_vm10, %v3289_v51 }
 0x470   :  { %v4644_v19 = vpop.f32.mrb[10].mxu1  ;;  %v3163_v27 = vpop.permute.xlu1 %3162 }
 0x471   :  { %v3161_v20 = vpop.permute.xlu0 %3160  ;;  %v3783_v26 = vadd.f32 %v7542_v43, %v4644_v19  ;;  %v3777_v32 = vpop.f32.mrb[11].mxu1  ;;  %3227 = vst.msk [vmem:[#allocation2 + $0x1f8] sm:$0xff] %vm1592_vm9, %v3163_v27 }
 0x472   :  { %3226 = vst.msk [vmem:[#allocation2 + $0x1f0] sm:$0xff] %vm1592_vm9, %v3161_v20  ;;  %v3778_v4 = vadd.f32 %v7542_v43, %v3777_v32 }
 0x473   :  { %3929 = vst [vmem:[%s7738_s3 + $0x158] sm:$0xff] %v3783_v26 }
 0x474   :  { %3928 = vst [vmem:[%s7738_s3 + $0x150] sm:$0xff] %v3778_v4 }
 0x478   :  { %v3291_v35 = vld [vmem:[#allocation2 + $0x1f8] sm:$0xff] }
 0x479   :  { %v3290_v34 = vld [vmem:[#allocation2 + $0x1f0] sm:$0xff] }
 0x47a   :  { %4672 = vmatprep.mubr.msk.f32.mxu1 %vm3304_vm10, %v3290_v34 }
 0x47b   :  { %4673 = vmatmul.mubr.msk.f32.gmra.mrb[30].mxu1 %vm3304_vm10, %v3291_v35 }
 0x484   :  { %v4647_v33 = vpop.f32.mrb[12].mxu1 }
 0x485   :  { %v3793_v38 = vadd.f32 %v7542_v43, %v4647_v33  ;;  %v3787_v36 = vpop.f32.mrb[13].mxu1 }
 0x486   :  { %v3788_v3 = vadd.f32 %v7542_v43, %v3787_v36 }
 0x487   :  { %3931 = vst [vmem:[%s7738_s3 + $0x168] sm:$0xff] %v3793_v38 }
 0x488   :  { %3930 = vst [vmem:[%s7738_s3 + $0x160] sm:$0xff] %v3788_v3 }
 0x498   :  { %v4650_v39 = vpop.f32.mrb[14].mxu1 }
 0x499   :  { %v3803_v40 = vadd.f32 %v7542_v43, %v4650_v39  ;;  %v3797_v41 = vpop.f32.mrb[15].mxu1 }
 0x49a   :  { %v3798_v52 = vadd.f32 %v7542_v43, %v3797_v41 }
 0x49b   :  { %3933 = vst [vmem:[%s7738_s3 + $0x178] sm:$0xff] %v3803_v40 }
 0x49c   :  { %3932 = vst [vmem:[%s7738_s3 + $0x170] sm:$0xff] %v3798_v52 }
 0x4b1   :  { %v4653_v53 = vpop.f32.mrb[16].mxu1 }
 0x4b2   :  { %v3813_v31 = vadd.f32 %v7542_v43, %v4653_v53  ;;  %v3807_v57 = vpop.f32.mrb[17].mxu1 }
 0x4b3   :  { %v3808_v22 = vadd.f32 %v7542_v43, %v3807_v57 }
 0x4b4   :  { %3935 = vst [vmem:[%s7738_s3 + $0x188] sm:$0xff] %v3813_v31 }
 0x4b5   :  { %3934 = vst [vmem:[%s7738_s3 + $0x180] sm:$0xff] %v3808_v22 }
 0x4c9   :  { %v4656_v48 = vpop.f32.mrb[18].mxu1 }
 0x4ca   :  { %v3823_v56 = vadd.f32 %v7542_v43, %v4656_v48  ;;  %v3817_v30 = vpop.f32.mrb[19].mxu1 }
 0x4cb   :  { %v3818_v49 = vadd.f32 %v7542_v43, %v3817_v30 }
 0x4cc   :  { %3937 = vst [vmem:[%s7738_s3 + $0x198] sm:$0xff] %v3823_v56 }
 0x4cd   :  { %3936 = vst [vmem:[%s7738_s3 + $0x190] sm:$0xff] %v3818_v49 }
 0x4e1   :  { %v4659_v55 = vpop.f32.mrb[20].mxu1 }
 0x4e2   :  { %v3833_v12 = vadd.f32 %v7542_v43, %v4659_v55  ;;  %v3827_v5 = vpop.f32.mrb[21].mxu1 }
 0x4e3   :  { %v3828_v45 = vadd.f32 %v7542_v43, %v3827_v5 }
 0x4e4   :  { %3939 = vst [vmem:[%s7738_s3 + $0x1a8] sm:$0xff] %v3833_v12 }
 0x4e5   :  { %3938 = vst [vmem:[%s7738_s3 + $0x1a0] sm:$0xff] %v3828_v45 }
 0x4f9   :  { %v4662_v54 = vpop.f32.mrb[22].mxu1 }
 0x4fa   :  { %v3843_v42 = vadd.f32 %v7542_v43, %v4662_v54  ;;  %v3837_v63 = vpop.f32.mrb[23].mxu1 }
 0x4fb   :  { %v3838_v21 = vadd.f32 %v7542_v43, %v3837_v63 }
 0x4fc   :  { %3941 = vst [vmem:[%s7738_s3 + $0x1b8] sm:$0xff] %v3843_v42 }
 0x4fd   :  { %3940 = vst [vmem:[%s7738_s3 + $0x1b0] sm:$0xff] %v3838_v21 }
 0x511   :  { %v4665_v8 = vpop.f32.mrb[24].mxu1 }
 0x512   :  { %v3853_v9 = vadd.f32 %v7542_v43, %v4665_v8  ;;  %v3847_v2 = vpop.f32.mrb[25].mxu1 }
 0x513   :  { %v3848_v10 = vadd.f32 %v7542_v43, %v3847_v2 }
 0x514   :  { %3943 = vst [vmem:[%s7738_s3 + $0x1c8] sm:$0xff] %v3853_v9 }
 0x515   :  { %3942 = vst [vmem:[%s7738_s3 + $0x1c0] sm:$0xff] %v3848_v10 }
 0x529   :  { %v4668_v0 = vpop.f32.mrb[26].mxu1 }
 0x52a   :  { %v3863_v14 = vadd.f32 %v7542_v43, %v4668_v0  ;;  %v3857_v28 = vpop.f32.mrb[27].mxu1 }
 0x52b   :  { %v3858_v16 = vadd.f32 %v7542_v43, %v3857_v28 }
 0x52c   :  { %3945 = vst [vmem:[%s7738_s3 + $0x1d8] sm:$0xff] %v3863_v14 }
 0x52d   :  { %3944 = vst [vmem:[%s7738_s3 + $0x1d0] sm:$0xff] %v3858_v16 }
 0x541   :  { %v4671_v17 = vpop.f32.mrb[28].mxu1 }
 0x542   :  { %v3873_v50 = vadd.f32 %v7542_v43, %v4671_v17  ;;  %v3867_v58 = vpop.f32.mrb[29].mxu1 }
 0x543   :  { %v3868_v15 = vadd.f32 %v7542_v43, %v3867_v58 }
 0x544   :  { %3947 = vst [vmem:[%s7738_s3 + $0x1e8] sm:$0xff] %v3873_v50 }
 0x545   :  { %3946 = vst [vmem:[%s7738_s3 + $0x1e0] sm:$0xff] %v3868_v15 }
 0x54e   :  { %v4674_v7 = vpop.f32.mrb[30].mxu1 }
 0x54f   :  { %v3883_v23 = vadd.f32 %v7542_v43, %v4674_v7  ;;  %v3877_v1 = vpop.f32.mrb[31].mxu1 }
 0x550   :  { %v3878_v60 = vadd.f32 %v7542_v43, %v3877_v1 }
 0x551   :  { %3949 = vst [vmem:[%s7738_s3 + $0x1f8] sm:$0xff] %v3883_v23 }
 0x552   :  { %3948 = vst [vmem:[%s7738_s3 + $0x1f0] sm:$0xff] %v3878_v60 }

</bundles_post_ra>
